<compile_context>
chip_gen: v7x
topology: tpu7x:2x2x1
jax: 0.10.0
libtpu: 0.0.40
codegen_flags: <defaults>
</compile_context>

<pallas_src>
import functools
import math

import jax
import jax.numpy as jnp
import numpy as np
from jax.experimental import pallas as pl
from jax.experimental.pallas import tpu as pltpu


# ----------------------------------------------------------------------------
# generation-aware budgets
# ----------------------------------------------------------------------------
def _vmem_capacity_bytes():
    try:
        info = pltpu.get_tpu_info()
        for attr in ("vmem_capacity_bytes", "vmem_size_bytes"):
            cap = getattr(info, attr, None)
            if cap:
                return int(cap)
    except Exception:
        pass
    return 128 * 1024 * 1024          # v5e / v6e physical VMEM


_VMEM_CAP = _vmem_capacity_bytes()
# 48 MiB on v7x (64 MiB/TC), 64 MiB on v5e/v6e (128 MiB physical).
_VMEM_LIMIT = max(32 * 1024 * 1024, min(int(_VMEM_CAP * 3 // 4), 64 * 1024 * 1024))
# Halve the activation block on v7x: live f32 intermediates scale with blk_rows.
_MAX_ROWS = 512 if _VMEM_CAP <= 64 * 1024 * 1024 else 1024


# ----------------------------------------------------------------------------
# shared in-kernel helpers
# ----------------------------------------------------------------------------
def _layer_norm(x, gamma, beta, eps=1e-5):
    mu = jnp.mean(x, axis=-1, keepdims=True)
    var = jnp.mean(jnp.square(x - mu), axis=-1, keepdims=True)
    return (x - mu) * jax.lax.rsqrt(var + eps) * gamma + beta


def _mha_core(q2d, k2d, v2d, nb, seq, num_heads):
    """Multi-head attention core on already-projected activations.

    q2d/k2d/v2d : (nb*seq, D) f32 slabs (q already scaled by 1/sqrt(head_dim); k/v
                  biases are folded away host-side).
    Returns the head-concatenated context (nb*seq, D) in f32 (out-projection is done
    by the caller as ONE K=D matmul).
    """
    R, D = q2d.shape
    dh = D // num_heads
    q3 = q2d.astype(jnp.bfloat16).reshape(nb, seq, D)
    k3 = k2d.astype(jnp.bfloat16).reshape(nb, seq, D)
    v3 = v2d.astype(jnp.bfloat16).reshape(nb, seq, D)

    ctx = []
    for h in range(num_heads):
        sl = slice(h * dh, (h + 1) * dh)
        s = jnp.einsum('bqd,bkd->bqk', q3[:, :, sl], k3[:, :, sl],
                       preferred_element_type=jnp.float32)          # (nb, seq, seq)
        s = s - jnp.max(s, axis=-1, keepdims=True)
        p = jnp.exp(s)
        # approx reciprocal runs on the EUP slot; fine for inference numerics.
        p = p * pl.reciprocal(jnp.sum(p, axis=-1, keepdims=True), approx=True)
        ctx.append(jnp.einsum('bqk,bkd->bqd', p.astype(jnp.bfloat16), v3[:, :, sl],
                              preferred_element_type=jnp.float32))   # (nb, seq, dh)
    # head-contiguous context buffer -> single (R, D) @ (D, F) out-projection later
    return jnp.concatenate(ctx, axis=-1).reshape(R, D)


# ----------------------------------------------------------------------------
# kernel 1: fused transformer encoder layer
# ----------------------------------------------------------------------------
def _encoder_layer_kernel(x_ref, w_qkv_ref, w_o_ref, w_ff1_ref, b_ff1_ref,
                          w_ff2_ref, pvec_ref, o_ref, *, nb, seq, num_heads):
    D = o_ref.shape[-1]
    x_bf = x_ref[...]                                     # (R, D) bf16, R = nb*seq
    x_f32 = x_bf.astype(jnp.float32)

    pv = pvec_ref[...]                                    # (7, D) f32 packed params
    bq, b_o, g1, beta1, b_ff2, g2, beta2 = (pv[i:i + 1, :] for i in range(7))

    # fused QKV projection on the flat slab; 1/sqrt(dh) folded into the Q columns,
    # K bias dropped (softmax shift-invariant), V bias folded into b_o host-side.
    qkv = jnp.dot(x_bf, w_qkv_ref[...], preferred_element_type=jnp.float32)  # (R, 3D)
    q = qkv[:, :D] + bq
    k = qkv[:, D:2 * D]
    v = qkv[:, 2 * D:]

    ctx = _mha_core(q, k, v, nb, seq, num_heads)          # (R, D) head-contiguous
    attn = jnp.dot(ctx.astype(jnp.bfloat16), w_o_ref[...],
                   preferred_element_type=jnp.float32) + b_o

    y = _layer_norm(x_f32 + attn, g1, beta1)

    h = jnp.dot(y.astype(jnp.bfloat16), w_ff1_ref[...],
                preferred_element_type=jnp.float32) + b_ff1_ref[...]
    h = jnp.maximum(h, 0.0)
    ff = jnp.dot(h.astype(jnp.bfloat16), w_ff2_ref[...],
                 preferred_element_type=jnp.float32) + b_ff2

    o_ref[...] = _layer_norm(y + ff, g2, beta2).astype(o_ref.dtype)


# ----------------------------------------------------------------------------
# kernel 2: both cross attentions + concat + final Linear (fused, folded)
# ----------------------------------------------------------------------------
def _cross_fusion_kernel(v_ref, p_ref,
                         wq_v_ref, bq_v_ref, wkv_v_ref, wov_ref,
                         wq_p_ref, bq_p_ref, wkv_p_ref, wop_ref,
                         bfin_ref, o_ref, *, nb, seq, num_heads):
    Dv = v_ref.shape[-1]
    Dp = p_ref.shape[-1]
    xv = v_ref[...]                                       # (R, Dv) bf16
    xp = p_ref[...]                                       # (R, Dp) bf16

    # visual queries attend over physiological keys/values
    q_v = jnp.dot(xv, wq_v_ref[...], preferred_element_type=jnp.float32) + bq_v_ref[...]
    kv_v = jnp.dot(xp, wkv_v_ref[...], preferred_element_type=jnp.float32)
    ctx_v = _mha_core(q_v, kv_v[:, :Dv], kv_v[:, Dv:], nb, seq, num_heads)
    out = jnp.dot(ctx_v.astype(jnp.bfloat16), wov_ref[...],
                  preferred_element_type=jnp.float32)

    # physiological queries attend over visual keys/values
    q_p = jnp.dot(xp, wq_p_ref[...], preferred_element_type=jnp.float32) + bq_p_ref[...]
    kv_p = jnp.dot(xv, wkv_p_ref[...], preferred_element_type=jnp.float32)
    ctx_p = _mha_core(q_p, kv_p[:, :Dp], kv_p[:, Dp:], nb, seq, num_heads)
    out = out + jnp.dot(ctx_p.astype(jnp.bfloat16), wop_ref[...],
                        preferred_element_type=jnp.float32)

    # out-projections + concat + final Linear were folded into wov/wop/bfin host-side.
    o_ref[...] = (out + bfin_ref[...]).astype(o_ref.dtype)


# ----------------------------------------------------------------------------
# wrappers
# ----------------------------------------------------------------------------
_ENC_ORDER = ('w_qkv', 'w_o', 'w_ff1', 'b_ff1', 'w_ff2', 'pvec')
_CROSS_ORDER = ('wq_v', 'bq_v', 'wkv_v', 'wov', 'wq_p', 'bq_p', 'wkv_p', 'wop', 'bfin')


def _pick_block(nb, seq, max_rows=_MAX_ROWS, min_steps=2):
    """Largest divisor of nb whose (block*seq) rows fit the row budget, keep the
    sublane constraint, and (if possible) leave >= min_steps grid steps so both v7x
    TensorCores get work under dimension_semantics=("parallel",)."""
    cands = []
    for c in range(nb, 0, -1):
        if nb % c:
            continue
        rows = c * seq
        if c != nb and rows % 8 != 0:     # block must be sublane-aligned (or full axis)
            continue
        cands.append((c, rows))
    fitting = [c for c, r in cands if r <= max_rows]
    pool = fitting if fitting else [c for c, _ in cands]
    for c in pool:                         # descending
        if nb // c >= min_steps:
            return c
    return pool[0]


def _full_spec(arr):
    # constant block index -> loaded once, kept resident across the grid
    return pl.BlockSpec(arr.shape, lambda *_: (0,) * arr.ndim)


def encoder_layer_2d(x2d, kp, num_heads, nb, seq, block_nb=None):
    """One fused encoder layer on a flattened (nb*seq, D) batch-major bf16 slab."""
    rows, D = x2d.shape
    hidden = kp['w_ff1'].shape[1]
    if block_nb is None:
        block_nb = _pick_block(nb, seq)
    grid = (nb // block_nb,)
    blk_rows = block_nb * seq

    kernel = functools.partial(_encoder_layer_kernel,
                               nb=block_nb, seq=seq, num_heads=num_heads)
    weights = [kp[name] for name in _ENC_ORDER]

    flops = 2 * rows * D * (4 * D + 2 * hidden) + 4 * nb * seq * seq * D
    transc = nb * num_heads * seq * seq
    bytes_acc = 2 * rows * D * 2 + sum(w.size * w.dtype.itemsize for w in weights)

    return pl.pallas_call(
        kernel,
        out_shape=jax.ShapeDtypeStruct((rows, D), jnp.bfloat16),
        grid=grid,
        in_specs=[pl.BlockSpec((blk_rows, D), lambda i: (i, 0))]
                 + [_full_spec(w) for w in weights],
        out_specs=pl.BlockSpec((blk_rows, D), lambda i: (i, 0)),
        compiler_params=pltpu.CompilerParams(
            dimension_semantics=("parallel",),
            vmem_limit_bytes=_VMEM_LIMIT),
        cost_estimate=pl.CostEstimate(flops=int(flops), transcendentals=int(transc),
                                      bytes_accessed=int(bytes_acc)),
    )(x2d, *weights)


def cross_fusion_2d(v2d, p2d, cp, num_heads, nb, seq, block_nb=None):
    """Both cross attentions + (folded) concat/final Linear on (nb*seq, D) slabs."""
    rows, Dv = v2d.shape
    Dp = p2d.shape[-1]
    out_dim = cp['wov'].shape[-1]
    if block_nb is None:
        block_nb = _pick_block(nb, seq)
    grid = (nb // block_nb,)
    blk_rows = block_nb * seq

    kernel = functools.partial(_cross_fusion_kernel,
                               nb=block_nb, seq=seq, num_heads=num_heads)
    weights = [cp[name] for name in _CROSS_ORDER]

    flops = 2 * rows * (Dv * Dv + 2 * Dv * Dp + Dp * Dp + Dp * Dp
                        + (Dv + Dp) * out_dim) + 4 * nb * seq * seq * (Dv + Dp)
    transc = 2 * nb * num_heads * seq * seq
    bytes_acc = 2 * rows * (Dv + Dp) + 4 * rows * out_dim \
        + sum(w.size * w.dtype.itemsize for w in weights)

    return pl.pallas_call(
        kernel,
        out_shape=jax.ShapeDtypeStruct((rows, out_dim), jnp.float32),
        grid=grid,
        in_specs=[pl.BlockSpec((blk_rows, Dv), lambda i: (i, 0)),
                  pl.BlockSpec((blk_rows, Dp), lambda i: (i, 0))]
                 + [_full_spec(w) for w in weights],
        out_specs=pl.BlockSpec((blk_rows, out_dim), lambda i: (i, 0)),
        compiler_params=pltpu.CompilerParams(
            dimension_semantics=("parallel",),
            vmem_limit_bytes=_VMEM_LIMIT),
        cost_estimate=pl.CostEstimate(flops=int(flops), transcendentals=int(transc),
                                      bytes_accessed=int(bytes_acc)),
    )(v2d, p2d, *weights)


def multimodal_forward(visual, phys, prep, num_heads):
    """visual/phys: (T, B, D) in the PyTorch (seq-first) layout. Returns (T, B, out)."""
    T, B, Dv = visual.shape
    Dp = phys.shape[-1]

    # encoders: self-attention along axis 0 (T), batch along axis 1 (B).
    # inter-layer activations stay bf16 end-to-end (LN/residual math is f32 in-kernel).
    v2d = jnp.transpose(visual, (1, 0, 2)).reshape(B * T, Dv).astype(jnp.bfloat16)
    p2d = jnp.transpose(phys, (1, 0, 2)).reshape(B * T, Dp).astype(jnp.bfloat16)
    for lp in prep['visual_layers']:
        v2d = encoder_layer_2d(v2d, lp, num_heads, nb=B, seq=T)
    for lp in prep['phys_layers']:
        p2d = encoder_layer_2d(p2d, lp, num_heads, nb=B, seq=T)

    # cross attention: the module permutes, so attention runs along axis 1 (B),
    # independently for each t in T.  (bf16 boundary permute; see TODO at top.)
    v_tb = jnp.transpose(v2d.reshape(B, T, Dv), (1, 0, 2)).reshape(T * B, Dv)
    p_tb = jnp.transpose(p2d.reshape(B, T, Dp), (1, 0, 2)).reshape(T * B, Dp)
    out2d = cross_fusion_2d(v_tb, p_tb, prep['cross'], num_heads, nb=T, seq=B)
    return out2d.reshape(T, B, -1)


# ----------------------------------------------------------------------------
# parameter construction / preparation (host-side, one time)
# ----------------------------------------------------------------------------
def init_params(key, visual_dim, audio_dim, num_heads, hidden_dim, num_layers, out_dim):
    """Deterministic synthetic parameters mirroring the PyTorch module shapes."""
    del num_heads

    def uni(k, shape, fan_in):
        bound = 1.0 / math.sqrt(fan_in)
        return jax.random.uniform(k, shape, jnp.float32, -bound, bound)

    def encoder_layer_params(k, D):
        ks = jax.random.split(k, 8)
        return {
            'in_proj_weight': uni(ks[0], (3 * D, D), D),
            'in_proj_bias': uni(ks[1], (3 * D,), D),
            'out_proj_weight': uni(ks[2], (D, D), D),
            'out_proj_bias': uni(ks[3], (D,), D),
            'w_ff1': uni(ks[4], (hidden_dim, D), D),
            'b_ff1': uni(ks[5], (hidden_dim,), D),
            'w_ff2': uni(ks[6], (D, hidden_dim), hidden_dim),
            'b_ff2': uni(ks[7], (D,), hidden_dim),
            'ln1_weight': jnp.ones((D,), jnp.float32),
            'ln1_bias': jnp.zeros((D,), jnp.float32),
            'ln2_weight': jnp.ones((D,), jnp.float32),
            'ln2_bias': jnp.zeros((D,), jnp.float32),
        }

    def mha_params(k, D):
        ks = jax.random.split(k, 4)
        return {
            'in_proj_weight': uni(ks[0], (3 * D, D), D),
            'in_proj_bias': uni(ks[1], (3 * D,), D),
            'out_proj_weight': uni(ks[2], (D, D), D),
            'out_proj_bias': uni(ks[3], (D,), D),
        }

    ks = jax.random.split(key, 2 * num_layers + 4)
    visual_layers = [encoder_layer_params(ks[i], visual_dim) for i in range(num_layers)]
    phys_layers = [encoder_layer_params(ks[num_layers + i], audio_dim)
                   for i in range(num_layers)]
    cross_v = mha_params(ks[2 * num_layers], visual_dim)
    cross_p = mha_params(ks[2 * num_layers + 1], audio_dim)
    # The PyTorch module hard-codes Linear(1024, 512) (i.e. visual_dim=audio_dim=512);
    # parameterised here so the small test shapes run.
    final_w = uni(ks[2 * num_layers + 2], (out_dim, visual_dim + audio_dim),
                  visual_dim + audio_dim)
    final_b = uni(ks[2 * num_layers + 3], (out_dim,), visual_dim + audio_dim)
    return {'visual_layers': visual_layers, 'phys_layers': phys_layers,
            'cross_v': cross_v, 'cross_p': cross_p,
            'final_w': final_w, 'final_b': final_b}


def _prepare_encoder_layer(p, num_heads):
    D = p['out_proj_weight'].shape[0]
    dh = D // num_heads
    scale = 1.0 / math.sqrt(dh)
    w_in, b_in = p['in_proj_weight'], p['in_proj_bias']      # (3D, D), (3D,)
    w_o = p['out_proj_weight']                               # (D, D): out = ctx@W.T + b
    # exact folds: Q scale into weights/bias, drop K bias (softmax shift-invariance),
    # fold V bias into the out-projection bias.
    w_qkv = jnp.concatenate([w_in[:D] * scale, w_in[D:]], 0).T      # (D, 3D)
    bq = b_in[:D] * scale
    bv = b_in[2 * D:]
    b_o_eff = p['out_proj_bias'] + w_o @ bv
    pvec = jnp.stack([bq, b_o_eff, p['ln1_weight'], p['ln1_bias'],
                      p['b_ff2'], p['ln2_weight'], p['ln2_bias']], axis=0)  # (7, D)
    return {
        'w_qkv': w_qkv.astype(jnp.bfloat16),
        'w_o': w_o.T.astype(jnp.bfloat16),                          # (D, D), un-split
        'w_ff1': p['w_ff1'].T.astype(jnp.bfloat16),                 # (D, hidden)
        'b_ff1': p['b_ff1'][None, :].astype(jnp.float32),
        'w_ff2': p['w_ff2'].T.astype(jnp.bfloat16),                 # (hidden, D)
        'pvec': pvec.astype(jnp.float32),
    }


def _prepare_cross(cv, cp_, final_w, final_b, num_heads):
    Dv = cv['out_proj_weight'].shape[0]
    Dp = cp_['out_proj_weight'].shape[0]
    wf_t = final_w.T                        # (Dv+Dp, out_dim)
    wf_v, wf_p = wf_t[:Dv], wf_t[Dv:]

    def branch(c, D, wf_rows):
        dh = D // num_heads
        scale = 1.0 / math.sqrt(dh)
        w_in, b_in = c['in_proj_weight'], c['in_proj_bias']
        wo_comb = c['out_proj_weight'].T @ wf_rows            # (D, out_dim), folded
        bq = b_in[:D] * scale
        bv = b_in[2 * D:]
        bias = c['out_proj_bias'] @ wf_rows + bv @ wo_comb    # (out_dim,)
        return {
            'wq': (w_in[:D] * scale).T.astype(jnp.bfloat16),        # (D, D)
            'bq': bq[None, :].astype(jnp.float32),
            'wkv': w_in[D:].T.astype(jnp.bfloat16),                 # (D, 2D), no bias
            'wo': wo_comb.astype(jnp.bfloat16),                     # (D, out_dim)
            'bias': bias,
        }

    bvb = branch(cv, Dv, wf_v)
    bpb = branch(cp_, Dp, wf_p)
    return {
        'wq_v': bvb['wq'], 'bq_v': bvb['bq'], 'wkv_v': bvb['wkv'], 'wov': bvb['wo'],
        'wq_p': bpb['wq'], 'bq_p': bpb['bq'], 'wkv_p': bpb['wkv'], 'wop': bpb['wo'],
        'bfin': (bvb['bias'] + bpb['bias'] + final_b)[None, :].astype(jnp.float32),
    }


def prepare_params(params, num_heads):
    Dv = params['cross_v']['out_proj_weight'].shape[0]
    Dp = params['cross_p']['out_proj_weight'].shape[0]
    # nn.MultiheadAttention defaults (kdim=vdim=embed_dim) require equal dims here.
    assert Dv == Dp, "cross attention requires visual_dim == audio_dim"
    return {
        'visual_layers': [_prepare_encoder_layer(lp, num_heads)
                          for lp in params['visual_layers']],
        'phys_layers': [_prepare_encoder_layer(lp, num_heads)
                        for lp in params['phys_layers']],
        'cross': _prepare_cross(params['cross_v'], params['cross_p'],
                                params['final_w'], params['final_b'], num_heads),
    }


# ----------------------------------------------------------------------------
# pure-JAX f32 reference (PyTorch semantics) for the correctness check
# ----------------------------------------------------------------------------
def _layernorm_ref(x, g, b, eps=1e-5):
    mu = x.mean(-1, keepdims=True)
    var = ((x - mu) ** 2).mean(-1, keepdims=True)
    return (x - mu) * jax.lax.rsqrt(var + eps) * g + b


def _mha_ref(q_in, k_in, v_in, p, num_heads):
    L, N, E = q_in.shape
    S = k_in.shape[0]
    d = E // num_heads
    w_in, b_in = p['in_proj_weight'], p['in_proj_bias']
    q = jnp.einsum('lne,fe->lnf', q_in, w_in[:E]) + b_in[:E]
    k = jnp.einsum('sne,fe->snf', k_in, w_in[E:2 * E]) + b_in[E:2 * E]
    v = jnp.einsum('sne,fe->snf', v_in, w_in[2 * E:]) + b_in[2 * E:]
    q = q.reshape(L, N, num_heads, d) / math.sqrt(d)
    k = k.reshape(S, N, num_heads, d)
    v = v.reshape(S, N, num_heads, d)
    s = jnp.einsum('lnhd,snhd->nhls', q, k)
    a = jax.nn.softmax(s, axis=-1)
    o = jnp.einsum('nhls,snhd->lnhd', a, v).reshape(L, N, E)
    return jnp.einsum('lne,fe->lnf', o, p['out_proj_weight']) + p['out_proj_bias']


def _encoder_layer_ref(x, p, num_heads):
    attn = _mha_ref(x, x, x, p, num_heads)
    y = _layernorm_ref(x + attn, p['ln1_weight'], p['ln1_bias'])
    h = jax.nn.relu(jnp.einsum('lne,he->lnh', y, p['w_ff1']) + p['b_ff1'])
    ff = jnp.einsum('lnh,eh->lne', h, p['w_ff2']) + p['b_ff2']
    return _layernorm_ref(y + ff, p['ln2_weight'], p['ln2_bias'])


def _reference(visual, phys, params, num_heads):
    v = visual
    for lp in params['visual_layers']:
        v = _encoder_layer_ref(v, lp, num_heads)
    p = phys
    for lp in params['phys_layers']:
        p = _encoder_layer_ref(p, lp, num_heads)
    vq = jnp.transpose(v, (1, 0, 2))      # cross-attention: seq axis = B, batch = T
    pq = jnp.transpose(p, (1, 0, 2))
    cv = jnp.transpose(_mha_ref(vq, pq, pq, params['cross_v'], num_heads), (1, 0, 2))
    cp_ = jnp.transpose(_mha_ref(pq, vq, vq, params['cross_p'], num_heads), (1, 0, 2))
    cat = jnp.concatenate([cv, cp_], axis=2)
    return jnp.einsum('tbe,oe->tbo', cat, params['final_w']) + params['final_b']


# ----------------------------------------------------------------------------
if __name__ == "__main__":
    T, B = 8, 2               # (seq, batch) in the PyTorch (T, B, D) layout
    DV = DP = 32              # visual_dim == audio_dim (required by the module)
    NUM_HEADS = 4
    HIDDEN = 64
    NUM_LAYERS = 2
    OUT_DIM = (DV + DP) // 2  # mirrors the hard-coded Linear(1024, 512) at Dv=Dp=512

    key = jax.random.PRNGKey(0)
    k_v, k_p, k_par = jax.random.split(key, 3)
    visual = jax.random.normal(k_v, (T, B, DV), jnp.float32)
    phys = jax.random.normal(k_p, (T, B, DP), jnp.float32)

    params = init_params(k_par, DV, DP, NUM_HEADS, HIDDEN, NUM_LAYERS, OUT_DIM)
    prep = prepare_params(params, NUM_HEADS)

    fwd = jax.jit(functools.partial(multimodal_forward, num_heads=NUM_HEADS))
    out = jax.block_until_ready(fwd(visual, phys, prep))

    ref = _reference(visual, phys, params, NUM_HEADS)
    # bf16 MXU operands + bf16 inter-layer activations (f32 accumulation / LN / softmax)
    # => relaxed tolerance vs the pure-f32 reference.
    np.testing.assert_allclose(np.asarray(out), np.asarray(ref), rtol=7.5e-2, atol=7.5e-2)

    print("KERNEL_OK")
</pallas_src>

<mosaic_0001>
module attributes {stable_mosaic.version = 11 : i64} {
  func.func @_encoder_layer_kernel(%arg0: i32, %arg1: memref<8x32xbf16, #tpu.memory_space<vmem>>, %arg2: memref<32x96xbf16, #tpu.memory_space<vmem>>, %arg3: memref<32x32xbf16, #tpu.memory_space<vmem>>, %arg4: memref<32x64xbf16, #tpu.memory_space<vmem>>, %arg5: memref<1x64xf32, #tpu.memory_space<vmem>>, %arg6: memref<64x32xbf16, #tpu.memory_space<vmem>>, %arg7: memref<7x32xf32, #tpu.memory_space<vmem>>, %arg8: memref<8x32xbf16, #tpu.memory_space<vmem>>) attributes {dimension_semantics = [#tpu.dimension_semantics<parallel>], iteration_bounds = array<i64: 2>, scalar_prefetch = 0 : i64, scratch_operands = 0 : i64, tpu.core_type = #tpu.core_type<tc>, window_params = [{transform_indices = @transform_0, window_bounds = array<i64: 8, 32>}, {pipeline_mode = #tpu.pipeline_mode<synchronous>, transform_indices = @transform_1, window_bounds = array<i64: 32, 96>}, {pipeline_mode = #tpu.pipeline_mode<synchronous>, transform_indices = @transform_2, window_bounds = array<i64: 32, 32>}, {pipeline_mode = #tpu.pipeline_mode<synchronous>, transform_indices = @transform_3, window_bounds = array<i64: 32, 64>}, {pipeline_mode = #tpu.pipeline_mode<synchronous>, transform_indices = @transform_4, window_bounds = array<i64: 1, 64>}, {pipeline_mode = #tpu.pipeline_mode<synchronous>, transform_indices = @transform_5, window_bounds = array<i64: 64, 32>}, {pipeline_mode = #tpu.pipeline_mode<synchronous>, transform_indices = @transform_6, window_bounds = array<i64: 7, 32>}, {transform_indices = @transform_7, window_bounds = array<i64: 8, 32>}]} {
    %c0 = arith.constant 0 : index
    %c0_0 = arith.constant 0 : index
    %0 = vector.load %arg1[%c0, %c0_0] : memref<8x32xbf16, #tpu.memory_space<vmem>>, vector<8x32xbf16>
    %1 = arith.extf %0 : vector<8x32xbf16> to vector<8x32xf32>
    %c0_1 = arith.constant 0 : index
    %c0_2 = arith.constant 0 : index
    %2 = vector.load %arg7[%c0_1, %c0_2] : memref<7x32xf32, #tpu.memory_space<vmem>>, vector<7x32xf32>
    %3 = vector.extract_strided_slice %2 {offsets = [0, 0], sizes = [1, 32], strides = [1, 1]} : vector<7x32xf32> to vector<1x32xf32>
    %4 = vector.extract_strided_slice %2 {offsets = [1, 0], sizes = [1, 32], strides = [1, 1]} : vector<7x32xf32> to vector<1x32xf32>
    %5 = vector.extract_strided_slice %2 {offsets = [2, 0], sizes = [1, 32], strides = [1, 1]} : vector<7x32xf32> to vector<1x32xf32>
    %6 = vector.extract_strided_slice %2 {offsets = [3, 0], sizes = [1, 32], strides = [1, 1]} : vector<7x32xf32> to vector<1x32xf32>
    %7 = vector.extract_strided_slice %2 {offsets = [4, 0], sizes = [1, 32], strides = [1, 1]} : vector<7x32xf32> to vector<1x32xf32>
    %8 = vector.extract_strided_slice %2 {offsets = [5, 0], sizes = [1, 32], strides = [1, 1]} : vector<7x32xf32> to vector<1x32xf32>
    %9 = vector.extract_strided_slice %2 {offsets = [6, 0], sizes = [1, 32], strides = [1, 1]} : vector<7x32xf32> to vector<1x32xf32>
    %c0_3 = arith.constant 0 : index
    %c0_4 = arith.constant 0 : index
    %10 = vector.load %arg2[%c0_3, %c0_4] : memref<32x96xbf16, #tpu.memory_space<vmem>>, vector<32x96xbf16>
    %cst = arith.constant dense<0.000000e+00> : vector<8x96xf32>
    %11 = tpu.matmul %0, %10, %cst {dimension_numbers = #tpu.dot_dimension_numbers<[1], [0], [0], [1], [0, 0, 1, 1], [], []>} : vector<8x32xbf16>, vector<32x96xbf16>, vector<8x96xf32> -> vector<8x96xf32>
    %12 = vector.extract_strided_slice %11 {offsets = [0, 0], sizes = [8, 32], strides = [1, 1]} : vector<8x96xf32> to vector<8x32xf32>
    %13 = vector.broadcast %3 : vector<1x32xf32> to vector<8x32xf32>
    %14 = arith.addf %12, %13 : vector<8x32xf32>
    %15 = vector.extract_strided_slice %11 {offsets = [0, 32], sizes = [8, 32], strides = [1, 1]} : vector<8x96xf32> to vector<8x32xf32>
    %16 = vector.extract_strided_slice %11 {offsets = [0, 64], sizes = [8, 32], strides = [1, 1]} : vector<8x96xf32> to vector<8x32xf32>
    %17 = arith.truncf %14 : vector<8x32xf32> to vector<8x32xbf16>
    %18 = vector.shape_cast %17 : vector<8x32xbf16> to vector<1x8x32xbf16>
    %19 = arith.truncf %15 : vector<8x32xf32> to vector<8x32xbf16>
    %20 = vector.shape_cast %19 : vector<8x32xbf16> to vector<1x8x32xbf16>
    %21 = arith.truncf %16 : vector<8x32xf32> to vector<8x32xbf16>
    %22 = vector.shape_cast %21 : vector<8x32xbf16> to vector<1x8x32xbf16>
    %23 = vector.extract_strided_slice %18 {offsets = [0, 0, 0], sizes = [1, 8, 8], strides = [1, 1, 1]} : vector<1x8x32xbf16> to vector<1x8x8xbf16>
    %24 = vector.extract_strided_slice %20 {offsets = [0, 0, 0], sizes = [1, 8, 8], strides = [1, 1, 1]} : vector<1x8x32xbf16> to vector<1x8x8xbf16>
    "tpu.trace_start"() <{level = 10 : i32, message = "bqd,bkd->bqk"}> : () -> ()
    %cst_5 = arith.constant dense<0.000000e+00> : vector<1x8x8xf32>
    %25 = tpu.matmul %23, %24, %cst_5 {dimension_numbers = #tpu.dot_dimension_numbers<[2], [2], [1], [1], [0, 0, 0, 1, 1, 1], [0], [0]>} : vector<1x8x8xbf16>, vector<1x8x8xbf16>, vector<1x8x8xf32> -> vector<1x8x8xf32>
    "tpu.trace_stop"() : () -> ()
    %cst_6 = arith.constant dense<0xFF800000> : vector<1x8xf32>
    %26 = vector.multi_reduction <maximumf>, %25, %cst_6 [2] : vector<1x8x8xf32> to vector<1x8xf32>
    %27 = vector.shape_cast %26 : vector<1x8xf32> to vector<1x8x1xf32>
    %28 = vector.broadcast %27 : vector<1x8x1xf32> to vector<1x8x8xf32>
    %29 = arith.subf %25, %28 : vector<1x8x8xf32>
    %30 = math.exp %29 : vector<1x8x8xf32>
    %cst_7 = arith.constant dense<0.000000e+00> : vector<1x8xf32>
    %31 = vector.multi_reduction <add>, %30, %cst_7 [2] : vector<1x8x8xf32> to vector<1x8xf32>
    %32 = vector.shape_cast %31 : vector<1x8xf32> to vector<1x8x1xf32>
    %33 = tpu.reciprocal %32 {approx = true} : vector<1x8x1xf32> -> vector<1x8x1xf32>
    %34 = vector.broadcast %33 : vector<1x8x1xf32> to vector<1x8x8xf32>
    %35 = arith.mulf %30, %34 : vector<1x8x8xf32>
    %36 = arith.truncf %35 : vector<1x8x8xf32> to vector<1x8x8xbf16>
    %37 = vector.extract_strided_slice %22 {offsets = [0, 0, 0], sizes = [1, 8, 8], strides = [1, 1, 1]} : vector<1x8x32xbf16> to vector<1x8x8xbf16>
    "tpu.trace_start"() <{level = 10 : i32, message = "bqk,bkd->bqd"}> : () -> ()
    %cst_8 = arith.constant dense<0.000000e+00> : vector<1x8x8xf32>
    %38 = tpu.matmul %36, %37, %cst_8 {dimension_numbers = #tpu.dot_dimension_numbers<[2], [1], [1], [2], [0, 0, 0, 1, 1, 2], [0], [0]>} : vector<1x8x8xbf16>, vector<1x8x8xbf16>, vector<1x8x8xf32> -> vector<1x8x8xf32>
    "tpu.trace_stop"() : () -> ()
    %39 = vector.extract_strided_slice %18 {offsets = [0, 0, 8], sizes = [1, 8, 8], strides = [1, 1, 1]} : vector<1x8x32xbf16> to vector<1x8x8xbf16>
    %40 = vector.extract_strided_slice %20 {offsets = [0, 0, 8], sizes = [1, 8, 8], strides = [1, 1, 1]} : vector<1x8x32xbf16> to vector<1x8x8xbf16>
    "tpu.trace_start"() <{level = 10 : i32, message = "bqd,bkd->bqk"}> : () -> ()
    %cst_9 = arith.constant dense<0.000000e+00> : vector<1x8x8xf32>
    %41 = tpu.matmul %39, %40, %cst_9 {dimension_numbers = #tpu.dot_dimension_numbers<[2], [2], [1], [1], [0, 0, 0, 1, 1, 1], [0], [0]>} : vector<1x8x8xbf16>, vector<1x8x8xbf16>, vector<1x8x8xf32> -> vector<1x8x8xf32>
    "tpu.trace_stop"() : () -> ()
    %cst_10 = arith.constant dense<0xFF800000> : vector<1x8xf32>
    %42 = vector.multi_reduction <maximumf>, %41, %cst_10 [2] : vector<1x8x8xf32> to vector<1x8xf32>
    %43 = vector.shape_cast %42 : vector<1x8xf32> to vector<1x8x1xf32>
    %44 = vector.broadcast %43 : vector<1x8x1xf32> to vector<1x8x8xf32>
    %45 = arith.subf %41, %44 : vector<1x8x8xf32>
    %46 = math.exp %45 : vector<1x8x8xf32>
    %cst_11 = arith.constant dense<0.000000e+00> : vector<1x8xf32>
    %47 = vector.multi_reduction <add>, %46, %cst_11 [2] : vector<1x8x8xf32> to vector<1x8xf32>
    %48 = vector.shape_cast %47 : vector<1x8xf32> to vector<1x8x1xf32>
    %49 = tpu.reciprocal %48 {approx = true} : vector<1x8x1xf32> -> vector<1x8x1xf32>
    %50 = vector.broadcast %49 : vector<1x8x1xf32> to vector<1x8x8xf32>
    %51 = arith.mulf %46, %50 : vector<1x8x8xf32>
    %52 = arith.truncf %51 : vector<1x8x8xf32> to vector<1x8x8xbf16>
    %53 = vector.extract_strided_slice %22 {offsets = [0, 0, 8], sizes = [1, 8, 8], strides = [1, 1, 1]} : vector<1x8x32xbf16> to vector<1x8x8xbf16>
    "tpu.trace_start"() <{level = 10 : i32, message = "bqk,bkd->bqd"}> : () -> ()
    %cst_12 = arith.constant dense<0.000000e+00> : vector<1x8x8xf32>
    %54 = tpu.matmul %52, %53, %cst_12 {dimension_numbers = #tpu.dot_dimension_numbers<[2], [1], [1], [2], [0, 0, 0, 1, 1, 2], [0], [0]>} : vector<1x8x8xbf16>, vector<1x8x8xbf16>, vector<1x8x8xf32> -> vector<1x8x8xf32>
    "tpu.trace_stop"() : () -> ()
    %55 = vector.extract_strided_slice %18 {offsets = [0, 0, 16], sizes = [1, 8, 8], strides = [1, 1, 1]} : vector<1x8x32xbf16> to vector<1x8x8xbf16>
    %56 = vector.extract_strided_slice %20 {offsets = [0, 0, 16], sizes = [1, 8, 8], strides = [1, 1, 1]} : vector<1x8x32xbf16> to vector<1x8x8xbf16>
    "tpu.trace_start"() <{level = 10 : i32, message = "bqd,bkd->bqk"}> : () -> ()
    %cst_13 = arith.constant dense<0.000000e+00> : vector<1x8x8xf32>
    %57 = tpu.matmul %55, %56, %cst_13 {dimension_numbers = #tpu.dot_dimension_numbers<[2], [2], [1], [1], [0, 0, 0, 1, 1, 1], [0], [0]>} : vector<1x8x8xbf16>, vector<1x8x8xbf16>, vector<1x8x8xf32> -> vector<1x8x8xf32>
    "tpu.trace_stop"() : () -> ()
    %cst_14 = arith.constant dense<0xFF800000> : vector<1x8xf32>
    %58 = vector.multi_reduction <maximumf>, %57, %cst_14 [2] : vector<1x8x8xf32> to vector<1x8xf32>
    %59 = vector.shape_cast %58 : vector<1x8xf32> to vector<1x8x1xf32>
    %60 = vector.broadcast %59 : vector<1x8x1xf32> to vector<1x8x8xf32>
    %61 = arith.subf %57, %60 : vector<1x8x8xf32>
    %62 = math.exp %61 : vector<1x8x8xf32>
    %cst_15 = arith.constant dense<0.000000e+00> : vector<1x8xf32>
    %63 = vector.multi_reduction <add>, %62, %cst_15 [2] : vector<1x8x8xf32> to vector<1x8xf32>
    %64 = vector.shape_cast %63 : vector<1x8xf32> to vector<1x8x1xf32>
    %65 = tpu.reciprocal %64 {approx = true} : vector<1x8x1xf32> -> vector<1x8x1xf32>
    %66 = vector.broadcast %65 : vector<1x8x1xf32> to vector<1x8x8xf32>
    %67 = arith.mulf %62, %66 : vector<1x8x8xf32>
    %68 = arith.truncf %67 : vector<1x8x8xf32> to vector<1x8x8xbf16>
    %69 = vector.extract_strided_slice %22 {offsets = [0, 0, 16], sizes = [1, 8, 8], strides = [1, 1, 1]} : vector<1x8x32xbf16> to vector<1x8x8xbf16>
    "tpu.trace_start"() <{level = 10 : i32, message = "bqk,bkd->bqd"}> : () -> ()
    %cst_16 = arith.constant dense<0.000000e+00> : vector<1x8x8xf32>
    %70 = tpu.matmul %68, %69, %cst_16 {dimension_numbers = #tpu.dot_dimension_numbers<[2], [1], [1], [2], [0, 0, 0, 1, 1, 2], [0], [0]>} : vector<1x8x8xbf16>, vector<1x8x8xbf16>, vector<1x8x8xf32> -> vector<1x8x8xf32>
    "tpu.trace_stop"() : () -> ()
    %71 = vector.extract_strided_slice %18 {offsets = [0, 0, 24], sizes = [1, 8, 8], strides = [1, 1, 1]} : vector<1x8x32xbf16> to vector<1x8x8xbf16>
    %72 = vector.extract_strided_slice %20 {offsets = [0, 0, 24], sizes = [1, 8, 8], strides = [1, 1, 1]} : vector<1x8x32xbf16> to vector<1x8x8xbf16>
    "tpu.trace_start"() <{level = 10 : i32, message = "bqd,bkd->bqk"}> : () -> ()
    %cst_17 = arith.constant dense<0.000000e+00> : vector<1x8x8xf32>
    %73 = tpu.matmul %71, %72, %cst_17 {dimension_numbers = #tpu.dot_dimension_numbers<[2], [2], [1], [1], [0, 0, 0, 1, 1, 1], [0], [0]>} : vector<1x8x8xbf16>, vector<1x8x8xbf16>, vector<1x8x8xf32> -> vector<1x8x8xf32>
    "tpu.trace_stop"() : () -> ()
    %cst_18 = arith.constant dense<0xFF800000> : vector<1x8xf32>
    %74 = vector.multi_reduction <maximumf>, %73, %cst_18 [2] : vector<1x8x8xf32> to vector<1x8xf32>
    %75 = vector.shape_cast %74 : vector<1x8xf32> to vector<1x8x1xf32>
    %76 = vector.broadcast %75 : vector<1x8x1xf32> to vector<1x8x8xf32>
    %77 = arith.subf %73, %76 : vector<1x8x8xf32>
    %78 = math.exp %77 : vector<1x8x8xf32>
    %cst_19 = arith.constant dense<0.000000e+00> : vector<1x8xf32>
    %79 = vector.multi_reduction <add>, %78, %cst_19 [2] : vector<1x8x8xf32> to vector<1x8xf32>
    %80 = vector.shape_cast %79 : vector<1x8xf32> to vector<1x8x1xf32>
    %81 = tpu.reciprocal %80 {approx = true} : vector<1x8x1xf32> -> vector<1x8x1xf32>
    %82 = vector.broadcast %81 : vector<1x8x1xf32> to vector<1x8x8xf32>
    %83 = arith.mulf %78, %82 : vector<1x8x8xf32>
    %84 = arith.truncf %83 : vector<1x8x8xf32> to vector<1x8x8xbf16>
    %85 = vector.extract_strided_slice %22 {offsets = [0, 0, 24], sizes = [1, 8, 8], strides = [1, 1, 1]} : vector<1x8x32xbf16> to vector<1x8x8xbf16>
    "tpu.trace_start"() <{level = 10 : i32, message = "bqk,bkd->bqd"}> : () -> ()
    %cst_20 = arith.constant dense<0.000000e+00> : vector<1x8x8xf32>
    %86 = tpu.matmul %84, %85, %cst_20 {dimension_numbers = #tpu.dot_dimension_numbers<[2], [1], [1], [2], [0, 0, 0, 1, 1, 2], [0], [0]>} : vector<1x8x8xbf16>, vector<1x8x8xbf16>, vector<1x8x8xf32> -> vector<1x8x8xf32>
    "tpu.trace_stop"() : () -> ()
    %87 = tpu.concatenate %38, %54, %70, %86 in 2 : vector<1x8x8xf32>, vector<1x8x8xf32>, vector<1x8x8xf32>, vector<1x8x8xf32> -> vector<1x8x32xf32>
    %88 = vector.shape_cast %87 : vector<1x8x32xf32> to vector<8x32xf32>
    %89 = arith.truncf %88 : vector<8x32xf32> to vector<8x32xbf16>
    %c0_21 = arith.constant 0 : index
    %c0_22 = arith.constant 0 : index
    %90 = vector.load %arg3[%c0_21, %c0_22] : memref<32x32xbf16, #tpu.memory_space<vmem>>, vector<32x32xbf16>
    %cst_23 = arith.constant dense<0.000000e+00> : vector<8x32xf32>
    %91 = tpu.matmul %89, %90, %cst_23 {dimension_numbers = #tpu.dot_dimension_numbers<[1], [0], [0], [1], [0, 0, 1, 1], [], []>} : vector<8x32xbf16>, vector<32x32xbf16>, vector<8x32xf32> -> vector<8x32xf32>
    %92 = vector.broadcast %4 : vector<1x32xf32> to vector<8x32xf32>
    %93 = arith.addf %91, %92 : vector<8x32xf32>
    %94 = arith.addf %1, %93 : vector<8x32xf32>
    %cst_24 = arith.constant dense<0.000000e+00> : vector<8xf32>
    %95 = vector.multi_reduction <add>, %94, %cst_24 [1] : vector<8x32xf32> to vector<8xf32>
    %96 = vector.shape_cast %95 : vector<8xf32> to vector<8x1xf32>
    %cst_25 = arith.constant 3.200000e+01 : f32
    %97 = vector.broadcast %cst_25 : f32 to vector<8x1xf32>
    %98 = arith.divf %96, %97 : vector<8x1xf32>
    %99 = vector.broadcast %98 : vector<8x1xf32> to vector<8x32xf32>
    %100 = arith.subf %94, %99 : vector<8x32xf32>
    %101 = arith.mulf %100, %100 : vector<8x32xf32>
    %cst_26 = arith.constant dense<0.000000e+00> : vector<8xf32>
    %102 = vector.multi_reduction <add>, %101, %cst_26 [1] : vector<8x32xf32> to vector<8xf32>
    %103 = vector.shape_cast %102 : vector<8xf32> to vector<8x1xf32>
    %cst_27 = arith.constant 3.200000e+01 : f32
    %104 = vector.broadcast %cst_27 : f32 to vector<8x1xf32>
    %105 = arith.divf %103, %104 : vector<8x1xf32>
    %106 = vector.broadcast %98 : vector<8x1xf32> to vector<8x32xf32>
    %107 = arith.subf %94, %106 : vector<8x32xf32>
    %cst_28 = arith.constant 9.99999974E-6 : f32
    %108 = vector.broadcast %cst_28 : f32 to vector<8x1xf32>
    %109 = arith.addf %105, %108 : vector<8x1xf32>
    %110 = math.rsqrt %109 : vector<8x1xf32>
    %111 = vector.broadcast %110 : vector<8x1xf32> to vector<8x32xf32>
    %112 = arith.mulf %107, %111 : vector<8x32xf32>
    %113 = vector.broadcast %5 : vector<1x32xf32> to vector<8x32xf32>
    %114 = arith.mulf %112, %113 : vector<8x32xf32>
    %115 = vector.broadcast %6 : vector<1x32xf32> to vector<8x32xf32>
    %116 = arith.addf %114, %115 : vector<8x32xf32>
    %117 = arith.truncf %116 : vector<8x32xf32> to vector<8x32xbf16>
    %c0_29 = arith.constant 0 : index
    %c0_30 = arith.constant 0 : index
    %118 = vector.load %arg4[%c0_29, %c0_30] : memref<32x64xbf16, #tpu.memory_space<vmem>>, vector<32x64xbf16>
    %cst_31 = arith.constant dense<0.000000e+00> : vector<8x64xf32>
    %119 = tpu.matmul %117, %118, %cst_31 {dimension_numbers = #tpu.dot_dimension_numbers<[1], [0], [0], [1], [0, 0, 1, 1], [], []>} : vector<8x32xbf16>, vector<32x64xbf16>, vector<8x64xf32> -> vector<8x64xf32>
    %c0_32 = arith.constant 0 : index
    %c0_33 = arith.constant 0 : index
    %120 = vector.load %arg5[%c0_32, %c0_33] : memref<1x64xf32, #tpu.memory_space<vmem>>, vector<1x64xf32>
    %121 = vector.broadcast %120 : vector<1x64xf32> to vector<8x64xf32>
    %122 = arith.addf %119, %121 : vector<8x64xf32>
    %cst_34 = arith.constant 0.000000e+00 : f32
    %123 = vector.broadcast %cst_34 : f32 to vector<8x64xf32>
    %124 = arith.maximumf %122, %123 : vector<8x64xf32>
    %125 = arith.truncf %124 : vector<8x64xf32> to vector<8x64xbf16>
    %c0_35 = arith.constant 0 : index
    %c0_36 = arith.constant 0 : index
    %126 = vector.load %arg6[%c0_35, %c0_36] : memref<64x32xbf16, #tpu.memory_space<vmem>>, vector<64x32xbf16>
    %cst_37 = arith.constant dense<0.000000e+00> : vector<8x32xf32>
    %127 = tpu.matmul %125, %126, %cst_37 {dimension_numbers = #tpu.dot_dimension_numbers<[1], [0], [0], [1], [0, 0, 1, 1], [], []>} : vector<8x64xbf16>, vector<64x32xbf16>, vector<8x32xf32> -> vector<8x32xf32>
    %128 = vector.broadcast %7 : vector<1x32xf32> to vector<8x32xf32>
    %129 = arith.addf %127, %128 : vector<8x32xf32>
    %130 = arith.addf %116, %129 : vector<8x32xf32>
    %cst_38 = arith.constant dense<0.000000e+00> : vector<8xf32>
    %131 = vector.multi_reduction <add>, %130, %cst_38 [1] : vector<8x32xf32> to vector<8xf32>
    %132 = vector.shape_cast %131 : vector<8xf32> to vector<8x1xf32>
    %cst_39 = arith.constant 3.200000e+01 : f32
    %133 = vector.broadcast %cst_39 : f32 to vector<8x1xf32>
    %134 = arith.divf %132, %133 : vector<8x1xf32>
    %135 = vector.broadcast %134 : vector<8x1xf32> to vector<8x32xf32>
    %136 = arith.subf %130, %135 : vector<8x32xf32>
    %137 = arith.mulf %136, %136 : vector<8x32xf32>
    %cst_40 = arith.constant dense<0.000000e+00> : vector<8xf32>
    %138 = vector.multi_reduction <add>, %137, %cst_40 [1] : vector<8x32xf32> to vector<8xf32>
    %139 = vector.shape_cast %138 : vector<8xf32> to vector<8x1xf32>
    %cst_41 = arith.constant 3.200000e+01 : f32
    %140 = vector.broadcast %cst_41 : f32 to vector<8x1xf32>
    %141 = arith.divf %139, %140 : vector<8x1xf32>
    %142 = vector.broadcast %134 : vector<8x1xf32> to vector<8x32xf32>
    %143 = arith.subf %130, %142 : vector<8x32xf32>
    %cst_42 = arith.constant 9.99999974E-6 : f32
    %144 = vector.broadcast %cst_42 : f32 to vector<8x1xf32>
    %145 = arith.addf %141, %144 : vector<8x1xf32>
    %146 = math.rsqrt %145 : vector<8x1xf32>
    %147 = vector.broadcast %146 : vector<8x1xf32> to vector<8x32xf32>
    %148 = arith.mulf %143, %147 : vector<8x32xf32>
    %149 = vector.broadcast %8 : vector<1x32xf32> to vector<8x32xf32>
    %150 = arith.mulf %148, %149 : vector<8x32xf32>
    %151 = vector.broadcast %9 : vector<1x32xf32> to vector<8x32xf32>
    %152 = arith.addf %150, %151 : vector<8x32xf32>
    %153 = arith.truncf %152 : vector<8x32xf32> to vector<8x32xbf16>
    %c0_43 = arith.constant 0 : index
    %c0_44 = arith.constant 0 : index
    %154 = vector.load %arg8[%c0_43, %c0_44] : memref<8x32xbf16, #tpu.memory_space<vmem>>, vector<8x32xbf16>
    tpu.vector_store %arg8[%c0_43, %c0_44], %153 {strides = array<i32>} : memref<8x32xbf16, #tpu.memory_space<vmem>>, vector<8x32xbf16>,
    return
  }
  func.func @transform_0(%arg0: i32) -> (i32, i32) {
    %c0_i32 = arith.constant 0 : i32
    %c0_i32_0 = arith.constant 0 : i32
    return %arg0, %c0_i32 : i32, i32
  }
  func.func @transform_1(%arg0: i32) -> (i32, i32) {
    %c0_i32 = arith.constant 0 : i32
    %c0_i32_0 = arith.constant 0 : i32
    %c0_i32_1 = arith.constant 0 : i32
    return %c0_i32, %c0_i32_0 : i32, i32
  }
  func.func @transform_2(%arg0: i32) -> (i32, i32) {
    %c0_i32 = arith.constant 0 : i32
    %c0_i32_0 = arith.constant 0 : i32
    %c0_i32_1 = arith.constant 0 : i32
    return %c0_i32, %c0_i32_0 : i32, i32
  }
  func.func @transform_3(%arg0: i32) -> (i32, i32) {
    %c0_i32 = arith.constant 0 : i32
    %c0_i32_0 = arith.constant 0 : i32
    %c0_i32_1 = arith.constant 0 : i32
    return %c0_i32, %c0_i32_0 : i32, i32
  }
  func.func @transform_4(%arg0: i32) -> (i32, i32) {
    %c0_i32 = arith.constant 0 : i32
    %c0_i32_0 = arith.constant 0 : i32
    %c0_i32_1 = arith.constant 0 : i32
    return %c0_i32, %c0_i32_0 : i32, i32
  }
  func.func @transform_5(%arg0: i32) -> (i32, i32) {
    %c0_i32 = arith.constant 0 : i32
    %c0_i32_0 = arith.constant 0 : i32
    %c0_i32_1 = arith.constant 0 : i32
    return %c0_i32, %c0_i32_0 : i32, i32
  }
  func.func @transform_6(%arg0: i32) -> (i32, i32) {
    %c0_i32 = arith.constant 0 : i32
    %c0_i32_0 = arith.constant 0 : i32
    %c0_i32_1 = arith.constant 0 : i32
    return %c0_i32, %c0_i32_0 : i32, i32
  }
  func.func @transform_7(%arg0: i32) -> (i32, i32) {
    %c0_i32 = arith.constant 0 : i32
    %c0_i32_0 = arith.constant 0 : i32
    return %arg0, %c0_i32 : i32, i32
  }
}

module attributes {stable_mosaic.version = 11 : i64} {
  func.func @_cross_fusion_kernel(%arg0: i32, %arg1: memref<8x32xbf16, #tpu.memory_space<vmem>>, %arg2: memref<8x32xbf16, #tpu.memory_space<vmem>>, %arg3: memref<32x32xbf16, #tpu.memory_space<vmem>>, %arg4: memref<1x32xf32, #tpu.memory_space<vmem>>, %arg5: memref<32x64xbf16, #tpu.memory_space<vmem>>, %arg6: memref<32x32xbf16, #tpu.memory_space<vmem>>, %arg7: memref<32x32xbf16, #tpu.memory_space<vmem>>, %arg8: memref<1x32xf32, #tpu.memory_space<vmem>>, %arg9: memref<32x64xbf16, #tpu.memory_space<vmem>>, %arg10: memref<32x32xbf16, #tpu.memory_space<vmem>>, %arg11: memref<1x32xf32, #tpu.memory_space<vmem>>, %arg12: memref<8x32xf32, #tpu.memory_space<vmem>>) attributes {dimension_semantics = [#tpu.dimension_semantics<parallel>], iteration_bounds = array<i64: 2>, scalar_prefetch = 0 : i64, scratch_operands = 0 : i64, tpu.core_type = #tpu.core_type<tc>, window_params = [{transform_indices = @transform_0, window_bounds = array<i64: 8, 32>}, {transform_indices = @transform_1, window_bounds = array<i64: 8, 32>}, {pipeline_mode = #tpu.pipeline_mode<synchronous>, transform_indices = @transform_2, window_bounds = array<i64: 32, 32>}, {pipeline_mode = #tpu.pipeline_mode<synchronous>, transform_indices = @transform_3, window_bounds = array<i64: 1, 32>}, {pipeline_mode = #tpu.pipeline_mode<synchronous>, transform_indices = @transform_4, window_bounds = array<i64: 32, 64>}, {pipeline_mode = #tpu.pipeline_mode<synchronous>, transform_indices = @transform_5, window_bounds = array<i64: 32, 32>}, {pipeline_mode = #tpu.pipeline_mode<synchronous>, transform_indices = @transform_6, window_bounds = array<i64: 32, 32>}, {pipeline_mode = #tpu.pipeline_mode<synchronous>, transform_indices = @transform_7, window_bounds = array<i64: 1, 32>}, {pipeline_mode = #tpu.pipeline_mode<synchronous>, transform_indices = @transform_8, window_bounds = array<i64: 32, 64>}, {pipeline_mode = #tpu.pipeline_mode<synchronous>, transform_indices = @transform_9, window_bounds = array<i64: 32, 32>}, {pipeline_mode = #tpu.pipeline_mode<synchronous>, transform_indices = @transform_10, window_bounds = array<i64: 1, 32>}, {transform_indices = @transform_11, window_bounds = array<i64: 8, 32>}]} {
    %c0 = arith.constant 0 : index
    %c0_0 = arith.constant 0 : index
    %0 = vector.load %arg1[%c0, %c0_0] : memref<8x32xbf16, #tpu.memory_space<vmem>>, vector<8x32xbf16>
    %c0_1 = arith.constant 0 : index
    %c0_2 = arith.constant 0 : index
    %1 = vector.load %arg2[%c0_1, %c0_2] : memref<8x32xbf16, #tpu.memory_space<vmem>>, vector<8x32xbf16>
    %c0_3 = arith.constant 0 : index
    %c0_4 = arith.constant 0 : index
    %2 = vector.load %arg3[%c0_3, %c0_4] : memref<32x32xbf16, #tpu.memory_space<vmem>>, vector<32x32xbf16>
    %cst = arith.constant dense<0.000000e+00> : vector<8x32xf32>
    %3 = tpu.matmul %0, %2, %cst {dimension_numbers = #tpu.dot_dimension_numbers<[1], [0], [0], [1], [0, 0, 1, 1], [], []>} : vector<8x32xbf16>, vector<32x32xbf16>, vector<8x32xf32> -> vector<8x32xf32>
    %c0_5 = arith.constant 0 : index
    %c0_6 = arith.constant 0 : index
    %4 = vector.load %arg4[%c0_5, %c0_6] : memref<1x32xf32, #tpu.memory_space<vmem>>, vector<1x32xf32>
    %5 = vector.broadcast %4 : vector<1x32xf32> to vector<8x32xf32>
    %6 = arith.addf %3, %5 : vector<8x32xf32>
    %c0_7 = arith.constant 0 : index
    %c0_8 = arith.constant 0 : index
    %7 = vector.load %arg5[%c0_7, %c0_8] : memref<32x64xbf16, #tpu.memory_space<vmem>>, vector<32x64xbf16>
    %cst_9 = arith.constant dense<0.000000e+00> : vector<8x64xf32>
    %8 = tpu.matmul %1, %7, %cst_9 {dimension_numbers = #tpu.dot_dimension_numbers<[1], [0], [0], [1], [0, 0, 1, 1], [], []>} : vector<8x32xbf16>, vector<32x64xbf16>, vector<8x64xf32> -> vector<8x64xf32>
    %9 = vector.extract_strided_slice %8 {offsets = [0, 0], sizes = [8, 32], strides = [1, 1]} : vector<8x64xf32> to vector<8x32xf32>
    %10 = vector.extract_strided_slice %8 {offsets = [0, 32], sizes = [8, 32], strides = [1, 1]} : vector<8x64xf32> to vector<8x32xf32>
    %11 = arith.truncf %6 : vector<8x32xf32> to vector<8x32xbf16>
    %12 = vector.shape_cast %11 : vector<8x32xbf16> to vector<4x2x32xbf16>
    %13 = arith.truncf %9 : vector<8x32xf32> to vector<8x32xbf16>
    %14 = vector.shape_cast %13 : vector<8x32xbf16> to vector<4x2x32xbf16>
    %15 = arith.truncf %10 : vector<8x32xf32> to vector<8x32xbf16>
    %16 = vector.shape_cast %15 : vector<8x32xbf16> to vector<4x2x32xbf16>
    %17 = vector.extract_strided_slice %12 {offsets = [0, 0, 0], sizes = [4, 2, 8], strides = [1, 1, 1]} : vector<4x2x32xbf16> to vector<4x2x8xbf16>
    %18 = vector.extract_strided_slice %14 {offsets = [0, 0, 0], sizes = [4, 2, 8], strides = [1, 1, 1]} : vector<4x2x32xbf16> to vector<4x2x8xbf16>
    "tpu.trace_start"() <{level = 10 : i32, message = "bqd,bkd->bqk"}> : () -> ()
    %cst_10 = arith.constant dense<0.000000e+00> : vector<4x2x2xf32>
    %19 = tpu.matmul %17, %18, %cst_10 {dimension_numbers = #tpu.dot_dimension_numbers<[2], [2], [1], [1], [0, 0, 0, 1, 1, 1], [0], [0]>} : vector<4x2x8xbf16>, vector<4x2x8xbf16>, vector<4x2x2xf32> -> vector<4x2x2xf32>
    "tpu.trace_stop"() : () -> ()
    %cst_11 = arith.constant dense<0xFF800000> : vector<4x2xf32>
    %20 = vector.multi_reduction <maximumf>, %19, %cst_11 [2] : vector<4x2x2xf32> to vector<4x2xf32>
    %21 = vector.shape_cast %20 : vector<4x2xf32> to vector<4x2x1xf32>
    %22 = vector.broadcast %21 : vector<4x2x1xf32> to vector<4x2x2xf32>
    %23 = arith.subf %19, %22 : vector<4x2x2xf32>
    %24 = math.exp %23 : vector<4x2x2xf32>
    %cst_12 = arith.constant dense<0.000000e+00> : vector<4x2xf32>
    %25 = vector.multi_reduction <add>, %24, %cst_12 [2] : vector<4x2x2xf32> to vector<4x2xf32>
    %26 = vector.shape_cast %25 : vector<4x2xf32> to vector<4x2x1xf32>
    %27 = tpu.reciprocal %26 {approx = true} : vector<4x2x1xf32> -> vector<4x2x1xf32>
    %28 = vector.broadcast %27 : vector<4x2x1xf32> to vector<4x2x2xf32>
    %29 = arith.mulf %24, %28 : vector<4x2x2xf32>
    %30 = arith.truncf %29 : vector<4x2x2xf32> to vector<4x2x2xbf16>
    %31 = vector.extract_strided_slice %16 {offsets = [0, 0, 0], sizes = [4, 2, 8], strides = [1, 1, 1]} : vector<4x2x32xbf16> to vector<4x2x8xbf16>
    "tpu.trace_start"() <{level = 10 : i32, message = "bqk,bkd->bqd"}> : () -> ()
    %cst_13 = arith.constant dense<0.000000e+00> : vector<4x2x8xf32>
    %32 = tpu.matmul %30, %31, %cst_13 {dimension_numbers = #tpu.dot_dimension_numbers<[2], [1], [1], [2], [0, 0, 0, 1, 1, 2], [0], [0]>} : vector<4x2x2xbf16>, vector<4x2x8xbf16>, vector<4x2x8xf32> -> vector<4x2x8xf32>
    "tpu.trace_stop"() : () -> ()
    %33 = vector.extract_strided_slice %12 {offsets = [0, 0, 8], sizes = [4, 2, 8], strides = [1, 1, 1]} : vector<4x2x32xbf16> to vector<4x2x8xbf16>
    %34 = vector.extract_strided_slice %14 {offsets = [0, 0, 8], sizes = [4, 2, 8], strides = [1, 1, 1]} : vector<4x2x32xbf16> to vector<4x2x8xbf16>
    "tpu.trace_start"() <{level = 10 : i32, message = "bqd,bkd->bqk"}> : () -> ()
    %cst_14 = arith.constant dense<0.000000e+00> : vector<4x2x2xf32>
    %35 = tpu.matmul %33, %34, %cst_14 {dimension_numbers = #tpu.dot_dimension_numbers<[2], [2], [1], [1], [0, 0, 0, 1, 1, 1], [0], [0]>} : vector<4x2x8xbf16>, vector<4x2x8xbf16>, vector<4x2x2xf32> -> vector<4x2x2xf32>
    "tpu.trace_stop"() : () -> ()
    %cst_15 = arith.constant dense<0xFF800000> : vector<4x2xf32>
    %36 = vector.multi_reduction <maximumf>, %35, %cst_15 [2] : vector<4x2x2xf32> to vector<4x2xf32>
    %37 = vector.shape_cast %36 : vector<4x2xf32> to vector<4x2x1xf32>
    %38 = vector.broadcast %37 : vector<4x2x1xf32> to vector<4x2x2xf32>
    %39 = arith.subf %35, %38 : vector<4x2x2xf32>
    %40 = math.exp %39 : vector<4x2x2xf32>
    %cst_16 = arith.constant dense<0.000000e+00> : vector<4x2xf32>
    %41 = vector.multi_reduction <add>, %40, %cst_16 [2] : vector<4x2x2xf32> to vector<4x2xf32>
    %42 = vector.shape_cast %41 : vector<4x2xf32> to vector<4x2x1xf32>
    %43 = tpu.reciprocal %42 {approx = true} : vector<4x2x1xf32> -> vector<4x2x1xf32>
    %44 = vector.broadcast %43 : vector<4x2x1xf32> to vector<4x2x2xf32>
    %45 = arith.mulf %40, %44 : vector<4x2x2xf32>
    %46 = arith.truncf %45 : vector<4x2x2xf32> to vector<4x2x2xbf16>
    %47 = vector.extract_strided_slice %16 {offsets = [0, 0, 8], sizes = [4, 2, 8], strides = [1, 1, 1]} : vector<4x2x32xbf16> to vector<4x2x8xbf16>
    "tpu.trace_start"() <{level = 10 : i32, message = "bqk,bkd->bqd"}> : () -> ()
    %cst_17 = arith.constant dense<0.000000e+00> : vector<4x2x8xf32>
    %48 = tpu.matmul %46, %47, %cst_17 {dimension_numbers = #tpu.dot_dimension_numbers<[2], [1], [1], [2], [0, 0, 0, 1, 1, 2], [0], [0]>} : vector<4x2x2xbf16>, vector<4x2x8xbf16>, vector<4x2x8xf32> -> vector<4x2x8xf32>
    "tpu.trace_stop"() : () -> ()
    %49 = vector.extract_strided_slice %12 {offsets = [0, 0, 16], sizes = [4, 2, 8], strides = [1, 1, 1]} : vector<4x2x32xbf16> to vector<4x2x8xbf16>
    %50 = vector.extract_strided_slice %14 {offsets = [0, 0, 16], sizes = [4, 2, 8], strides = [1, 1, 1]} : vector<4x2x32xbf16> to vector<4x2x8xbf16>
    "tpu.trace_start"() <{level = 10 : i32, message = "bqd,bkd->bqk"}> : () -> ()
    %cst_18 = arith.constant dense<0.000000e+00> : vector<4x2x2xf32>
    %51 = tpu.matmul %49, %50, %cst_18 {dimension_numbers = #tpu.dot_dimension_numbers<[2], [2], [1], [1], [0, 0, 0, 1, 1, 1], [0], [0]>} : vector<4x2x8xbf16>, vector<4x2x8xbf16>, vector<4x2x2xf32> -> vector<4x2x2xf32>
    "tpu.trace_stop"() : () -> ()
    %cst_19 = arith.constant dense<0xFF800000> : vector<4x2xf32>
    %52 = vector.multi_reduction <maximumf>, %51, %cst_19 [2] : vector<4x2x2xf32> to vector<4x2xf32>
    %53 = vector.shape_cast %52 : vector<4x2xf32> to vector<4x2x1xf32>
    %54 = vector.broadcast %53 : vector<4x2x1xf32> to vector<4x2x2xf32>
    %55 = arith.subf %51, %54 : vector<4x2x2xf32>
    %56 = math.exp %55 : vector<4x2x2xf32>
    %cst_20 = arith.constant dense<0.000000e+00> : vector<4x2xf32>
    %57 = vector.multi_reduction <add>, %56, %cst_20 [2] : vector<4x2x2xf32> to vector<4x2xf32>
    %58 = vector.shape_cast %57 : vector<4x2xf32> to vector<4x2x1xf32>
    %59 = tpu.reciprocal %58 {approx = true} : vector<4x2x1xf32> -> vector<4x2x1xf32>
    %60 = vector.broadcast %59 : vector<4x2x1xf32> to vector<4x2x2xf32>
    %61 = arith.mulf %56, %60 : vector<4x2x2xf32>
    %62 = arith.truncf %61 : vector<4x2x2xf32> to vector<4x2x2xbf16>
    %63 = vector.extract_strided_slice %16 {offsets = [0, 0, 16], sizes = [4, 2, 8], strides = [1, 1, 1]} : vector<4x2x32xbf16> to vector<4x2x8xbf16>
    "tpu.trace_start"() <{level = 10 : i32, message = "bqk,bkd->bqd"}> : () -> ()
    %cst_21 = arith.constant dense<0.000000e+00> : vector<4x2x8xf32>
    %64 = tpu.matmul %62, %63, %cst_21 {dimension_numbers = #tpu.dot_dimension_numbers<[2], [1], [1], [2], [0, 0, 0, 1, 1, 2], [0], [0]>} : vector<4x2x2xbf16>, vector<4x2x8xbf16>, vector<4x2x8xf32> -> vector<4x2x8xf32>
    "tpu.trace_stop"() : () -> ()
    %65 = vector.extract_strided_slice %12 {offsets = [0, 0, 24], sizes = [4, 2, 8], strides = [1, 1, 1]} : vector<4x2x32xbf16> to vector<4x2x8xbf16>
    %66 = vector.extract_strided_slice %14 {offsets = [0, 0, 24], sizes = [4, 2, 8], strides = [1, 1, 1]} : vector<4x2x32xbf16> to vector<4x2x8xbf16>
    "tpu.trace_start"() <{level = 10 : i32, message = "bqd,bkd->bqk"}> : () -> ()
    %cst_22 = arith.constant dense<0.000000e+00> : vector<4x2x2xf32>
    %67 = tpu.matmul %65, %66, %cst_22 {dimension_numbers = #tpu.dot_dimension_numbers<[2], [2], [1], [1], [0, 0, 0, 1, 1, 1], [0], [0]>} : vector<4x2x8xbf16>, vector<4x2x8xbf16>, vector<4x2x2xf32> -> vector<4x2x2xf32>
    "tpu.trace_stop"() : () -> ()
    %cst_23 = arith.constant dense<0xFF800000> : vector<4x2xf32>
    %68 = vector.multi_reduction <maximumf>, %67, %cst_23 [2] : vector<4x2x2xf32> to vector<4x2xf32>
    %69 = vector.shape_cast %68 : vector<4x2xf32> to vector<4x2x1xf32>
    %70 = vector.broadcast %69 : vector<4x2x1xf32> to vector<4x2x2xf32>
    %71 = arith.subf %67, %70 : vector<4x2x2xf32>
    %72 = math.exp %71 : vector<4x2x2xf32>
    %cst_24 = arith.constant dense<0.000000e+00> : vector<4x2xf32>
    %73 = vector.multi_reduction <add>, %72, %cst_24 [2] : vector<4x2x2xf32> to vector<4x2xf32>
    %74 = vector.shape_cast %73 : vector<4x2xf32> to vector<4x2x1xf32>
    %75 = tpu.reciprocal %74 {approx = true} : vector<4x2x1xf32> -> vector<4x2x1xf32>
    %76 = vector.broadcast %75 : vector<4x2x1xf32> to vector<4x2x2xf32>
    %77 = arith.mulf %72, %76 : vector<4x2x2xf32>
    %78 = arith.truncf %77 : vector<4x2x2xf32> to vector<4x2x2xbf16>
    %79 = vector.extract_strided_slice %16 {offsets = [0, 0, 24], sizes = [4, 2, 8], strides = [1, 1, 1]} : vector<4x2x32xbf16> to vector<4x2x8xbf16>
    "tpu.trace_start"() <{level = 10 : i32, message = "bqk,bkd->bqd"}> : () -> ()
    %cst_25 = arith.constant dense<0.000000e+00> : vector<4x2x8xf32>
    %80 = tpu.matmul %78, %79, %cst_25 {dimension_numbers = #tpu.dot_dimension_numbers<[2], [1], [1], [2], [0, 0, 0, 1, 1, 2], [0], [0]>} : vector<4x2x2xbf16>, vector<4x2x8xbf16>, vector<4x2x8xf32> -> vector<4x2x8xf32>
    "tpu.trace_stop"() : () -> ()
    %81 = tpu.concatenate %32, %48, %64, %80 in 2 : vector<4x2x8xf32>, vector<4x2x8xf32>, vector<4x2x8xf32>, vector<4x2x8xf32> -> vector<4x2x32xf32>
    %82 = vector.shape_cast %81 : vector<4x2x32xf32> to vector<8x32xf32>
    %83 = arith.truncf %82 : vector<8x32xf32> to vector<8x32xbf16>
    %c0_26 = arith.constant 0 : index
    %c0_27 = arith.constant 0 : index
    %84 = vector.load %arg6[%c0_26, %c0_27] : memref<32x32xbf16, #tpu.memory_space<vmem>>, vector<32x32xbf16>
    %cst_28 = arith.constant dense<0.000000e+00> : vector<8x32xf32>
    %85 = tpu.matmul %83, %84, %cst_28 {dimension_numbers = #tpu.dot_dimension_numbers<[1], [0], [0], [1], [0, 0, 1, 1], [], []>} : vector<8x32xbf16>, vector<32x32xbf16>, vector<8x32xf32> -> vector<8x32xf32>
    %c0_29 = arith.constant 0 : index
    %c0_30 = arith.constant 0 : index
    %86 = vector.load %arg7[%c0_29, %c0_30] : memref<32x32xbf16, #tpu.memory_space<vmem>>, vector<32x32xbf16>
    %cst_31 = arith.constant dense<0.000000e+00> : vector<8x32xf32>
    %87 = tpu.matmul %1, %86, %cst_31 {dimension_numbers = #tpu.dot_dimension_numbers<[1], [0], [0], [1], [0, 0, 1, 1], [], []>} : vector<8x32xbf16>, vector<32x32xbf16>, vector<8x32xf32> -> vector<8x32xf32>
    %c0_32 = arith.constant 0 : index
    %c0_33 = arith.constant 0 : index
    %88 = vector.load %arg8[%c0_32, %c0_33] : memref<1x32xf32, #tpu.memory_space<vmem>>, vector<1x32xf32>
    %89 = vector.broadcast %88 : vector<1x32xf32> to vector<8x32xf32>
    %90 = arith.addf %87, %89 : vector<8x32xf32>
    %c0_34 = arith.constant 0 : index
    %c0_35 = arith.constant 0 : index
    %91 = vector.load %arg9[%c0_34, %c0_35] : memref<32x64xbf16, #tpu.memory_space<vmem>>, vector<32x64xbf16>
    %cst_36 = arith.constant dense<0.000000e+00> : vector<8x64xf32>
    %92 = tpu.matmul %0, %91, %cst_36 {dimension_numbers = #tpu.dot_dimension_numbers<[1], [0], [0], [1], [0, 0, 1, 1], [], []>} : vector<8x32xbf16>, vector<32x64xbf16>, vector<8x64xf32> -> vector<8x64xf32>
    %93 = vector.extract_strided_slice %92 {offsets = [0, 0], sizes = [8, 32], strides = [1, 1]} : vector<8x64xf32> to vector<8x32xf32>
    %94 = vector.extract_strided_slice %92 {offsets = [0, 32], sizes = [8, 32], strides = [1, 1]} : vector<8x64xf32> to vector<8x32xf32>
    %95 = arith.truncf %90 : vector<8x32xf32> to vector<8x32xbf16>
    %96 = vector.shape_cast %95 : vector<8x32xbf16> to vector<4x2x32xbf16>
    %97 = arith.truncf %93 : vector<8x32xf32> to vector<8x32xbf16>
    %98 = vector.shape_cast %97 : vector<8x32xbf16> to vector<4x2x32xbf16>
    %99 = arith.truncf %94 : vector<8x32xf32> to vector<8x32xbf16>
    %100 = vector.shape_cast %99 : vector<8x32xbf16> to vector<4x2x32xbf16>
    %101 = vector.extract_strided_slice %96 {offsets = [0, 0, 0], sizes = [4, 2, 8], strides = [1, 1, 1]} : vector<4x2x32xbf16> to vector<4x2x8xbf16>
    %102 = vector.extract_strided_slice %98 {offsets = [0, 0, 0], sizes = [4, 2, 8], strides = [1, 1, 1]} : vector<4x2x32xbf16> to vector<4x2x8xbf16>
    "tpu.trace_start"() <{level = 10 : i32, message = "bqd,bkd->bqk"}> : () -> ()
    %cst_37 = arith.constant dense<0.000000e+00> : vector<4x2x2xf32>
    %103 = tpu.matmul %101, %102, %cst_37 {dimension_numbers = #tpu.dot_dimension_numbers<[2], [2], [1], [1], [0, 0, 0, 1, 1, 1], [0], [0]>} : vector<4x2x8xbf16>, vector<4x2x8xbf16>, vector<4x2x2xf32> -> vector<4x2x2xf32>
    "tpu.trace_stop"() : () -> ()
    %cst_38 = arith.constant dense<0xFF800000> : vector<4x2xf32>
    %104 = vector.multi_reduction <maximumf>, %103, %cst_38 [2] : vector<4x2x2xf32> to vector<4x2xf32>
    %105 = vector.shape_cast %104 : vector<4x2xf32> to vector<4x2x1xf32>
    %106 = vector.broadcast %105 : vector<4x2x1xf32> to vector<4x2x2xf32>
    %107 = arith.subf %103, %106 : vector<4x2x2xf32>
    %108 = math.exp %107 : vector<4x2x2xf32>
    %cst_39 = arith.constant dense<0.000000e+00> : vector<4x2xf32>
    %109 = vector.multi_reduction <add>, %108, %cst_39 [2] : vector<4x2x2xf32> to vector<4x2xf32>
    %110 = vector.shape_cast %109 : vector<4x2xf32> to vector<4x2x1xf32>
    %111 = tpu.reciprocal %110 {approx = true} : vector<4x2x1xf32> -> vector<4x2x1xf32>
    %112 = vector.broadcast %111 : vector<4x2x1xf32> to vector<4x2x2xf32>
    %113 = arith.mulf %108, %112 : vector<4x2x2xf32>
    %114 = arith.truncf %113 : vector<4x2x2xf32> to vector<4x2x2xbf16>
    %115 = vector.extract_strided_slice %100 {offsets = [0, 0, 0], sizes = [4, 2, 8], strides = [1, 1, 1]} : vector<4x2x32xbf16> to vector<4x2x8xbf16>
    "tpu.trace_start"() <{level = 10 : i32, message = "bqk,bkd->bqd"}> : () -> ()
    %cst_40 = arith.constant dense<0.000000e+00> : vector<4x2x8xf32>
    %116 = tpu.matmul %114, %115, %cst_40 {dimension_numbers = #tpu.dot_dimension_numbers<[2], [1], [1], [2], [0, 0, 0, 1, 1, 2], [0], [0]>} : vector<4x2x2xbf16>, vector<4x2x8xbf16>, vector<4x2x8xf32> -> vector<4x2x8xf32>
    "tpu.trace_stop"() : () -> ()
    %117 = vector.extract_strided_slice %96 {offsets = [0, 0, 8], sizes = [4, 2, 8], strides = [1, 1, 1]} : vector<4x2x32xbf16> to vector<4x2x8xbf16>
    %118 = vector.extract_strided_slice %98 {offsets = [0, 0, 8], sizes = [4, 2, 8], strides = [1, 1, 1]} : vector<4x2x32xbf16> to vector<4x2x8xbf16>
    "tpu.trace_start"() <{level = 10 : i32, message = "bqd,bkd->bqk"}> : () -> ()
    %cst_41 = arith.constant dense<0.000000e+00> : vector<4x2x2xf32>
    %119 = tpu.matmul %117, %118, %cst_41 {dimension_numbers = #tpu.dot_dimension_numbers<[2], [2], [1], [1], [0, 0, 0, 1, 1, 1], [0], [0]>} : vector<4x2x8xbf16>, vector<4x2x8xbf16>, vector<4x2x2xf32> -> vector<4x2x2xf32>
    "tpu.trace_stop"() : () -> ()
    %cst_42 = arith.constant dense<0xFF800000> : vector<4x2xf32>
    %120 = vector.multi_reduction <maximumf>, %119, %cst_42 [2] : vector<4x2x2xf32> to vector<4x2xf32>
    %121 = vector.shape_cast %120 : vector<4x2xf32> to vector<4x2x1xf32>
    %122 = vector.broadcast %121 : vector<4x2x1xf32> to vector<4x2x2xf32>
    %123 = arith.subf %119, %122 : vector<4x2x2xf32>
    %124 = math.exp %123 : vector<4x2x2xf32>
    %cst_43 = arith.constant dense<0.000000e+00> : vector<4x2xf32>
    %125 = vector.multi_reduction <add>, %124, %cst_43 [2] : vector<4x2x2xf32> to vector<4x2xf32>
    %126 = vector.shape_cast %125 : vector<4x2xf32> to vector<4x2x1xf32>
    %127 = tpu.reciprocal %126 {approx = true} : vector<4x2x1xf32> -> vector<4x2x1xf32>
    %128 = vector.broadcast %127 : vector<4x2x1xf32> to vector<4x2x2xf32>
    %129 = arith.mulf %124, %128 : vector<4x2x2xf32>
    %130 = arith.truncf %129 : vector<4x2x2xf32> to vector<4x2x2xbf16>
    %131 = vector.extract_strided_slice %100 {offsets = [0, 0, 8], sizes = [4, 2, 8], strides = [1, 1, 1]} : vector<4x2x32xbf16> to vector<4x2x8xbf16>
    "tpu.trace_start"() <{level = 10 : i32, message = "bqk,bkd->bqd"}> : () -> ()
    %cst_44 = arith.constant dense<0.000000e+00> : vector<4x2x8xf32>
    %132 = tpu.matmul %130, %131, %cst_44 {dimension_numbers = #tpu.dot_dimension_numbers<[2], [1], [1], [2], [0, 0, 0, 1, 1, 2], [0], [0]>} : vector<4x2x2xbf16>, vector<4x2x8xbf16>, vector<4x2x8xf32> -> vector<4x2x8xf32>
    "tpu.trace_stop"() : () -> ()
    %133 = vector.extract_strided_slice %96 {offsets = [0, 0, 16], sizes = [4, 2, 8], strides = [1, 1, 1]} : vector<4x2x32xbf16> to vector<4x2x8xbf16>
    %134 = vector.extract_strided_slice %98 {offsets = [0, 0, 16], sizes = [4, 2, 8], strides = [1, 1, 1]} : vector<4x2x32xbf16> to vector<4x2x8xbf16>
    "tpu.trace_start"() <{level = 10 : i32, message = "bqd,bkd->bqk"}> : () -> ()
    %cst_45 = arith.constant dense<0.000000e+00> : vector<4x2x2xf32>
    %135 = tpu.matmul %133, %134, %cst_45 {dimension_numbers = #tpu.dot_dimension_numbers<[2], [2], [1], [1], [0, 0, 0, 1, 1, 1], [0], [0]>} : vector<4x2x8xbf16>, vector<4x2x8xbf16>, vector<4x2x2xf32> -> vector<4x2x2xf32>
    "tpu.trace_stop"() : () -> ()
    %cst_46 = arith.constant dense<0xFF800000> : vector<4x2xf32>
    %136 = vector.multi_reduction <maximumf>, %135, %cst_46 [2] : vector<4x2x2xf32> to vector<4x2xf32>
    %137 = vector.shape_cast %136 : vector<4x2xf32> to vector<4x2x1xf32>
    %138 = vector.broadcast %137 : vector<4x2x1xf32> to vector<4x2x2xf32>
    %139 = arith.subf %135, %138 : vector<4x2x2xf32>
    %140 = math.exp %139 : vector<4x2x2xf32>
    %cst_47 = arith.constant dense<0.000000e+00> : vector<4x2xf32>
    %141 = vector.multi_reduction <add>, %140, %cst_47 [2] : vector<4x2x2xf32> to vector<4x2xf32>
    %142 = vector.shape_cast %141 : vector<4x2xf32> to vector<4x2x1xf32>
    %143 = tpu.reciprocal %142 {approx = true} : vector<4x2x1xf32> -> vector<4x2x1xf32>
    %144 = vector.broadcast %143 : vector<4x2x1xf32> to vector<4x2x2xf32>
    %145 = arith.mulf %140, %144 : vector<4x2x2xf32>
    %146 = arith.truncf %145 : vector<4x2x2xf32> to vector<4x2x2xbf16>
    %147 = vector.extract_strided_slice %100 {offsets = [0, 0, 16], sizes = [4, 2, 8], strides = [1, 1, 1]} : vector<4x2x32xbf16> to vector<4x2x8xbf16>
    "tpu.trace_start"() <{level = 10 : i32, message = "bqk,bkd->bqd"}> : () -> ()
    %cst_48 = arith.constant dense<0.000000e+00> : vector<4x2x8xf32>
    %148 = tpu.matmul %146, %147, %cst_48 {dimension_numbers = #tpu.dot_dimension_numbers<[2], [1], [1], [2], [0, 0, 0, 1, 1, 2], [0], [0]>} : vector<4x2x2xbf16>, vector<4x2x8xbf16>, vector<4x2x8xf32> -> vector<4x2x8xf32>
    "tpu.trace_stop"() : () -> ()
    %149 = vector.extract_strided_slice %96 {offsets = [0, 0, 24], sizes = [4, 2, 8], strides = [1, 1, 1]} : vector<4x2x32xbf16> to vector<4x2x8xbf16>
    %150 = vector.extract_strided_slice %98 {offsets = [0, 0, 24], sizes = [4, 2, 8], strides = [1, 1, 1]} : vector<4x2x32xbf16> to vector<4x2x8xbf16>
    "tpu.trace_start"() <{level = 10 : i32, message = "bqd,bkd->bqk"}> : () -> ()
    %cst_49 = arith.constant dense<0.000000e+00> : vector<4x2x2xf32>
    %151 = tpu.matmul %149, %150, %cst_49 {dimension_numbers = #tpu.dot_dimension_numbers<[2], [2], [1], [1], [0, 0, 0, 1, 1, 1], [0], [0]>} : vector<4x2x8xbf16>, vector<4x2x8xbf16>, vector<4x2x2xf32> -> vector<4x2x2xf32>
    "tpu.trace_stop"() : () -> ()
    %cst_50 = arith.constant dense<0xFF800000> : vector<4x2xf32>
    %152 = vector.multi_reduction <maximumf>, %151, %cst_50 [2] : vector<4x2x2xf32> to vector<4x2xf32>
    %153 = vector.shape_cast %152 : vector<4x2xf32> to vector<4x2x1xf32>
    %154 = vector.broadcast %153 : vector<4x2x1xf32> to vector<4x2x2xf32>
    %155 = arith.subf %151, %154 : vector<4x2x2xf32>
    %156 = math.exp %155 : vector<4x2x2xf32>
    %cst_51 = arith.constant dense<0.000000e+00> : vector<4x2xf32>
    %157 = vector.multi_reduction <add>, %156, %cst_51 [2] : vector<4x2x2xf32> to vector<4x2xf32>
    %158 = vector.shape_cast %157 : vector<4x2xf32> to vector<4x2x1xf32>
    %159 = tpu.reciprocal %158 {approx = true} : vector<4x2x1xf32> -> vector<4x2x1xf32>
    %160 = vector.broadcast %159 : vector<4x2x1xf32> to vector<4x2x2xf32>
    %161 = arith.mulf %156, %160 : vector<4x2x2xf32>
    %162 = arith.truncf %161 : vector<4x2x2xf32> to vector<4x2x2xbf16>
    %163 = vector.extract_strided_slice %100 {offsets = [0, 0, 24], sizes = [4, 2, 8], strides = [1, 1, 1]} : vector<4x2x32xbf16> to vector<4x2x8xbf16>
    "tpu.trace_start"() <{level = 10 : i32, message = "bqk,bkd->bqd"}> : () -> ()
    %cst_52 = arith.constant dense<0.000000e+00> : vector<4x2x8xf32>
    %164 = tpu.matmul %162, %163, %cst_52 {dimension_numbers = #tpu.dot_dimension_numbers<[2], [1], [1], [2], [0, 0, 0, 1, 1, 2], [0], [0]>} : vector<4x2x2xbf16>, vector<4x2x8xbf16>, vector<4x2x8xf32> -> vector<4x2x8xf32>
    "tpu.trace_stop"() : () -> ()
    %165 = tpu.concatenate %116, %132, %148, %164 in 2 : vector<4x2x8xf32>, vector<4x2x8xf32>, vector<4x2x8xf32>, vector<4x2x8xf32> -> vector<4x2x32xf32>
    %166 = vector.shape_cast %165 : vector<4x2x32xf32> to vector<8x32xf32>
    %167 = arith.truncf %166 : vector<8x32xf32> to vector<8x32xbf16>
    %c0_53 = arith.constant 0 : index
    %c0_54 = arith.constant 0 : index
    %168 = vector.load %arg10[%c0_53, %c0_54] : memref<32x32xbf16, #tpu.memory_space<vmem>>, vector<32x32xbf16>
    %cst_55 = arith.constant dense<0.000000e+00> : vector<8x32xf32>
    %169 = tpu.matmul %167, %168, %cst_55 {dimension_numbers = #tpu.dot_dimension_numbers<[1], [0], [0], [1], [0, 0, 1, 1], [], []>} : vector<8x32xbf16>, vector<32x32xbf16>, vector<8x32xf32> -> vector<8x32xf32>
    %170 = arith.addf %85, %169 : vector<8x32xf32>
    %c0_56 = arith.constant 0 : index
    %c0_57 = arith.constant 0 : index
    %171 = vector.load %arg11[%c0_56, %c0_57] : memref<1x32xf32, #tpu.memory_space<vmem>>, vector<1x32xf32>
    %172 = vector.broadcast %171 : vector<1x32xf32> to vector<8x32xf32>
    %173 = arith.addf %170, %172 : vector<8x32xf32>
    %c0_58 = arith.constant 0 : index
    %c0_59 = arith.constant 0 : index
    %174 = vector.load %arg12[%c0_58, %c0_59] : memref<8x32xf32, #tpu.memory_space<vmem>>, vector<8x32xf32>
    tpu.vector_store %arg12[%c0_58, %c0_59], %173 {strides = array<i32>} : memref<8x32xf32, #tpu.memory_space<vmem>>, vector<8x32xf32>,
    return
  }
  func.func @transform_0(%arg0: i32) -> (i32, i32) {
    %c0_i32 = arith.constant 0 : i32
    %c0_i32_0 = arith.constant 0 : i32
    return %arg0, %c0_i32 : i32, i32
  }
  func.func @transform_1(%arg0: i32) -> (i32, i32) {
    %c0_i32 = arith.constant 0 : i32
    %c0_i32_0 = arith.constant 0 : i32
    return %arg0, %c0_i32 : i32, i32
  }
  func.func @transform_2(%arg0: i32) -> (i32, i32) {
    %c0_i32 = arith.constant 0 : i32
    %c0_i32_0 = arith.constant 0 : i32
    %c0_i32_1 = arith.constant 0 : i32
    return %c0_i32, %c0_i32_0 : i32, i32
  }
  func.func @transform_3(%arg0: i32) -> (i32, i32) {
    %c0_i32 = arith.constant 0 : i32
    %c0_i32_0 = arith.constant 0 : i32
    %c0_i32_1 = arith.constant 0 : i32
    return %c0_i32, %c0_i32_0 : i32, i32
  }
  func.func @transform_4(%arg0: i32) -> (i32, i32) {
    %c0_i32 = arith.constant 0 : i32
    %c0_i32_0 = arith.constant 0 : i32
    %c0_i32_1 = arith.constant 0 : i32
    return %c0_i32, %c0_i32_0 : i32, i32
  }
  func.func @transform_5(%arg0: i32) -> (i32, i32) {
    %c0_i32 = arith.constant 0 : i32
    %c0_i32_0 = arith.constant 0 : i32
    %c0_i32_1 = arith.constant 0 : i32
    return %c0_i32, %c0_i32_0 : i32, i32
  }
  func.func @transform_6(%arg0: i32) -> (i32, i32) {
    %c0_i32 = arith.constant 0 : i32
    %c0_i32_0 = arith.constant 0 : i32
    %c0_i32_1 = arith.constant 0 : i32
    return %c0_i32, %c0_i32_0 : i32, i32
  }
  func.func @transform_7(%arg0: i32) -> (i32, i32) {
    %c0_i32 = arith.constant 0 : i32
    %c0_i32_0 = arith.constant 0 : i32
    %c0_i32_1 = arith.constant 0 : i32
    return %c0_i32, %c0_i32_0 : i32, i32
  }
  func.func @transform_8(%arg0: i32) -> (i32, i32) {
    %c0_i32 = arith.constant 0 : i32
    %c0_i32_0 = arith.constant 0 : i32
    %c0_i32_1 = arith.constant 0 : i32
    return %c0_i32, %c0_i32_0 : i32, i32
  }
  func.func @transform_9(%arg0: i32) -> (i32, i32) {
    %c0_i32 = arith.constant 0 : i32
    %c0_i32_0 = arith.constant 0 : i32
    %c0_i32_1 = arith.constant 0 : i32
    return %c0_i32, %c0_i32_0 : i32, i32
  }
  func.func @transform_10(%arg0: i32) -> (i32, i32) {
    %c0_i32 = arith.constant 0 : i32
    %c0_i32_0 = arith.constant 0 : i32
    %c0_i32_1 = arith.constant 0 : i32
    return %c0_i32, %c0_i32_0 : i32, i32
  }
  func.func @transform_11(%arg0: i32) -> (i32, i32) {
    %c0_i32 = arith.constant 0 : i32
    %c0_i32_0 = arith.constant 0 : i32
    return %arg0, %c0_i32 : i32, i32
  }
}

</mosaic_0001>

<bundles_post_ra>
// kernel: multimodal_forward.7
= control target key start
LH: loop header
LB: loop body
LE: loop exit
PB: predicated region body
PF: predicated region fallthrough
CT: control target
= control target key end

     0   :  { %12 = vsyncpa [#allocation3], 0  ;;  %s2415_s0 = inlined_call_operand.hbm [shape: bf16[16,32], index: 0, kind: input, shape index: {}]   ;;  %s2416_s1 = inlined_call_operand.hbm [shape: bf16[32,96], index: 1, kind: input, shape index: {}]   ;;  %s2417_s2 = inlined_call_operand.hbm [shape: bf16[32,32], index: 2, kind: input, shape index: {}]   ;;  %s2418_s3 = inlined_call_operand.hbm [shape: bf16[32,64], index: 3, kind: input, shape index: {}]   ;;  %s2419_s4 = inlined_call_operand.hbm [shape: f32[1,64], index: 4, kind: input, shape index: {}]   ;;  %s2420_s5 = inlined_call_operand.hbm [shape: bf16[64,32], index: 5, kind: input, shape index: {}]   ;;  %s2421_s6 = inlined_call_operand.hbm [shape: f32[7,32], index: 6, kind: input, shape index: {}]   ;;  %s2422_s7 = inlined_call_operand.hbm [shape: bf16[16,32], index: 7, kind: output, shape index: {}]  }
   0x1   :  { %14 = vsyncpa [#allocation3 + $0x1], 0 }
   0x2   :  { %15 = vsyncpa [#allocation6], 0 }
   0x3   :  { %16 = vsyncpa [#allocation9], 0 }
   0x4   :  { %17 = vsyncpa [#allocation12], 0 }
   0x5   :  { %18 = vsyncpa [#allocation4], 0 }
   0x6   :  { %20 = vsyncpa [#allocation4 + $0x1], 0  ;;  %s1973_s24 = smov 0   ;;  %s1975_s25 = smov 0  }
   0x7   :  { %s1977_s26 = smov 0   ;;  %s1979_s27 = smov 0  }
   0x8 LB: > { %s1907_s28 = smov [#allocation5]   ;;  %s1994_s30 = sadd.s32 4294967295, %s1905_s27   ;;  %s1905_s27 = sphi %s1979_s27, %s2448_s27   ;;  %s1901_s26 = sphi %s1977_s26, %s2447_s26   ;;  %s1897_s25 = sphi %s1975_s25, %s2446_s25   ;;  %s1893_s24 = sphi %s1973_s24, %s2445_s24  }
   0x9   : > { %s221_s29 = sshll.u32 %s1907_s28, 4  ;;  %p1314_p0 = scmp.ge.s32.totalorder %s1905_s27, 1  ;;  %s1999_s29 = int_to_ptr.vmem [resolvable:$true] %s221_s29 }
   0xa   : > { %p2423_p1 = scmp.eq.s32.totalorder %s1994_s30, 0  ;;  %p209_p2 = scmp.lt.s32.totalorder %s1905_s27, 3 }
   0xb   : > { %s1908_s9 = smov [#allocation8]   ;;  %s1909_s12 = smov [#allocation11]  }
   0xc   : > { %p2001_p3 = pnand %p1314_p0, %p209_p2  ;;  %s247_s10 = sshll.u32 %s1908_s9, 4  ;;  %s2014_s10 = int_to_ptr.vmem [resolvable:$true] %s247_s10 }
   0xd   : > { %s271_s13 = sshll.u32 %s1909_s12, 4  ;;  %s1629_s16 = scalar_lea.hbm %s2416_s1, 256  ;;  %s2016_s13 = int_to_ptr.vmem [resolvable:$true] %s271_s13 }
   0xe   : > { %s2426_s8 = scalar_select %p2001_p3, 1, 0 }
   0xf   : > { %p1502_p5 = pneg %p2001_p3  ;;  %p1630_p7 = scmp.ne.s32.totalorder %s2416_s1, %s1629_s16 }
  0x10   : > { %p1636_p11 = scmp.lt.u32.totalorder %s1629_s16, %s2416_s1 }
  0x11   : > { %p2010_p6 = pnand %p1502_p5, %p2423_p1 }
  0x13   : > { %p2026_p8 = pneg %p2010_p6 }
  0x15   : > { %p1632_p9 = pnand %p2026_p8, %p1630_p7 }
  0x17   : > { %p1633_p10 = pneg %p1632_p9 }
  0x19   : > { %p1638_p12 = pnand %p1636_p11, %p1633_p10 }
  0x1b   : > { %1641 = shalt.err (!%p1638_p12)
}
  0x1c   : > { %s1642_s22 = scalar_lea.vmem %s1999_s29, 256  ;;  %p1650_p5 = scmp.lt.s32.totalorder %s1999_s29, %s1999_s29 }
  0x1d   : > { %p1643_p13 = scmp.ne.s32.totalorder %s1999_s29, %s1642_s22  ;;  %p1651_p4 = scmp.lt.s32.totalorder %s1642_s22, %s1642_s22 }
  0x1f   : > { %p1645_p0 = pnand %p1643_p13, %p2026_p8  ;;  %p1652_p7 = por %p1651_p4, %p1650_p5 }
  0x21   : > { %p1646_p2 = pneg %p1645_p0 }
  0x23   : > { %p1653_p9 = pnand %p1652_p7, %p1646_p2 }
  0x25   : > { %1656 = shalt.err (!%p1653_p9)
}
  0x26   : > { %s1910_s23 = smov 64   ;;  %s1911_s28 = smov 4  }
  0x27   : > { %1505 = dma.hbm_to_vmem [thread:$0]  (!%p2010_p6), %s2416_s1, 256, %s1999_s29, [#allocation6], %s1910_s23, %s1910_s23, %s1911_s28  }
  0x28   : > { %s1657_s16 = scalar_lea.hbm %s2418_s3, 256 }
  0x29   : > { %p1658_p4 = scmp.ne.s32.totalorder %s2418_s3, %s1657_s16  ;;  %p1664_p12 = scmp.lt.u32.totalorder %s1657_s16, %s2418_s3 }
  0x2b   : > { %p1660_p10 = pnand %p1658_p4, %p2026_p8 }
  0x2d   : > { %p1661_p11 = pneg %p1660_p10 }
  0x2f   : > { %p1666_p13 = pnand %p1664_p12, %p1661_p11 }
  0x31   : > { %1669 = shalt.err (!%p1666_p13)
}
  0x32   : > { %s1670_s29 = scalar_lea.vmem %s2014_s10, 256  ;;  %p1678_p7 = scmp.lt.s32.totalorder %s2014_s10, %s2014_s10 }
  0x33   : > { %p1671_p0 = scmp.ne.s32.totalorder %s2014_s10, %s1670_s29  ;;  %p1679_p9 = scmp.lt.s32.totalorder %s1670_s29, %s1670_s29 }
  0x35   : > { %p1673_p2 = pnand %p1671_p0, %p2026_p8  ;;  %p1680_p4 = por %p1679_p9, %p1678_p7 }
  0x37   : > { %p1674_p5 = pneg %p1673_p2 }
  0x39   : > { %p1681_p10 = pnand %p1680_p4, %p1674_p5 }
  0x3b   : > { %1684 = shalt.err (!%p1681_p10)
}
  0x3c   : > { %1511 = dma.hbm_to_vmem [thread:$0]  (!%p2010_p6), %s2418_s3, 256, %s2014_s10, [#allocation9], %s1910_s23, %s1910_s23, %s1911_s28  }
  0x3d   : > { %s1685_s15 = scalar_lea.hbm %s2420_s5, 512 }
  0x3e   : > { %p1686_p11 = scmp.ne.s32.totalorder %s2420_s5, %s1685_s15  ;;  %p1692_p0 = scmp.lt.u32.totalorder %s1685_s15, %s2420_s5 }
  0x40   : > { %p1688_p12 = pnand %p1686_p11, %p2026_p8 }
  0x42   : > { %p1689_p13 = pneg %p1688_p12 }
  0x44   : > { %p1694_p2 = pnand %p1692_p0, %p1689_p13 }
  0x46   : > { %1697 = shalt.err (!%p1694_p2)
}
  0x47   : > { %s1698_s10 = scalar_lea.vmem %s2016_s13, 512  ;;  %p1706_p4 = scmp.lt.s32.totalorder %s2016_s13, %s2016_s13 }
  0x48   : > { %p1699_p5 = scmp.ne.s32.totalorder %s2016_s13, %s1698_s10  ;;  %p1707_p10 = scmp.lt.s32.totalorder %s1698_s10, %s1698_s10 }
  0x4a   : > { %p1701_p7 = pnand %p1699_p5, %p2026_p8  ;;  %p1708_p11 = por %p1707_p10, %p1706_p4 }
  0x4c   : > { %p1702_p9 = pneg %p1701_p7 }
  0x4e   : > { %p1709_p12 = pnand %p1708_p11, %p1702_p9 }
  0x50   : > { %1712 = shalt.err (!%p1709_p12)
}
  0x51   : > { %1517 = dma.hbm_to_vmem [thread:$0]  (!%p2010_p6), %s2420_s5, 512, %s2016_s13, [#allocation12], %s1910_s23, %s1910_s23, %s1911_s28  }
  0x52   : > { %s1912_s22 = smov [#allocation7]   ;;  %s1913_s12 = smov [#allocation10]  }
  0x53   : > { %s234_s9 = sshll.u32 %s1912_s22, 4  ;;  %s261_s14 = sshll.u32 %s1913_s12, 4  ;;  %s235_s9 = int_to_ptr.vmem [resolvable:$true] %s234_s9  ;;  %s262_s14 = int_to_ptr.vmem [resolvable:$true] %s261_s14 }
  0x54   : > { %s1713_s17 = scalar_lea.hbm %s2417_s2, 256 }
  0x55   : > { %p1714_p13 = scmp.ne.s32.totalorder %s2417_s2, %s1713_s17  ;;  %p1720_p5 = scmp.lt.u32.totalorder %s1713_s17, %s2417_s2 }
  0x57   : > { %p1716_p0 = pnand %p1714_p13, %p2026_p8 }
  0x59   : > { %p1717_p2 = pneg %p1716_p0 }
  0x5b   : > { %p1722_p7 = pnand %p1720_p5, %p1717_p2 }
  0x5d   : > { %1725 = shalt.err (!%p1722_p7)
}
  0x5e   : > { %s1726_s13 = scalar_lea.vmem %s235_s9, 256  ;;  %p1734_p11 = scmp.lt.s32.totalorder %s235_s9, %s235_s9 }
  0x5f   : > { %p1727_p9 = scmp.ne.s32.totalorder %s235_s9, %s1726_s13  ;;  %p1735_p12 = scmp.lt.s32.totalorder %s1726_s13, %s1726_s13 }
  0x61   : > { %p1729_p4 = pnand %p1727_p9, %p2026_p8  ;;  %p1736_p1 = por %p1735_p12, %p1734_p11 }
  0x63   : > { %p1730_p10 = pneg %p1729_p4 }
  0x65   : > { %p1737_p3 = pnand %p1736_p1, %p1730_p10 }
  0x67   : > { %1740 = shalt.err (!%p1737_p3)
}
  0x68   : > { %1508 = dma.hbm_to_vmem [thread:$0]  (!%p2010_p6), %s2417_s2, 256, %s235_s9, [#allocation6], %s1910_s23, %s1910_s23, %s1911_s28  }
  0x69   : > { %s1741_s16 = scalar_lea.hbm %s2419_s4, 16 }
  0x6a   : > { %p1742_p1 = scmp.ne.s32.totalorder %s2419_s4, %s1741_s16  ;;  %p1748_p0 = scmp.lt.u32.totalorder %s1741_s16, %s2419_s4 }
  0x6c   : > { %p1744_p3 = pnand %p1742_p1, %p2026_p8 }
  0x6e   : > { %p1745_p13 = pneg %p1744_p3 }
  0x70   : > { %p1750_p2 = pnand %p1748_p0, %p1745_p13 }
  0x72   : > { %1753 = shalt.err (!%p1750_p2)
}
  0x73   : > { %s1754_s21 = scalar_lea.vmem %s262_s14, 16  ;;  %s1761_s23 = scalar_lea.vmem %s262_s14, 32 }
  0x74   : > { %p1755_p5 = scmp.ne.s32.totalorder %s262_s14, %s1754_s21  ;;  %p1762_p4 = scmp.lt.s32.totalorder %s262_s14, %s262_s14 }
  0x75   : > { %p1763_p10 = scmp.lt.s32.totalorder %s1761_s23, %s1754_s21 }
  0x76   : > { %p1757_p7 = pnand %p1755_p5, %p2026_p8 }
  0x77   : > { %p1764_p11 = por %p1763_p10, %p1762_p4 }
  0x78   : > { %p1758_p9 = pneg %p1757_p7 }
  0x7a   : > { %p1765_p12 = pnand %p1764_p11, %p1758_p9 }
  0x7c   : > { %1768 = shalt.err (!%p1765_p12)
}
  0x7d   : > { %1514 = dma.hbm_to_vmem [thread:$0]  (!%p2010_p6), %s2419_s4, 16, %s262_s14, [#allocation9]  }
  0x7e   : > { %s1914_s13 = smov [#allocation13]   ;;  %s1769_s15 = scalar_lea.hbm %s2421_s6, 128 }
  0x7f   : > { %s285_s29 = sshll.u32 %s1914_s13, 4  ;;  %p1770_p1 = scmp.ne.s32.totalorder %s2421_s6, %s1769_s15  ;;  %s286_s29 = int_to_ptr.vmem [resolvable:$true] %s285_s29 }
  0x80   : > { %p1776_p0 = scmp.lt.u32.totalorder %s1769_s15, %s2421_s6 }
  0x81   : > { %p1772_p3 = pnand %p1770_p1, %p2026_p8 }
  0x83   : > { %p1773_p13 = pneg %p1772_p3 }
  0x85   : > { %p1778_p2 = pnand %p1776_p0, %p1773_p13 }
  0x87   : > { %1781 = shalt.err (!%p1778_p2)
}
  0x88   : > { %s1782_s14 = scalar_lea.vmem %s286_s29, 128  ;;  %p1790_p4 = scmp.lt.s32.totalorder %s286_s29, %s286_s29 }
  0x89   : > { %p1783_p5 = scmp.ne.s32.totalorder %s286_s29, %s1782_s14  ;;  %p1791_p10 = scmp.lt.s32.totalorder %s1782_s14, %s1782_s14 }
  0x8b   : > { %p1785_p7 = pnand %p1783_p5, %p2026_p8  ;;  %p1792_p11 = por %p1791_p10, %p1790_p4 }
  0x8d   : > { %p1786_p9 = pneg %p1785_p7 }
  0x8f   : > { %p1793_p12 = pnand %p1792_p11, %p1786_p9 }
  0x91   : > { %1796 = shalt.err (!%p1793_p12)
}
  0x92   : > { %1520 = dma.hbm_to_vmem [thread:$0]  (!%p2010_p6), %s2421_s6, 128, %s286_s29, [#allocation12]  }
  0x93   : > { %s1313_s19 = sadd.s32 4294967294, %s1905_s27   ;;  %s2161_s11 = sadd.s32 1, %s1905_s27  }
  0x94   : > { %s30_s23 = ssub.s32 %s1905_s27, %s2161_s11  ;;  %s33_s28 = sadd.s32 1, %s1901_s26 }
  0x95   : > { %p31_p8 = scmp.eq.s32.totalorder %s30_s23, 0  ;;  %p40_p1 = scmp.ne.s32.totalorder %s1901_s26, %s1897_s25 }
  0x96   : > { %p41_p3 = scmp.eq.s32.totalorder %s1905_s27, 0  ;;  %p46_p13 = scmp.ne.s32.totalorder %s1897_s25, %s1893_s24 }
  0x97   : > { %s2172_s9 = scalar_select %p31_p8, %s1901_s26, %s33_s28  }
  0x98   : > { %p2174_p0 = por %p41_p3, %p40_p1  ;;  %p2430_p2 = scmp.eq.s32.totalorder %s1994_s30, 0 }
  0x99   : > { %p196_p5 = scmp.eq.s32.totalorder %s1994_s30, 1  ;;  %p202_p7 = scmp.eq.s32.totalorder %s1313_s19, 1 }
  0x9a   : > { %p2180_p6 = por %p2430_p2, %p46_p13  ;;  %p1535_p9 = scmp.lt.s32.totalorder %s1905_s27, 2 }
  0x9b   : > { %s296_s22 = sand.u32 1, %s1901_s26   ;;  %p2187_p4 = por %p196_p5, %p40_p1 }
  0x9c   : > { %p2191_p10 = por %p202_p7, %p46_p13  ;;  %s1322_s16 = sshll.u32 %s296_s22, 2 }
  0x9d   : > { %s2432_s12 = scalar_select %p2187_p4, 1, 0 }
  0x9e   : > { %s2433_s15 = scalar_select %p2191_p10, 1, 0 }
  0x9f   : > { %s1323_s17 = sshll.u32 %s1905_s27, 6  ;;  %s300_s10 = scalar_lea.vmem [#allocation2], %s1322_s16 }
  0xa0   : > { %s2199_s14 = scalar_lea.hbm %s2415_s0, %s1323_s17  ;;  %s307_s21 = sshll.u32 %s300_s10, 4  ;;  %s2201_s21 = int_to_ptr.vmem [resolvable:$true] %s307_s21 }
  0xa1   : > { %p2205_p11 = pnand %p1535_p9, %p2174_p0  ;;  %s297_s23 = scalar_lea.sflag [#allocation3], %s296_s22 }
  0xa2   : > { %s1797_s28 = scalar_lea.hbm %s2199_s14, 64  ;;  %s1802_s18 = scalar_lea.hbm %s2415_s0, 128 }
  0xa3   : > { %p1798_p12 = scmp.ne.s32.totalorder %s2199_s14, %s1797_s28  ;;  %p1799_p8 = pneg %p2205_p11 }
  0xa4   : > { %p1803_p13 = scmp.lt.u32.totalorder %s2199_s14, %s2415_s0  ;;  %p1804_p0 = scmp.lt.u32.totalorder %s1802_s18, %s1797_s28 }
  0xa5   : > { %p1800_p1 = pnand %p1799_p8, %p1798_p12  ;;  %p1806_p5 = scmp.lt.u32.totalorder %s1797_s28, %s2199_s14 }
  0xa6   : > { %p1805_p2 = por %p1804_p0, %p1803_p13 }
  0xa7   : > { %p1801_p3 = pneg %p1800_p1 }
  0xa8   : > { %p1807_p7 = por %p1806_p5, %p1805_p2 }
  0xaa   : > { %p1808_p9 = pnand %p1807_p7, %p1801_p3 }
  0xac   : > { %1811 = shalt.err (!%p1808_p9)
}
  0xad   : > { %s1812_s22 = scalar_lea.vmem %s2201_s21, 64  ;;  %s1915_s10 = smov [#allocation2]  }
  0xae   : > { %p1813_p12 = scmp.ne.s32.totalorder %s2201_s21, %s1812_s22  ;;  %s1817_s16 = sshll.u32 %s1915_s10, 4  ;;  %s1818_s16 = int_to_ptr.vmem [resolvable:$false] %s1817_s16 }
  0xaf   : > { %s1819_s17 = scalar_lea.vmem %s1818_s16, 128  ;;  %p1820_p4 = scmp.lt.s32.totalorder %s2201_s21, %s1818_s16 }
  0xb0   : > { %p1815_p1 = pnand %p1813_p12, %p1799_p8  ;;  %p1821_p13 = scmp.lt.s32.totalorder %s1819_s17, %s1812_s22 }
  0xb2   : > { %p1816_p10 = pneg %p1815_p1  ;;  %p1822_p0 = por %p1821_p13, %p1820_p4 }
  0xb4   : > { %p1823_p2 = pnand %p1822_p0, %p1816_p10 }
  0xb6   : > { %1826 = shalt.err (!%p1823_p2)
}
  0xb7   : > { %1524 = dma.hbm_to_vmem [thread:$0]  (!%p2205_p11), %s2199_s14, 64, %s2201_s21, %s297_s23  }
  0xb8   : > { %p2435_p3 = scmp.ne.s32.totalorder %s2426_s8, 0 }
  0xb9   : > { %s2237_s28 = sand.u32 (!%p2435_p3), 1, %s1897_s25  }
  0xba   : > { %316 = sbr.rel (%p2435_p3) target bundleno = 2764 (0xacc), region = 48  ;;  %s1325_s18 = sshll.u32 (!%p2435_p3), %s2237_s28, 2 }
  0xbb   : > { %s319_s13 = scalar_lea.sflag (!%p2435_p3), [#allocation3], %s2237_s28  ;;  %s322_s20 = scalar_lea.vmem (!%p2435_p3), [#allocation2], %s1325_s18 }
  0xc1   : > { %1872 = dma.done.wait (%p2180_p6), %s319_s13, 64  }
  0xc2   : > { %1874 = vsyncadd (%p2180_p6), %s319_s13, 4294967232  ;;  %p2436_p4 = scmp.eq.s32.totalorder %s1994_s30, 0 }
  0xc4   : > { %1876 = dma.done.wait (%p2436_p4), [#allocation6], 512   ;;  %p2437_p10 = pmov %p2436_p4 }
  0xc5   : > { %p2438_p11 = pmov %p2436_p4 }
  0xc6   : > { %1878 = vsyncadd (%p2437_p10), [#allocation6], 4294966784 }
  0xc7   : > { %1880 = dma.done.wait (%p2438_p11), [#allocation9], 272   ;;  %p2439_p8 = pmov %p2436_p4 }
  0xc8   : > { %p2440_p5 = pmov %p2436_p4 }
  0xc9   : > { %1882 = vsyncadd (%p2439_p8), [#allocation9], 4294967024 }
  0xca   : > { %1884 = dma.done.wait (%p2440_p5), [#allocation12], 640   ;;  %p2441_p7 = pmov %p2436_p4 }
  0xcb   : > { %v1916_v0 = vmov 0.0   ;;  %vm1917_vm0 = vmmov 0   ;;  %v1599_v1 = vld [vmem:[#allocation5] sm:$0xff]   ;;  %v1600_v2 = vld [vmem:[#allocation5 + $0x8] sm:$0xff]   ;;  %vm397_vm1 = vcmask 261120   ;;  %v441_v4 = vlaneseq  ;;  %s1918_s8 = smov 96  }
  0xcc   : > { %1886 = vsyncadd (%p2441_p7), [#allocation12], 4294966656  ;;  %1390 = vmatprep.subr.bf16.mxu0 %v1916_v0  ;;  %1394 = vmatprep.mubr.msk.bf16.mxu0 %vm1917_vm0, %v1916_v0  ;;  %v2266_v3 = vld [vmem:[%s322_s20] sm:$0xf]  ;;  %s1919_s29 = smov 120   ;;  %s1920_s14 = smov 88  }
  0xcd   : > { %1398 = vmatprep.subr.bf16.mxu1 %v1916_v0  ;;  %1400 = vmatprep.mubr.msk.bf16.mxu1 %vm1917_vm0, %v1916_v0  ;;  %v2273_v5 = vshrl.u32 %v441_v4, 7  ;;  %v2276_v7 = vld [vmem:[#allocation13] sm:$0x7f]  ;;  %s1921_s21 = smov 80   ;;  %s1922_s19 = smov 112   ;;  %vm451_vm2 = vcmask 64512  }
  0xce   : > { %1391 = vmatpush3.bf16.msra.mxu0 %v1599_v1  ;;  %s1923_s23 = smov 72   ;;  %s1924_s22 = smov 104   ;;  %vm515_vm3 = vcmask 1043456   ;;  %vm903_vm4 = vcmask 130048   ;;  %vm905_vm5 = vcmask 195584   ;;  %vm1101_vm6 = vcmask 523264  }
  0xcf   : > { %1392 = vmatprep.subr.bf16.mxu0 %v1916_v0  ;;  %v443_v6 = vsub.s32 0, %v2273_v5  ;;  %s1925_s10 = smov 56   ;;  %s1926_s16 = smov 64   ;;  %vm1170_vm7 = vcmask 257024  }
  0xd0   : > { %s1927_s17 = smov 40   ;;  %s1928_s13 = smov 48  }
  0xd1   : > { %v444_v8 = vrot.slane %v2276_v7, %v443_v6  ;;  %s1929_s20 = smov 8   ;;  %p2442_p9 = scmp.ne.s32.totalorder %s2432_s12, 0 }
  0xd2   : > { %1393 = vmatpush3.bf16.msra.mxu0 %v1600_v2 }
  0xd3   : > { %1404 = vmatprep.subr.bf16.mxu0 %v1916_v0 }
  0xd5   : > { %1395 = vmatmul.mubr.msk.bf16.vlgmr.msra.gmra.mrb[0].mxu0 %vm397_vm1, %v2266_v3 }
  0xd6   : > { %1406 = vmatprep.mubr.msk.bf16.mxu0 %vm1917_vm0, %v1916_v0 }
 0x1a8   : > { %v435_v9 = vpop.f32.mrb[0].mxu0 }
 0x1a9   : > { %v445_v10 = vadd.f32 %v444_v8, %v435_v9  ;;  %v2279_v11 = vpack.c.bf16 %v435_v9, %v435_v9  ;;  %v1396_v12 = vpop.f32.mrb[1].mxu0 }
 0x1aa   : > { %v438_v13 = vpop.f32.mrb[2].mxu0 }
 0x1ab   : > { %v446_v14 = vpack.c.bf16 %v445_v10, %v445_v10  ;;  %449 = vrot.lane.b32.xlu0 %v2279_v11, %s1918_s8  ;;  %v1397_v15 = vpop.f32.mrb[3].mxu0  ;;  %s1930_s8 = smov 16  }
 0x1ad   : > { %560 = vrot.lane.b32.xlu1 %v446_v14, %s1919_s29  ;;  %s1931_s29 = smov 24  }
 0x1af   : > { %562 = vrot.lane.b32.xlu0 %v2279_v11, %s1920_s14  ;;  %s1357_s14 = sshll.u32 %s1994_s30, 6  ;;  %s1932_s30 = smov [#allocation14]  }
 0x1b1   : > { %672 = vrot.lane.b32.xlu1 %v2279_v11, %s1921_s21  ;;  %s376_s21 = scalar_lea.vmem [#allocation14], %s1325_s18  ;;  %s1831_s18 = sshll.u32 %s1932_s30, 4  ;;  %s1832_s18 = int_to_ptr.vmem [resolvable:$false] %s1831_s18 }
 0x1b3   : > { %670 = vrot.lane.b32.xlu0 %v446_v14, %s1922_s19  ;;  %s1186_s19 = sshll.u32 %s376_s21, 4  ;;  %s2373_s19 = int_to_ptr.vmem [resolvable:$true] %s1186_s19 }
 0x1b4   : > { %p1834_p13 = scmp.lt.s32.totalorder %s2373_s19, %s1832_s18 }
 0x1b5   : > { %782 = vrot.lane.b32.xlu1 %v2279_v11, %s1923_s23 }
 0x1b7   : > { %780 = vrot.lane.b32.xlu0 %v446_v14, %s1924_s22 }
 0x21d   : > { %v450_v16 = vpop.permute.xlu0 %449 }
 0x21e   : > { %v456_v17 = vsel %vm451_vm2, %v450_v16, 0 }
 0x21f   : > { %1399 = vmatpush3.bf16.xpose.msra.mxu1 %v456_v17  ;;  %v561_v19 = vpop.permute.xlu1 %560 }
 0x220   : > { %1410 = vmatprep.subr.bf16.mxu1 %v1916_v0 }
 0x221   : > { %v563_v18 = vpop.permute.xlu0 %562 }
 0x222   : > { %v568_v20 = vsel %vm451_vm2, %v563_v18, 0 }
 0x223   : > { %v673_v21 = vpop.permute.xlu1 %672 }
 0x224   : > { %v678_v22 = vsel %vm451_vm2, %v673_v21, 0 }
 0x225   : > { %v671_v24 = vpop.permute.xlu0 %670 }
 0x226   : > { %1401 = vmatmul.mubr.msk.bf16.vlgmr.msra.gmra.mrb[0].mxu1 %vm451_vm2, %v446_v14 }
 0x227   : > { %1411 = vmatpush3.bf16.xpose.msra.mxu1 %v568_v20  ;;  %1412 = vmatprep.mubr.msk.bf16.mxu1 %vm1917_vm0, %v1916_v0  ;;  %v783_v23 = vpop.permute.xlu1 %782 }
 0x228   : > { %1422 = vmatprep.subr.bf16.mxu1 %v1916_v0  ;;  %v788_v25 = vsel %vm451_vm2, %v783_v23, 0 }
 0x229   : > { %v781_v26 = vpop.permute.xlu0 %780 }
 0x22e   : > { %1413 = vmatmul.mubr.msk.bf16.vlgmr.msra.gmra.mrb[4].mxu1 %vm451_vm2, %v561_v19 }
 0x22f   : > { %1423 = vmatpush3.bf16.xpose.msra.mxu1 %v678_v22  ;;  %1424 = vmatprep.mubr.msk.bf16.mxu1 %vm1917_vm0, %v1916_v0 }
 0x230   : > { %1434 = vmatprep.subr.bf16.mxu1 %v1916_v0 }
 0x236   : > { %1425 = vmatmul.mubr.msk.bf16.vlgmr.msra.gmra.mrb[8].mxu1 %vm451_vm2, %v671_v24 }
 0x237   : > { %1435 = vmatpush3.bf16.xpose.msra.mxu1 %v788_v25  ;;  %1436 = vmatprep.mubr.msk.bf16.mxu1 %vm1917_vm0, %v1916_v0 }
 0x238   : > { %1446 = vmatprep.subr.bf16.mxu1 %v1916_v0 }
 0x23e   : > { %1437 = vmatmul.mubr.msk.bf16.vlgmr.msra.gmra.mrb[12].mxu1 %vm451_vm2, %v781_v26 }
 0x23f   : > { %1450 = vmatprep.mubr.msk.bf16.mxu1 %vm1917_vm0, %v1916_v0 }
 0x2f9   : > { %v492_v27 = vpop.f32.mrb[0].mxu1 }
 0x2fa   : > { %v1402_v28 = vpop.f32.mrb[1].mxu1  ;;  %v498_v29 = vsel %vm451_vm2, %v492_v27, -inf }
 0x2fb   : > { %499 = vmax.xlane.f32.xlu1 %v498_v29  ;;  %v495_v30 = vpop.f32.mrb[2].mxu1 }
 0x2fc   : > { %v1403_v31 = vpop.f32.mrb[3].mxu1 }
 0x301   : > { %v604_v32 = vpop.f32.mrb[4].mxu1 }
 0x302   : > { %v1414_v33 = vpop.f32.mrb[5].mxu1  ;;  %v610_v34 = vsel %vm451_vm2, %v604_v32, -inf }
 0x303   : > { %611 = vmax.xlane.f32.xlu0 %v610_v34  ;;  %v607_v35 = vpop.f32.mrb[6].mxu1 }
 0x304   : > { %v1415_v36 = vpop.f32.mrb[7].mxu1 }
 0x309   : > { %v714_v37 = vpop.f32.mrb[8].mxu1 }
 0x30a   : > { %v1426_v38 = vpop.f32.mrb[9].mxu1  ;;  %v720_v39 = vsel %vm451_vm2, %v714_v37, -inf }
 0x30b   : > { %721 = vmax.xlane.f32.xlu0 %v720_v39  ;;  %v717_v40 = vpop.f32.mrb[10].mxu1  ;;  %v1601_v39 = vld [vmem:[#allocation7] sm:$0xff]  }
 0x30c   : > { %v1427_v41 = vpop.f32.mrb[11].mxu1  ;;  %1447 = vmatpush3.bf16.msra.mxu1 %v1601_v39  ;;  %v1602_v40 = vld [vmem:[#allocation7 + $0x8] sm:$0xff]  }
 0x30d   : > { %1448 = vmatprep.subr.bf16.mxu1 %v1916_v0 }
 0x310   : > { %1449 = vmatpush3.bf16.msra.mxu1 %v1602_v40 }
 0x311   : > { %v824_v42 = vpop.f32.mrb[12].mxu1  ;;  %1462 = vmatprep.subr.bf16.mxu1 %v1916_v0 }
 0x312   : > { %v1438_v43 = vpop.f32.mrb[13].mxu1  ;;  %v830_v44 = vsel %vm451_vm2, %v824_v42, -inf }
 0x313   : > { %831 = vmax.xlane.f32.xlu1 %v830_v44  ;;  %v827_v45 = vpop.f32.mrb[14].mxu1 }
 0x314   : > { %v1439_v46 = vpop.f32.mrb[15].mxu1 }
 0x388   : > { %v500_v47 = vpop.xlane.xlu1 %499 }
 0x389   : > { %v501_v48 = vsub.f32 %v492_v27, %v500_v47 }
 0x38b   : > { %v502_v49 = vmul.f32 1.442695, %v501_v48 }
 0x38d   : > { %1609 = vpow2.f32 %v502_v49 }
 0x390   : > { %v612_v50 = vpop.xlane.xlu0 %611 }
 0x391   : > { %v613_v51 = vsub.f32 %v604_v32, %v612_v50 }
 0x393   : > { %v614_v52 = vmul.f32 1.442695, %v613_v51 }
 0x395   : > { %1611 = vpow2.f32 %v614_v52 }
 0x397   : > { %v1610_v53 = vpop.eup %1609 }
 0x398   : > { %v722_v54 = vpop.xlane.xlu0 %721  ;;  %v504_v55 = vsel %vm451_vm2, %v1610_v53, 0.0 }
 0x399   : > { %v723_v56 = vsub.f32 %v714_v37, %v722_v54  ;;  %505 = vadd.xlane.f32.xlu0 %v504_v55 }
 0x39b   : > { %v724_v57 = vmul.f32 1.442695, %v723_v56  ;;  %v914_v56 = vsub.s32 1, %v2273_v5 }
 0x39d   : > { %1613 = vpow2.f32 %v724_v57  ;;  %v915_v57 = vrot.slane %v2276_v7, %v914_v56 }
 0x39f   : > { %v1612_v58 = vpop.eup %1611 }
 0x3a0   : > { %v616_v59 = vsel %vm451_vm2, %v1612_v58, 0.0  ;;  %v832_v62 = vpop.xlane.xlu1 %831 }
 0x3a1   : > { %617 = vadd.xlane.f32.xlu1 %v616_v59  ;;  %v833_v63 = vsub.f32 %v824_v42, %v832_v62 }
 0x3a3   : > { %v834_v1 = vmul.f32 1.442695, %v833_v63 }
 0x3a5   : > { %1615 = vpow2.f32 %v834_v1 }
 0x3a7   : > { %v1614_v60 = vpop.eup %1613 }
 0x3a8   : > { %v726_v61 = vsel %vm451_vm2, %v1614_v60, 0.0 }
 0x3a9   : > { %727 = vadd.xlane.f32.xlu0 %v726_v61 }
 0x3af   : > { %v1616_v2 = vpop.eup %1615 }
 0x3b0   : > { %v836_v4 = vsel %vm451_vm2, %v1616_v2, 0.0 }
 0x3b2   : > { %622 = vrot.lane.b32.xlu1 %v2279_v11, %s1925_s10  ;;  %s2371_s10 = scalar_lea.hbm %s2422_s7, %s1357_s14 }
 0x3bf   : > { %510 = vrot.lane.b32.xlu0 %v2279_v11, %s1926_s16  ;;  %s1173_s16 = scalar_lea.sflag [#allocation4], %s2237_s28 }
 0x3c3   : > { %842 = vrot.lane.b32.xlu0 %v2279_v11, %s1927_s17  ;;  %s1827_s17 = scalar_lea.vmem %s2373_s19, 64 }
 0x3c4   : > { %p1828_p6 = scmp.ne.s32.totalorder %s2373_s19, %s1827_s17 }
 0x3c6   : > { %p1829_p12 = pnand %p1828_p6, %p2442_p9 }
 0x3c8   : > { %p1830_p1 = pneg %p1829_p12 }
 0x3d6   : > { %837 = vadd.xlane.f32.xlu1 %v836_v4 }
 0x3e7   : > { %732 = vrot.lane.b32.xlu1 %v2279_v11, %s1928_s13  ;;  %s1833_s13 = scalar_lea.vmem %s1832_s18, 128 }
 0x3e8   : > { %p1835_p0 = scmp.lt.s32.totalorder %s1833_s13, %s1827_s17 }
 0x3ea   : > { %p1836_p2 = por %p1835_p0, %p1834_p13 }
 0x3ec   : > { %p1837_p3 = pnand %p1836_p2, %p1830_p1 }
 0x426   : > { %v506_v6 = vpop.xlane.xlu0 %505 }
 0x427   : > { %1617 = vrcp.f32 %v506_v6 }
 0x42e   : > { %v618_v8 = vpop.xlane.xlu1 %617 }
 0x42f   : > { %1619 = vrcp.f32 %v618_v8 }
 0x431   : > { %v1618_v9 = vpop.eup %1617 }
 0x432   : > { %v508_v12 = vmul.f32 %v1618_v9, %v1610_v53  ;;  %v623_v15 = vpop.permute.xlu1 %622 }
 0x433   : > { %v628_v18 = vsel %vm515_vm3, %v623_v15, 0 }
 0x434   : > { %v509_v16 = vpack.c.bf16 %v508_v12, %v508_v12  ;;  %v1603_v12 = vld [vmem:[#allocation8] sm:$0xff]  }
 0x436   : > { %v728_v10 = vpop.xlane.xlu0 %727 }
 0x437   : > { %1621 = vrcp.f32 %v728_v10 }
 0x439   : > { %v1620_v17 = vpop.eup %1619 }
 0x43a   : > { %v511_v13 = vpop.permute.xlu0 %510  ;;  %v620_v11 = vmul.f32 %v1620_v17, %v1612_v58  ;;  %v379_v58 = vunpack.c.l.bf16 %v2266_v3  ;;  %v1604_v3 = vld [vmem:[#allocation8 + $0x8] sm:$0xff]  }
 0x43b   : > { %v517_v14 = vsel %vm515_vm3, %v511_v13, 0  ;;  %v1605_v13 = vld [vmem:[#allocation11] sm:$0xff]  }
 0x43c   : > { %1405 = vmatpush3.bf16.msra.mxu0 %v517_v14  ;;  %v621_v19 = vpack.c.bf16 %v620_v11, %v620_v11  ;;  %v1606_v14 = vld [vmem:[#allocation11 + $0x8] sm:$0xff]   ;;  %v993_v11 = vsub.s32 3, %v2273_v5 }
 0x43d   : > { %1416 = vmatprep.subr.bf16.mxu0 %v1916_v0 }
 0x43e   : > { %v843_v25 = vpop.permute.xlu0 %842 }
 0x43f   : > { %1407 = vmatmul.mubr.msk.bf16.vlgmr.msra.gmra.mrb[4].mxu0 %vm451_vm2, %v509_v16  ;;  %v848_v27 = vsel %vm515_vm3, %v843_v25, 0 }
 0x440   : > { %1417 = vmatpush3.bf16.msra.mxu0 %v628_v18  ;;  %1418 = vmatprep.mubr.msk.bf16.mxu0 %vm1917_vm0, %v1916_v0  ;;  %v988_v18 = vsub.s32 2, %v2273_v5 }
 0x441   : > { %1428 = vmatprep.subr.bf16.mxu0 %v1916_v0  ;;  %v1622_v20 = vpop.eup %1621 }
 0x442   : > { %v730_v22 = vmul.f32 %v1622_v20, %v1614_v60 }
 0x444   : > { %v731_v26 = vpack.c.bf16 %v730_v22, %v730_v22  ;;  %v994_v22 = vrot.slane %v2276_v7, %v993_v11 }
 0x447   : > { %1419 = vmatmul.mubr.msk.bf16.vlgmr.msra.gmra.mrb[8].mxu0 %vm451_vm2, %v621_v19  ;;  %v989_v19 = vrot.slane %v2276_v7, %v988_v18 }
 0x448   : > { %1430 = vmatprep.mubr.msk.bf16.mxu0 %vm1917_vm0, %v1916_v0 }
 0x463   : > { %v838_v21 = vpop.xlane.xlu1 %837 }
 0x464   : > { %1623 = vrcp.f32 %v838_v21 }
 0x467   : > { %v733_v23 = vpop.permute.xlu1 %732 }
 0x468   : > { %v738_v24 = vsel %vm515_vm3, %v733_v23, 0 }
 0x469   : > { %1429 = vmatpush3.bf16.msra.mxu0 %v738_v24 }
 0x46a   : > { %1440 = vmatprep.subr.bf16.mxu0 %v1916_v0 }
 0x46c   : > { %1431 = vmatmul.mubr.msk.bf16.vlgmr.msra.gmra.mrb[12].mxu0 %vm451_vm2, %v731_v26  ;;  %v1607_v26 = vld [vmem:[#allocation11 + $0x10] sm:$0xff]  }
 0x46d   : > { %1441 = vmatpush3.bf16.msra.mxu0 %v848_v27  ;;  %1442 = vmatprep.mubr.msk.bf16.mxu0 %vm1917_vm0, %v1916_v0  ;;  %v1608_v27 = vld [vmem:[#allocation11 + $0x18] sm:$0xff]  }
 0x46e   : > { %v1624_v28 = vpop.eup %1623  ;;  %1454 = vmatprep.subr.bf16.mxu0 %v1916_v0 }
 0x46f   : > { %v840_v29 = vmul.f32 %v1624_v28, %v1616_v2  ;;  %v1347_v28 = vld [vmem:[#allocation10] ss:$0 sm:$0xff] }
 0x471   : > { %v841_v30 = vpack.c.bf16 %v840_v29, %v840_v29 }
 0x474   : > { %1443 = vmatmul.mubr.msk.bf16.vlgmr.msra.gmra.mrb[16].mxu0 %vm451_vm2, %v841_v30 }
 0x475   : > { %1458 = vmatprep.mubr.msk.bf16.mxu0 %vm1917_vm0, %v1916_v0  ;;  %1455 = vmatpush3.bf16.msra.mxu0 %v1603_v12 }
 0x476   : > { %1456 = vmatprep.subr.bf16.mxu0 %v1916_v0 }
 0x479   : > { %1457 = vmatpush3.bf16.msra.mxu0 %v1604_v3 }
 0x512   : > { %v553_v31 = vpop.f32.mrb[4].mxu0 }
 0x513   : > { %v1408_v32 = vpop.f32.mrb[5].mxu0 }
 0x514   : > { %v556_v33 = vpop.f32.mrb[6].mxu0 }
 0x515   : > { %v1409_v34 = vpop.f32.mrb[7].mxu0 }
 0x51a   : > { %v664_v35 = vpop.f32.mrb[8].mxu0 }
 0x51b   : > { %891 = vrot.lane.b32.xlu1 %v664_v35, %s1929_s20  ;;  %v1420_v36 = vpop.f32.mrb[9].mxu0 }
 0x51c   : > { %v667_v37 = vpop.f32.mrb[10].mxu0  ;;  %v1075_v36 = vsub.s32 4, %v2273_v5 }
 0x51d   : > { %v1421_v38 = vpop.f32.mrb[11].mxu0 }
 0x51e   : > { %v1076_v37 = vrot.slane %v2276_v7, %v1075_v36 }
 0x53f   : > { %v774_v41 = vpop.f32.mrb[12].mxu0 }
 0x540   : > { %895 = vrot.lane.b32.xlu0 %v774_v41, %s1930_s8  ;;  %v1432_v42 = vpop.f32.mrb[13].mxu0 }
 0x541   : > { %v777_v43 = vpop.f32.mrb[14].mxu0 }
 0x542   : > { %v1433_v44 = vpop.f32.mrb[15].mxu0 }
 0x547   : > { %v884_v45 = vpop.f32.mrb[16].mxu0 }
 0x548   : > { %899 = vrot.lane.b32.xlu1 %v884_v45, %s1931_s29  ;;  %v1444_v46 = vpop.f32.mrb[17].mxu0 }
 0x549   : > { %v887_v47 = vpop.f32.mrb[18].mxu0 }
 0x54a   : > { %v1445_v48 = vpop.f32.mrb[19].mxu0 }
 0x58d   : > { %v892_v49 = vpop.permute.xlu1 %891 }
 0x58e   : > { %v902_v51 = vsel %vm451_vm2, %v553_v31, %v892_v49 }
 0x5b2   : > { %v896_v50 = vpop.permute.xlu0 %895 }
 0x5b3   : > { %v904_v52 = vsel %vm903_vm4, %v902_v51, %v896_v50 }
 0x5ba   : > { %v900_v53 = vpop.permute.xlu1 %899 }
 0x5bb   : > { %v906_v54 = vsel %vm905_vm5, %v904_v52, %v900_v53  ;;  %v1161_v52 = vsub.s32 5, %v2273_v5  ;;  %v1166_v53 = vsub.s32 6, %v2273_v5 }
 0x5bc   : > { %v907_v55 = vpack.c.bf16 %v906_v54, %v906_v54 }
 0x5bd   : > { %v1162_v54 = vrot.slane %v2276_v7, %v1161_v52 }
 0x5be   : > { %1451 = vmatmul.mubr.msk.bf16.vlgmr.msra.gmra.mrb[16].mxu1 %vm397_vm1, %v907_v55 }
 0x5bf   : > { %1470 = vmatprep.mubr.msk.bf16.mxu1 %vm1917_vm0, %v1916_v0  ;;  %1463 = vmatpush3.bf16.msra.mxu1 %v1605_v13 }
 0x5c0   : > { %1464 = vmatprep.subr.bf16.mxu1 %v1916_v0 }
 0x5c3   : > { %1465 = vmatpush3.bf16.msra.mxu1 %v1606_v14 }
 0x5c4   : > { %1466 = vmatprep.subr.bf16.mxu1 %v1916_v0 }
 0x5c7   : > { %1467 = vmatpush3.bf16.msra.mxu1 %v1607_v26 }
 0x5c8   : > { %1468 = vmatprep.subr.bf16.mxu1 %v1916_v0 }
 0x5cb   : > { %1469 = vmatpush3.bf16.msra.mxu1 %v1608_v27 }
 0x691   : > { %v965_v59 = vpop.f32.mrb[16].mxu1 }
 0x692   : > { %v966_v60 = vadd.f32 %v965_v59, %v915_v57  ;;  %v1452_v61 = vpop.f32.mrb[17].mxu1  ;;  %v1167_v57 = vrot.slane %v2276_v7, %v1166_v53 }
 0x693   : > { %v968_v62 = vpop.f32.mrb[18].mxu1 }
 0x694   : > { %v1453_v63 = vpop.f32.mrb[19].mxu1  ;;  %v971_v1 = vadd.f32 %v966_v60, %v379_v58 }
 0x696   : > { %v972_v2 = vsel %vm397_vm1, %v971_v1, 0.0 }
 0x697   : > { %973 = vadd.xlane.f32.xlu0 %v972_v2 }
 0x724   : > { %v974_v4 = vpop.xlane.xlu0 %973 }
 0x725   : > { %v976_v6 = vmul.f32 0.03125, %v974_v4 }
 0x727   : > { %v977_v8 = vsub.f32 %v971_v1, %v976_v6 }
 0x729   : > { %v978_v9 = vmul.f32 %v977_v8, %v977_v8 }
 0x72b   : > { %v979_v10 = vsel %vm397_vm1, %v978_v9, 0.0 }
 0x72c   : > { %980 = vadd.xlane.f32.xlu1 %v979_v10 }
 0x7b9   : > { %v981_v15 = vpop.xlane.xlu1 %980 }
 0x7ba   : > { %v982_v16 = vmul.f32 0.03125, %v981_v15 }
 0x7bc   : > { %v983_v17 = vadd.f32 1e-05, %v982_v16 }
 0x7be   : > { %1625 = vrsqrt.f32 %v983_v17 }
 0x7c8   : > { %v1626_v20 = vpop.eup %1625 }
 0x7c9   : > { %v985_v21 = vmul.f32 %v1626_v20, %v977_v8 }
 0x7cb   : > { %v990_v23 = vmul.f32 %v989_v19, %v985_v21 }
 0x7cd   : > { %v995_v24 = vadd.f32 %v994_v22, %v990_v23 }
 0x7cf   : > { %v996_v25 = vpack.c.bf16 %v995_v24, %v995_v24 }
 0x7d1   : > { %1459 = vmatmul.mubr.msk.bf16.vlgmr.msra.gmra.mrb[20].mxu0 %vm397_vm1, %v996_v25 }
 0x8a4   : > { %v1057_v29 = vpop.f32.mrb[20].mxu0 }
 0x8a5   : > { %v1058_v30 = vadd.f32 %v1347_v28, %v1057_v29  ;;  %v1460_v31 = vpop.f32.mrb[21].mxu0 }
 0x8a6   : > { %v1060_v32 = vpop.f32.mrb[22].mxu0 }
 0x8a7   : > { %v1063_v33 = vmax.f32 %v1058_v30, 0.0  ;;  %v1461_v34 = vpop.f32.mrb[23].mxu0 }
 0x8a9   : > { %v1064_v35 = vpack.c.bf16 %v1063_v33, %v1063_v33 }
 0x8ab   : > { %1471 = vmatmul.mubr.msk.bf16.vlgmr.msra.gmra.mrb[20].mxu1 %vm1101_vm6, %v1064_v35 }
 0x97e   : > { %v1139_v38 = vpop.f32.mrb[20].mxu1 }
 0x97f   : > { %v1140_v39 = vadd.f32 %v1139_v38, %v1076_v37  ;;  %v1472_v40 = vpop.f32.mrb[21].mxu1 }
 0x980   : > { %v1142_v0 = vpop.f32.mrb[22].mxu1 }
 0x981   : > { %v1473_v41 = vpop.f32.mrb[23].mxu1  ;;  %v1145_v42 = vadd.f32 %v1140_v39, %v995_v24 }
 0x983   : > { %v1146_v43 = vsel %vm397_vm1, %v1145_v42, 0.0 }
 0x984   : > { %1147 = vadd.xlane.f32.xlu0 %v1146_v43 }
 0xa11   : > { %v1148_v44 = vpop.xlane.xlu0 %1147 }
 0xa12   : > { %v1149_v45 = vmul.f32 0.03125, %v1148_v44 }
 0xa14   : > { %v1150_v46 = vsub.f32 %v1145_v42, %v1149_v45 }
 0xa16   : > { %v1151_v47 = vmul.f32 %v1150_v46, %v1150_v46 }
 0xa18   : > { %v1152_v48 = vsel %vm397_vm1, %v1151_v47, 0.0 }
 0xa19   : > { %1153 = vadd.xlane.f32.xlu0 %v1152_v48 }
 0xaa6   : > { %v1154_v49 = vpop.xlane.xlu0 %1153 }
 0xaa7   : > { %v1155_v50 = vmul.f32 0.03125, %v1154_v49 }
 0xaa9   : > { %v1156_v51 = vadd.f32 1e-05, %v1155_v50 }
 0xaab   : > { %1627 = vrsqrt.f32 %v1156_v51 }
 0xab5   : > { %v1628_v55 = vpop.eup %1627 }
 0xab6   : > { %v1158_v56 = vmul.f32 %v1628_v55, %v1150_v46 }
 0xab8   : > { %v1163_v58 = vmul.f32 %v1162_v54, %v1158_v56 }
 0xaba   : > { %v1168_v59 = vadd.f32 %v1167_v57, %v1163_v58 }
 0xabc   : > { %v1169_v60 = vpack.c.bf16 %v1168_v59, %v1168_v59 }
 0xabe   : > { %1171 = vst.msk [vmem:[%s376_s21] sm:$0xf] %vm1170_vm7, %v1169_v60 }
 0xabf   : > { %1840 = shalt.err (!%p1837_p3)
}
 0xac0   : > { %s1841_s28 = scalar_lea.hbm %s2371_s10, 64  ;;  %s1845_s29 = scalar_lea.hbm %s2422_s7, 128 }
 0xac1   : > { %p1842_p4 = scmp.ne.s32.totalorder %s2371_s10, %s1841_s28  ;;  %p1846_p8 = scmp.lt.u32.totalorder %s2371_s10, %s2422_s7 }
 0xac2   : > { %p1847_p5 = scmp.lt.u32.totalorder %s1845_s29, %s1841_s28  ;;  %p1849_p6 = scmp.lt.u32.totalorder %s1841_s28, %s2371_s10 }
 0xac3   : > { %p1843_p10 = pnand %p1842_p4, %p2442_p9 }
 0xac4   : > { %p1848_p7 = por %p1847_p5, %p1846_p8 }
 0xac5   : > { %p1844_p11 = pneg %p1843_p10 }
 0xac6   : > { %p1850_p12 = por %p1849_p6, %p1848_p7 }
 0xac8   : > { %p1851_p1 = pnand %p1850_p12, %p1844_p11 }
 0xaca   : > { %1854 = shalt.err (!%p1851_p1)
}
 0xacb   : > { %1500 = dma.vmem_to_hbm [thread:$0]  (%p2442_p9), %s2373_s19, 64, %s2371_s10, %s1173_s16  }
 0xacc PF: > { %s1198_s23 = sand.u32 1, %s1893_s24   ;;  %p2443_p13 = scmp.ne.s32.totalorder %s2433_s15, 0 }
 0xacd   : > { %p2444_p0 = scmp.ge.s32.totalorder %s1905_s27, 2  ;;  %s1199_s22 = scalar_lea.sflag [#allocation4], %s1198_s23 }
 0xacf   : > { %p1526_p2 = pnand %p2444_p0, %p2443_p13 }
 0xad1   : > { %1888 = dma.done.wait (!%p1526_p2), %s1199_s22, 64  }
 0xad2   : > { %1890 = vsyncadd (!%p1526_p2), %s1199_s22, 4294967232  ;;  %p23_p3 = scmp.ge.s32.totalorder %s2161_s11, 4   ;;  %s2445_s24 = smov %s1897_s25 }
 0xad3   : > { %s2446_s25 = smov %s1901_s26  ;;  %s2447_s26 = smov %s2172_s9 }
 0xad4   : > { %s2448_s27 = smov %s2161_s11  ;;  %25 = sbr.rel (!%p23_p3) target bundleno = 8 (0x8), region = 117 }
 0xadb   :  { %1204 = vsyncpa [#allocation3], 1 }
 0xadc   :  { %1206 = vsyncpa [#allocation3 + $0x1], 1 }
 0xadd   :  { %1207 = vsyncpa [#allocation6], 1 }
 0xade   :  { %1208 = vsyncpa [#allocation9], 1 }
 0xadf   :  { %1209 = vsyncpa [#allocation12], 1 }
 0xae0   :  { %1210 = vsyncpa [#allocation4], 1 }
 0xae1   :  { %1212 = vsyncpa [#allocation4 + $0x1], 1 }

// kernel: multimodal_forward.9
= control target key start
LH: loop header
LB: loop body
LE: loop exit
PB: predicated region body
PF: predicated region fallthrough
CT: control target
= control target key end

     0   :  { %s7915_s0 = inlined_call_operand.hbm [shape: bf16[16,32], index: 0, kind: input, shape index: {}]   ;;  %s7916_s1 = inlined_call_operand.hbm [shape: bf16[16,32], index: 1, kind: input, shape index: {}]   ;;  %s7917_s2 = inlined_call_operand.hbm [shape: bf16[32,32], index: 2, kind: input, shape index: {}]   ;;  %s7918_s3 = inlined_call_operand.hbm [shape: f32[1,32], index: 3, kind: input, shape index: {}]   ;;  %s7919_s4 = inlined_call_operand.hbm [shape: bf16[32,64], index: 4, kind: input, shape index: {}]   ;;  %s7920_s5 = inlined_call_operand.hbm [shape: bf16[32,32], index: 5, kind: input, shape index: {}]   ;;  %s7921_s6 = inlined_call_operand.hbm [shape: bf16[32,32], index: 6, kind: input, shape index: {}]   ;;  %s7922_s7 = inlined_call_operand.hbm [shape: f32[1,32], index: 7, kind: input, shape index: {}]   ;;  %s7923_s8 = inlined_call_operand.hbm [shape: bf16[32,64], index: 8, kind: input, shape index: {}]   ;;  %s7924_s9 = inlined_call_operand.hbm [shape: bf16[32,32], index: 9, kind: input, shape index: {}]   ;;  %s7925_s10 = inlined_call_operand.hbm [shape: f32[1,32], index: 10, kind: input, shape index: {}]   ;;  %s7926_s11 = inlined_call_operand.hbm [shape: f32[16,32], index: 11, kind: output, shape index: {}]  }
   0x1   :  { %7934 = sst [smem:[#allocation30_spill]] %s7916_s1 }
   0x2   :  { %7935 = sst [smem:[#allocation31_spill]] %s7917_s2 }
   0x3   :  { %7936 = sst [smem:[#allocation32_spill]] %s7918_s3 }
   0x4   :  { %7937 = sst [smem:[#allocation33_spill]] %s7919_s4 }
   0x5   :  { %7938 = sst [smem:[#allocation34_spill]] %s7920_s5 }
   0x6   :  { %7939 = sst [smem:[#allocation35_spill]] %s7921_s6 }
   0x7   :  { %7940 = sst [smem:[#allocation36_spill]] %s7922_s7 }
   0x8   :  { %7941 = sst [smem:[#allocation37_spill]] %s7926_s11 }
   0x9   :  { %16 = vsyncpa [#allocation3], 0 }
   0xa   :  { %18 = vsyncpa [#allocation3 + $0x1], 0 }
   0xb   :  { %19 = vsyncpa [#allocation6], 0 }
   0xc   :  { %21 = vsyncpa [#allocation6 + $0x1], 0 }
   0xd   :  { %22 = vsyncpa [#allocation9], 0 }
   0xe   :  { %23 = vsyncpa [#allocation12], 0 }
   0xf   :  { %24 = vsyncpa [#allocation15], 0 }
  0x10   :  { %25 = vsyncpa [#allocation18], 0 }
  0x11   :  { %26 = vsyncpa [#allocation4], 0 }
  0x12   :  { %28 = vsyncpa [#allocation4 + $0x1], 0  ;;  %s6606_s17 = smov 0   ;;  %s6608_s18 = smov 0  }
  0x13   :  { %s6610_s19 = smov 0   ;;  %s6612_s20 = smov 0  }
  0x14 LB: > { %s6518_s21 = smov [#allocation7]   ;;  %s6627_s23 = sadd.s32 4294967295, %s6516_s20   ;;  %s6516_s20 = sphi %s6612_s20, %s7978_s20   ;;  %s6512_s19 = sphi %s6610_s19, %s7977_s19   ;;  %s6508_s18 = sphi %s6608_s18, %s7976_s18   ;;  %s6504_s17 = sphi %s6606_s17, %s7975_s17  }
  0x15   : > { %s318_s22 = sshll.u32 %s6518_s21, 4  ;;  %p5119_p0 = scmp.ge.s32.totalorder %s6516_s20, 1  ;;  %s6632_s22 = int_to_ptr.vmem [resolvable:$true] %s318_s22 }
  0x16   : > { %p7930_p1 = scmp.eq.s32.totalorder %s6627_s23, 0  ;;  %p306_p2 = scmp.lt.s32.totalorder %s6516_s20, 3 }
  0x17   : > { %s6519_s25 = smov [#allocation8]   ;;  %s6520_s28 = smov [#allocation11]  }
  0x18   : > { %p6634_p3 = pnand %p5119_p0, %p306_p2  ;;  %s332_s26 = sshll.u32 %s6519_s25, 4  ;;  %s6647_s26 = int_to_ptr.vmem [resolvable:$true] %s332_s26 }
  0x19   : > { %s355_s29 = sshll.u32 %s6520_s28, 4  ;;  %s7945_s2 = sld [smem:[#allocation31_spill]]  ;;  %s6649_s29 = int_to_ptr.vmem [resolvable:$true] %s355_s29 }
  0x1a   : > { %s7942_s24 = scalar_select %p6634_p3, 1, 0 }
  0x1b   : > { %p5856_p5 = pneg %p6634_p3 }
  0x1c   : > { %7943 = sst [smem:[#allocation29_spill]] %s7942_s24 }
  0x1d   : > { %p6643_p6 = pnand %p5856_p5, %p7930_p1 }
  0x1f   : > { %s6114_s13 = scalar_lea.hbm %s7945_s2, 256  ;;  %p6659_p8 = pneg %p6643_p6 }
  0x20   : > { %p6115_p7 = scmp.ne.s32.totalorder %s7945_s2, %s6114_s13  ;;  %p6121_p11 = scmp.lt.u32.totalorder %s6114_s13, %s7945_s2 }
  0x22   : > { %p6117_p9 = pnand %p6659_p8, %p6115_p7 }
  0x24   : > { %p6118_p10 = pneg %p6117_p9 }
  0x26   : > { %p6123_p12 = pnand %p6121_p11, %p6118_p10 }
  0x28   : > { %6126 = shalt.err (!%p6123_p12)
}
  0x29   : > { %s6127_s28 = scalar_lea.vmem %s6632_s22, 256  ;;  %p6135_p5 = scmp.lt.s32.totalorder %s6632_s22, %s6632_s22 }
  0x2a   : > { %p6128_p13 = scmp.ne.s32.totalorder %s6632_s22, %s6127_s28  ;;  %p6136_p4 = scmp.lt.s32.totalorder %s6127_s28, %s6127_s28 }
  0x2c   : > { %p6130_p0 = pnand %p6128_p13, %p6659_p8  ;;  %p6137_p7 = por %p6136_p4, %p6135_p5 }
  0x2e   : > { %p6131_p2 = pneg %p6130_p0 }
  0x30   : > { %p6138_p9 = pnand %p6137_p7, %p6131_p2 }
  0x32   : > { %6141 = shalt.err (!%p6138_p9)
}
  0x33   : > { %s6521_s30 = smov 64   ;;  %s6522_s12 = smov 4  }
  0x34   : > { %5859 = dma.hbm_to_vmem [thread:$0]  (!%p6643_p6), %s7945_s2, 256, %s6632_s22, [#allocation6], %s6521_s30, %s6521_s30, %s6522_s12  }
  0x35   : > { %s7947_s3 = sld [smem:[#allocation32_spill]] }
  0x3b   : > { %s6142_s25 = scalar_lea.hbm %s7947_s3, 16 }
  0x3c   : > { %p6143_p4 = scmp.ne.s32.totalorder %s7947_s3, %s6142_s25  ;;  %p6149_p12 = scmp.lt.u32.totalorder %s6142_s25, %s7947_s3 }
  0x3e   : > { %p6145_p10 = pnand %p6143_p4, %p6659_p8 }
  0x40   : > { %p6146_p11 = pneg %p6145_p10 }
  0x42   : > { %p6151_p13 = pnand %p6149_p12, %p6146_p11 }
  0x44   : > { %6154 = shalt.err (!%p6151_p13)
}
  0x45   : > { %s6155_s22 = scalar_lea.vmem %s6647_s26, 16  ;;  %s6162_s11 = scalar_lea.vmem %s6647_s26, 32 }
  0x46   : > { %p6156_p0 = scmp.ne.s32.totalorder %s6647_s26, %s6155_s22  ;;  %p6163_p7 = scmp.lt.s32.totalorder %s6647_s26, %s6647_s26 }
  0x47   : > { %p6164_p9 = scmp.lt.s32.totalorder %s6162_s11, %s6155_s22 }
  0x48   : > { %p6158_p2 = pnand %p6156_p0, %p6659_p8 }
  0x49   : > { %p6165_p4 = por %p6164_p9, %p6163_p7 }
  0x4a   : > { %p6159_p5 = pneg %p6158_p2 }
  0x4c   : > { %p6166_p10 = pnand %p6165_p4, %p6159_p5 }
  0x4e   : > { %6169 = shalt.err (!%p6166_p10)
}
  0x4f   : > { %5862 = dma.hbm_to_vmem [thread:$0]  (!%p6643_p6), %s7947_s3, 16, %s6647_s26, [#allocation9]  }
  0x50   : > { %s7948_s5 = sld [smem:[#allocation34_spill]] }
  0x56   : > { %s6170_s15 = scalar_lea.hbm %s7948_s5, 256 }
  0x57   : > { %p6171_p11 = scmp.ne.s32.totalorder %s7948_s5, %s6170_s15  ;;  %p6177_p0 = scmp.lt.u32.totalorder %s6170_s15, %s7948_s5 }
  0x59   : > { %p6173_p12 = pnand %p6171_p11, %p6659_p8 }
  0x5b   : > { %p6174_p13 = pneg %p6173_p12 }
  0x5d   : > { %p6179_p2 = pnand %p6177_p0, %p6174_p13 }
  0x5f   : > { %6182 = shalt.err (!%p6179_p2)
}
  0x60   : > { %s6183_s26 = scalar_lea.vmem %s6649_s29, 256  ;;  %p6191_p4 = scmp.lt.s32.totalorder %s6649_s29, %s6649_s29 }
  0x61   : > { %p6184_p5 = scmp.ne.s32.totalorder %s6649_s29, %s6183_s26  ;;  %p6192_p10 = scmp.lt.s32.totalorder %s6183_s26, %s6183_s26 }
  0x63   : > { %p6186_p7 = pnand %p6184_p5, %p6659_p8  ;;  %p6193_p11 = por %p6192_p10, %p6191_p4 }
  0x65   : > { %p6187_p9 = pneg %p6186_p7 }
  0x67   : > { %p6194_p12 = pnand %p6193_p11, %p6187_p9 }
  0x69   : > { %6197 = shalt.err (!%p6194_p12)
}
  0x6a   : > { %5868 = dma.hbm_to_vmem [thread:$0]  (!%p6643_p6), %s7948_s5, 256, %s6649_s29, [#allocation12], %s6521_s30, %s6521_s30, %s6522_s12  }
  0x6b   : > { %s6523_s24 = smov [#allocation14]   ;;  %s6524_s14 = smov [#allocation17]  }
  0x6c   : > { %s382_s13 = sshll.u32 %s6523_s24, 4  ;;  %s405_s15 = sshll.u32 %s6524_s14, 4  ;;  %s383_s13 = int_to_ptr.vmem [resolvable:$true] %s382_s13  ;;  %s406_s15 = int_to_ptr.vmem [resolvable:$true] %s405_s15 }
  0x6d   : > { %s7949_s7 = sld [smem:[#allocation36_spill]] }
  0x73   : > { %s6198_s28 = scalar_lea.hbm %s7949_s7, 16 }
  0x74   : > { %p6199_p13 = scmp.ne.s32.totalorder %s7949_s7, %s6198_s28  ;;  %p6205_p5 = scmp.lt.u32.totalorder %s6198_s28, %s7949_s7 }
  0x76   : > { %p6201_p0 = pnand %p6199_p13, %p6659_p8 }
  0x78   : > { %p6202_p2 = pneg %p6201_p0 }
  0x7a   : > { %p6207_p7 = pnand %p6205_p5, %p6202_p2 }
  0x7c   : > { %6210 = shalt.err (!%p6207_p7)
}
  0x7d   : > { %s6211_s29 = scalar_lea.vmem %s383_s13, 16  ;;  %s6218_s1 = scalar_lea.vmem %s383_s13, 32 }
  0x7e   : > { %p6212_p9 = scmp.ne.s32.totalorder %s383_s13, %s6211_s29  ;;  %p6219_p11 = scmp.lt.s32.totalorder %s383_s13, %s383_s13 }
  0x7f   : > { %p6220_p12 = scmp.lt.s32.totalorder %s6218_s1, %s6211_s29 }
  0x80   : > { %p6214_p4 = pnand %p6212_p9, %p6659_p8 }
  0x81   : > { %p6221_p1 = por %p6220_p12, %p6219_p11 }
  0x82   : > { %p6215_p10 = pneg %p6214_p4 }
  0x84   : > { %p6222_p3 = pnand %p6221_p1, %p6215_p10 }
  0x86   : > { %6225 = shalt.err (!%p6222_p3)
}
  0x87   : > { %5874 = dma.hbm_to_vmem [thread:$0]  (!%p6643_p6), %s7949_s7, 16, %s383_s13, [#allocation15]  }
  0x88   : > { %s6226_s25 = scalar_lea.hbm %s7924_s9, 256 }
  0x89   : > { %p6227_p13 = scmp.ne.s32.totalorder %s7924_s9, %s6226_s25  ;;  %p6233_p3 = scmp.lt.u32.totalorder %s6226_s25, %s7924_s9 }
  0x8b   : > { %p6229_p0 = pnand %p6227_p13, %p6659_p8 }
  0x8d   : > { %p6230_p1 = pneg %p6229_p0 }
  0x8f   : > { %p6235_p2 = pnand %p6233_p3, %p6230_p1 }
  0x91   : > { %6238 = shalt.err (!%p6235_p2)
}
  0x92   : > { %s6239_s29 = scalar_lea.vmem %s406_s15, 256  ;;  %p6247_p4 = scmp.lt.s32.totalorder %s406_s15, %s406_s15 }
  0x93   : > { %p6240_p5 = scmp.ne.s32.totalorder %s406_s15, %s6239_s29  ;;  %p6248_p10 = scmp.lt.s32.totalorder %s6239_s29, %s6239_s29 }
  0x95   : > { %p6242_p7 = pnand %p6240_p5, %p6659_p8  ;;  %p6249_p11 = por %p6248_p10, %p6247_p4 }
  0x97   : > { %p6243_p9 = pneg %p6242_p7 }
  0x99   : > { %p6250_p12 = pnand %p6249_p11, %p6243_p9 }
  0x9b   : > { %6253 = shalt.err (!%p6250_p12)
}
  0x9c   : > { %5880 = dma.hbm_to_vmem [thread:$0]  (!%p6643_p6), %s7924_s9, 256, %s406_s15, [#allocation18], %s6521_s30, %s6521_s30, %s6522_s12  }
  0x9d   : > { %s6525_s24 = smov [#allocation10]   ;;  %s6526_s2 = smov [#allocation13]  }
  0x9e   : > { %s342_s14 = sshll.u32 %s6525_s24, 4  ;;  %s368_s21 = sshll.u32 %s6526_s2, 4  ;;  %s343_s14 = int_to_ptr.vmem [resolvable:$true] %s342_s14  ;;  %s369_s21 = int_to_ptr.vmem [resolvable:$true] %s368_s21 }
  0x9f   : > { %s7950_s4 = sld [smem:[#allocation33_spill]] }
  0xa5   : > { %s6254_s22 = scalar_lea.hbm %s7950_s4, 256 }
  0xa6   : > { %p6255_p13 = scmp.ne.s32.totalorder %s7950_s4, %s6254_s22  ;;  %p6261_p3 = scmp.lt.u32.totalorder %s6254_s22, %s7950_s4 }
  0xa8   : > { %p6257_p0 = pnand %p6255_p13, %p6659_p8 }
  0xaa   : > { %p6258_p1 = pneg %p6257_p0 }
  0xac   : > { %p6263_p2 = pnand %p6261_p3, %p6258_p1 }
  0xae   : > { %6266 = shalt.err (!%p6263_p2)
}
  0xaf   : > { %s6267_s15 = scalar_lea.vmem %s343_s14, 256  ;;  %p6275_p4 = scmp.lt.s32.totalorder %s343_s14, %s343_s14 }
  0xb0   : > { %p6268_p5 = scmp.ne.s32.totalorder %s343_s14, %s6267_s15  ;;  %p6276_p10 = scmp.lt.s32.totalorder %s6267_s15, %s6267_s15 }
  0xb2   : > { %p6270_p7 = pnand %p6268_p5, %p6659_p8  ;;  %p6277_p11 = por %p6276_p10, %p6275_p4 }
  0xb4   : > { %p6271_p9 = pneg %p6270_p7 }
  0xb6   : > { %p6278_p12 = pnand %p6277_p11, %p6271_p9 }
  0xb8   : > { %6281 = shalt.err (!%p6278_p12)
}
  0xb9   : > { %5865 = dma.hbm_to_vmem [thread:$0]  (!%p6643_p6), %s7950_s4, 256, %s343_s14, [#allocation9], %s6521_s30, %s6521_s30, %s6522_s12  }
  0xba   : > { %s7951_s6 = sld [smem:[#allocation35_spill]] }
  0xc0   : > { %s6282_s28 = scalar_lea.hbm %s7951_s6, 256 }
  0xc1   : > { %p6283_p13 = scmp.ne.s32.totalorder %s7951_s6, %s6282_s28  ;;  %p6289_p3 = scmp.lt.u32.totalorder %s6282_s28, %s7951_s6 }
  0xc3   : > { %p6285_p0 = pnand %p6283_p13, %p6659_p8 }
  0xc5   : > { %p6286_p1 = pneg %p6285_p0 }
  0xc7   : > { %p6291_p2 = pnand %p6289_p3, %p6286_p1 }
  0xc9   : > { %6294 = shalt.err (!%p6291_p2)
}
  0xca   : > { %s6295_s13 = scalar_lea.vmem %s369_s21, 256  ;;  %p6303_p4 = scmp.lt.s32.totalorder %s369_s21, %s369_s21 }
  0xcb   : > { %p6296_p5 = scmp.ne.s32.totalorder %s369_s21, %s6295_s13  ;;  %p6304_p10 = scmp.lt.s32.totalorder %s6295_s13, %s6295_s13 }
  0xcd   : > { %p6298_p7 = pnand %p6296_p5, %p6659_p8  ;;  %p6305_p11 = por %p6304_p10, %p6303_p4 }
  0xcf   : > { %p6299_p9 = pneg %p6298_p7 }
  0xd1   : > { %p6306_p12 = pnand %p6305_p11, %p6299_p9 }
  0xd3   : > { %6309 = shalt.err (!%p6306_p12)
}
  0xd4   : > { %5871 = dma.hbm_to_vmem [thread:$0]  (!%p6643_p6), %s7951_s6, 256, %s369_s21, [#allocation12], %s6521_s30, %s6521_s30, %s6522_s12  }
  0xd5   : > { %s6527_s1 = smov [#allocation16]   ;;  %s6528_s2 = smov [#allocation19]  }
  0xd6   : > { %s392_s24 = sshll.u32 %s6527_s1, 4  ;;  %s419_s25 = sshll.u32 %s6528_s2, 4  ;;  %s393_s24 = int_to_ptr.vmem [resolvable:$true] %s392_s24  ;;  %s420_s25 = int_to_ptr.vmem [resolvable:$true] %s419_s25 }
  0xd7   : > { %s6310_s26 = scalar_lea.hbm %s7923_s8, 256 }
  0xd8   : > { %p6311_p13 = scmp.ne.s32.totalorder %s7923_s8, %s6310_s26  ;;  %p6317_p3 = scmp.lt.u32.totalorder %s6310_s26, %s7923_s8 }
  0xda   : > { %p6313_p0 = pnand %p6311_p13, %p6659_p8 }
  0xdc   : > { %p6314_p1 = pneg %p6313_p0 }
  0xde   : > { %p6319_p2 = pnand %p6317_p3, %p6314_p1 }
  0xe0   : > { %6322 = shalt.err (!%p6319_p2)
}
  0xe1   : > { %s6323_s21 = scalar_lea.vmem %s393_s24, 256  ;;  %p6331_p4 = scmp.lt.s32.totalorder %s393_s24, %s393_s24 }
  0xe2   : > { %p6324_p5 = scmp.ne.s32.totalorder %s393_s24, %s6323_s21  ;;  %p6332_p10 = scmp.lt.s32.totalorder %s6323_s21, %s6323_s21 }
  0xe4   : > { %p6326_p7 = pnand %p6324_p5, %p6659_p8  ;;  %p6333_p11 = por %p6332_p10, %p6331_p4 }
  0xe6   : > { %p6327_p9 = pneg %p6326_p7 }
  0xe8   : > { %p6334_p12 = pnand %p6333_p11, %p6327_p9 }
  0xea   : > { %6337 = shalt.err (!%p6334_p12)
}
  0xeb   : > { %5877 = dma.hbm_to_vmem [thread:$0]  (!%p6643_p6), %s7923_s8, 256, %s393_s24, [#allocation15], %s6521_s30, %s6521_s30, %s6522_s12  }
  0xec   : > { %s6338_s22 = scalar_lea.hbm %s7925_s10, 16 }
  0xed   : > { %p6339_p13 = scmp.ne.s32.totalorder %s7925_s10, %s6338_s22  ;;  %p6345_p3 = scmp.lt.u32.totalorder %s6338_s22, %s7925_s10 }
  0xef   : > { %p6341_p0 = pnand %p6339_p13, %p6659_p8 }
  0xf1   : > { %p6342_p1 = pneg %p6341_p0 }
  0xf3   : > { %p6347_p2 = pnand %p6345_p3, %p6342_p1 }
  0xf5   : > { %6350 = shalt.err (!%p6347_p2)
}
  0xf6   : > { %s6351_s14 = scalar_lea.vmem %s420_s25, 16  ;;  %s6358_s30 = scalar_lea.vmem %s420_s25, 32 }
  0xf7   : > { %p6352_p5 = scmp.ne.s32.totalorder %s420_s25, %s6351_s14  ;;  %p6359_p4 = scmp.lt.s32.totalorder %s420_s25, %s420_s25 }
  0xf8   : > { %p6360_p10 = scmp.lt.s32.totalorder %s6358_s30, %s6351_s14 }
  0xf9   : > { %p6354_p7 = pnand %p6352_p5, %p6659_p8 }
  0xfa   : > { %p6361_p11 = por %p6360_p10, %p6359_p4 }
  0xfb   : > { %p6355_p9 = pneg %p6354_p7 }
  0xfd   : > { %p6362_p12 = pnand %p6361_p11, %p6355_p9 }
  0xff   : > { %6365 = shalt.err (!%p6362_p12)
}
 0x100   : > { %5883 = dma.hbm_to_vmem [thread:$0]  (!%p6643_p6), %s7925_s10, 16, %s420_s25, [#allocation18]  }
 0x101   : > { %s5118_s16 = sadd.s32 4294967294, %s6516_s20   ;;  %s6855_s27 = sadd.s32 1, %s6516_s20  }
 0x102   : > { %s41_s21 = sadd.s32 1, %s6512_s19  ;;  %s38_s15 = ssub.s32 %s6516_s20, %s6855_s27 }
 0x103   : > { %p48_p8 = scmp.ne.s32.totalorder %s6512_s19, %s6508_s18  ;;  %p39_p13 = scmp.eq.s32.totalorder %s38_s15, 0 }
 0x104   : > { %p49_p0 = scmp.eq.s32.totalorder %s6516_s20, 0  ;;  %p54_p1 = scmp.ne.s32.totalorder %s6508_s18, %s6504_s17 }
 0x105   : > { %p293_p3 = scmp.eq.s32.totalorder %s6627_s23, 1  ;;  %p7952_p5 = scmp.eq.s32.totalorder %s6627_s23, 0 }
 0x106   : > { %s6867_s1 = scalar_select %p39_p13, %s6512_s19, %s41_s21  }
 0x107   : > { %p50_p2 = por %p49_p0, %p48_p8  ;;  %p6871_p7 = por %p7952_p5, %p54_p1 }
 0x108   : > { %p6875_p6 = por %p293_p3, %p48_p8  ;;  %p299_p9 = scmp.eq.s32.totalorder %s5118_s16, 1 }
 0x109   : > { %s7953_s2 = scalar_select %p6871_p7, 1, 0 }
 0x10a   : > { %s7954_s25 = scalar_select %p6875_p6, 1, 0 }
 0x10b   : > { %p5904_p4 = scmp.lt.s32.totalorder %s6516_s20, 2  ;;  %s430_s28 = sand.u32 1, %s6512_s19  }
 0x10c   : > { %p6881_p10 = por %p299_p9, %p54_p1  ;;  %s6885_s26 = sshll.u32 %s430_s28, 2 }
 0x10d   : > { %s5131_s11 = sshll.u32 %s6516_s20, 6  ;;  %s434_s30 = scalar_lea.vmem [#allocation2], %s6885_s26 }
 0x10e   : > { %s7955_s22 = scalar_select %p6881_p10, 1, 0 }
 0x10f   : > { %s6891_s14 = scalar_lea.hbm %s7915_s0, %s5131_s11  ;;  %s441_s12 = sshll.u32 %s434_s30, 4  ;;  %s6898_s12 = int_to_ptr.vmem [resolvable:$true] %s441_s12 }
 0x110   : > { %p6894_p11 = pnand %p5904_p4, %p50_p2  ;;  %s7957_s15 = sld [smem:[#allocation30_spill]] }
 0x111   : > { %s431_s13 = scalar_lea.sflag [#allocation3], %s430_s28  ;;  %s6366_s3 = scalar_lea.hbm %s6891_s14, 64 }
 0x112   : > { %p6367_p12 = scmp.ne.s32.totalorder %s6891_s14, %s6366_s3  ;;  %p6368_p8 = pneg %p6894_p11 }
 0x113   : > { %s6371_s5 = scalar_lea.hbm %s7915_s0, 128  ;;  %p6372_p1 = scmp.lt.u32.totalorder %s6891_s14, %s7915_s0 }
 0x114   : > { %p6369_p13 = pnand %p6368_p8, %p6367_p12  ;;  %p6373_p3 = scmp.lt.u32.totalorder %s6371_s5, %s6366_s3 }
 0x115   : > { %p6375_p5 = scmp.lt.u32.totalorder %s6366_s3, %s6891_s14 }
 0x116   : > { %s6903_s29 = scalar_lea.hbm %s7957_s15, %s5131_s11  ;;  %p6370_p0 = pneg %p6369_p13 }
 0x117   : > { %p6374_p2 = por %p6373_p3, %p6372_p1 }
 0x119   : > { %p6376_p9 = por %p6375_p5, %p6374_p2 }
 0x11b   : > { %p6377_p4 = pnand %p6376_p9, %p6370_p0 }
 0x11d   : > { %6380 = shalt.err (!%p6377_p4)
}
 0x11e   : > { %s6381_s28 = scalar_lea.vmem %s6898_s12, 64  ;;  %s6529_s4 = smov [#allocation2]  }
 0x11f   : > { %p6382_p12 = scmp.ne.s32.totalorder %s6898_s12, %s6381_s28  ;;  %s6386_s11 = sshll.u32 %s6529_s4, 4  ;;  %s6387_s11 = int_to_ptr.vmem [resolvable:$false] %s6386_s11 }
 0x120   : > { %s6388_s6 = scalar_lea.vmem %s6387_s11, 128  ;;  %p6389_p6 = scmp.lt.s32.totalorder %s6898_s12, %s6387_s11 }
 0x121   : > { %p6384_p13 = pnand %p6382_p12, %p6368_p8  ;;  %p6390_p1 = scmp.lt.s32.totalorder %s6388_s6, %s6381_s28 }
 0x123   : > { %p6385_p10 = pneg %p6384_p13  ;;  %p6391_p3 = por %p6390_p1, %p6389_p6 }
 0x125   : > { %p6392_p2 = pnand %p6391_p3, %p6385_p10 }
 0x127   : > { %6395 = shalt.err (!%p6392_p2)
}
 0x128   : > { %5887 = dma.hbm_to_vmem [thread:$0]  (!%p6894_p11), %s6891_s14, 64, %s6898_s12, %s431_s13  }
 0x129   : > { %s448_s3 = sand.u32 1, %s6516_s20   ;;  %s452_s5 = scalar_lea.vmem [#allocation5], %s6885_s26 }
 0x12a   : > { %s459_s7 = sshll.u32 %s452_s5, 4  ;;  %s449_s16 = scalar_lea.sflag [#allocation6], %s448_s3  ;;  %s460_s7 = int_to_ptr.vmem [resolvable:$true] %s459_s7 }
 0x12b   : > { %s6396_s21 = scalar_lea.hbm %s6903_s29, 64  ;;  %s6401_s4 = scalar_lea.hbm %s7957_s15, 128 }
 0x12c   : > { %p6397_p6 = scmp.ne.s32.totalorder %s6903_s29, %s6396_s21  ;;  %p6402_p5 = scmp.lt.u32.totalorder %s6903_s29, %s7957_s15 }
 0x12d   : > { %p6403_p9 = scmp.lt.u32.totalorder %s6401_s4, %s6396_s21  ;;  %p6405_p12 = scmp.lt.u32.totalorder %s6396_s21, %s6903_s29 }
 0x12e   : > { %p6399_p10 = pnand %p6397_p6, %p6368_p8 }
 0x12f   : > { %p6404_p4 = por %p6403_p9, %p6402_p5 }
 0x130   : > { %p6400_p0 = pneg %p6399_p10 }
 0x131   : > { %p6406_p13 = por %p6405_p12, %p6404_p4 }
 0x133   : > { %p6407_p1 = pnand %p6406_p13, %p6400_p0 }
 0x135   : > { %6410 = shalt.err (!%p6407_p1)
}
 0x136   : > { %s6411_s26 = scalar_lea.vmem %s460_s7, 64  ;;  %s6530_s14 = smov [#allocation5]  }
 0x137   : > { %p6412_p3 = scmp.ne.s32.totalorder %s460_s7, %s6411_s26  ;;  %s6416_s12 = sshll.u32 %s6530_s14, 4  ;;  %s6417_s12 = int_to_ptr.vmem [resolvable:$false] %s6416_s12 }
 0x138   : > { %s6418_s13 = scalar_lea.vmem %s6417_s12, 128  ;;  %p6419_p10 = scmp.lt.s32.totalorder %s460_s7, %s6417_s12 }
 0x139   : > { %p6414_p2 = pnand %p6412_p3, %p6368_p8  ;;  %p6420_p7 = scmp.lt.s32.totalorder %s6418_s13, %s6411_s26 }
 0x13b   : > { %p6415_p6 = pneg %p6414_p2  ;;  %p6421_p5 = por %p6420_p7, %p6419_p10 }
 0x13d   : > { %p6422_p9 = pnand %p6421_p5, %p6415_p6 }
 0x13f   : > { %6425 = shalt.err (!%p6422_p9)
}
 0x140   : > { %5890 = dma.hbm_to_vmem [thread:$0]  (!%p6894_p11), %s6903_s29, 64, %s460_s7, %s449_s16  }
 0x141   : > { %s7958_s3 = sld [smem:[#allocation29_spill]] }
 0x147   : > { %p7959_p0 = scmp.ne.s32.totalorder %s7958_s3, 0 }
 0x148   : > { %s6954_s5 = sand.u32 (!%p7959_p0), 1, %s6508_s18   ;;  %p7960_p7 = scmp.ne.s32.totalorder (!%p7959_p0), %s7953_s2, 0 }
 0x149   : > { %468 = sbr.rel (%p7959_p0) target bundleno = 6077 (0x17bd), region = 64  ;;  %s5135_s21 = sshll.u32 (!%p7959_p0), %s6954_s5, 2 }
 0x14a   : > { %s471_s30 = scalar_lea.sflag (!%p7959_p0), [#allocation3], %s6954_s5  ;;  %s6958_s28 = scalar_lea.vmem (!%p7959_p0), [#allocation2], %s5135_s21 }
 0x150   : > { %6471 = dma.done.wait (%p7960_p7), %s471_s30, 64  }
 0x151   : > { %6473 = vsyncadd (%p7960_p7), %s471_s30, 4294967232  ;;  %s479_s24 = sand.u32 1, %s6627_s23   ;;  %s6965_s7 = scalar_lea.vmem [#allocation5], %s5135_s21 }
 0x152   : > { %s480_s29 = scalar_lea.sflag [#allocation6], %s479_s24 }
 0x153   : > { %6475 = dma.done.wait (%p7960_p7), %s480_s29, 64  }
 0x154   : > { %6477 = vsyncadd (%p7960_p7), %s480_s29, 4294967232  ;;  %p7961_p11 = scmp.eq.s32.totalorder %s6627_s23, 0 }
 0x156   : > { %6479 = dma.done.wait (%p7961_p11), [#allocation6], 256   ;;  %p7962_p8 = pmov %p7961_p11 }
 0x158   : > { %6481 = vsyncadd (%p7962_p8), [#allocation6], 4294967040  ;;  %p7963_p4 = pmov %p7962_p8 }
 0x15a   : > { %6483 = dma.done.wait (%p7963_p4), [#allocation9], 272   ;;  %p7964_p12 = pmov %p7963_p4 }
 0x15b   : > { %p7965_p13 = pmov %p7963_p4 }
 0x15c   : > { %6485 = vsyncadd (%p7964_p12), [#allocation9], 4294967024 }
 0x15d   : > { %6487 = dma.done.wait (%p7965_p13), [#allocation12], 512   ;;  %p7966_p1 = pmov %p7963_p4 }
 0x15f   : > { %6489 = vsyncadd (%p7966_p1), [#allocation12], 4294966784  ;;  %p7967_p3 = pmov %p7966_p1 }
 0x160   : > { %p7968_p2 = pmov %p7966_p1 }
 0x161   : > { %6491 = dma.done.wait (%p7967_p3), [#allocation15], 272  }
 0x162   : > { %6493 = vsyncadd (%p7968_p2), [#allocation15], 4294967024  ;;  %p7969_p6 = pmov %p7966_p1 }
 0x163   : > { %p7970_p10 = pmov %p7966_p1 }
 0x164   : > { %6495 = dma.done.wait (%p7969_p6), [#allocation18], 272  }
 0x165   : > { %6497 = vsyncadd (%p7970_p10), [#allocation18], 4294967024  ;;  %v6531_v0 = vmov 0.0   ;;  %vm6532_vm0 = vmmov 0   ;;  %v5972_v1 = vld [vmem:[#allocation10] sm:$0xff]   ;;  %v5973_v2 = vld [vmem:[#allocation7] sm:$0xff]   ;;  %v697_v9 = vlaneseq }
 0x166   : > { %5390 = vmatprep.subr.bf16.mxu1 %v6531_v0  ;;  %5382 = vmatprep.subr.bf16.mxu0 %v6531_v0  ;;  %v5974_v3 = vld [vmem:[#allocation10 + $0x8] sm:$0xff]   ;;  %v5975_v4 = vld [vmem:[#allocation7 + $0x8] sm:$0xff]   ;;  %vm589_vm1 = vcmask 261120   ;;  %v564_v6 = vld [vmem:[%s6958_s28] sm:$0xf]  ;;  %vm744_vm2 = vcmask 64512  }
 0x167   : > { %5394 = vmatprep.mubr.msk.bf16.mxu1 %vm6532_vm0, %v6531_v0  ;;  %5386 = vmatprep.mubr.msk.bf16.mxu0 %vm6532_vm0, %v6531_v0  ;;  %v565_v5 = vld [vmem:[%s6965_s7] sm:$0xf]  ;;  %v6533_v7 = vmov 1966171168   ;;  %v7009_v11 = vshrl.u32 %v697_v9, 7  ;;  %vm929_vm3 = vcmask 9216  }
 0x168   : > { %5391 = vmatpush3.bf16.msra.mxu1 %v5972_v1  ;;  %5383 = vmatpush3.bf16.msra.mxu0 %v5973_v2  ;;  %v695_v8 = vunpack.c.l.s4 %v6533_v7  ;;  %v5147_v13 = vld [vmem:[#allocation8] ss:$0 sm:$0xff]  ;;  %s6534_s2 = smov 96   ;;  %s6535_s16 = smov 120   ;;  %vm998_vm4 = vcmask 1040384   ;;  %vm994_vm5 = vcmask 15360  }
 0x169   : > { %5392 = vmatprep.subr.bf16.mxu1 %v6531_v0  ;;  %5384 = vmatprep.subr.bf16.mxu0 %v6531_v0  ;;  %s6536_s4 = smov 88   ;;  %s6537_s11 = smov 112   ;;  %vm2656_vm6 = vcmask 130048   ;;  %vm2661_vm7 = vcmask 195584  }
 0x16a   : > { %v696_v10 = vunpack.c.0.s8 %v695_v8  ;;  %s6538_s6 = smov 80   ;;  %s6539_s26 = smov 104  }
 0x16b   : > { %s6540_s14 = smov 72   ;;  %s6541_s12 = smov 8  }
 0x16c   : > { %5393 = vmatpush3.bf16.msra.mxu1 %v5974_v3  ;;  %5385 = vmatpush3.bf16.msra.mxu0 %v5975_v4  ;;  %v7012_v12 = vsub.s32 %v696_v10, %v7009_v11  ;;  %s6542_s13 = smov 16   ;;  %s6543_s3 = smov 24  }
 0x16d   : > { %5404 = vmatprep.subr.bf16.mxu1 %v6531_v0  ;;  %5398 = vmatprep.subr.bf16.mxu0 %v6531_v0  ;;  %s5146_s21 = sshll.u32 %s6954_s5, 3  ;;  %s5233_s30 = sshll.u32 %s6627_s23, 7 }
 0x16e   : > { %s4927_s23 = scalar_lea.sflag [#allocation4], %s6954_s5  ;;  %p7972_p9 = scmp.ne.s32.totalorder %s7954_s25, 0 }
 0x16f   : > { %5395 = vmatmul.mubr.msk.bf16.vlgmr.msra.gmra.mrb[0].mxu1 %vm589_vm1, %v565_v5  ;;  %5387 = vmatmul.mubr.msk.bf16.vlgmr.msra.gmra.mrb[0].mxu0 %vm589_vm1, %v564_v6 }
 0x170   : > { %5406 = vmatprep.mubr.msk.bf16.mxu1 %vm6532_vm0, %v6531_v0  ;;  %5400 = vmatprep.mubr.msk.bf16.mxu0 %vm6532_vm0, %v6531_v0 }
 0x242   : > { %v686_v14 = vpop.f32.mrb[0].mxu1  ;;  %v627_v17 = vpop.f32.mrb[0].mxu0 }
 0x243   : > { %v718_v15 = vpack.c.bf16 %v686_v14, %v686_v14  ;;  %v5396_v16 = vpop.f32.mrb[1].mxu1  ;;  %v628_v19 = vadd.f32 %v5147_v13, %v627_v17  ;;  %v5388_v20 = vpop.f32.mrb[1].mxu0 }
 0x244   : > { %v689_v18 = vpop.f32.mrb[2].mxu1  ;;  %v630_v23 = vpop.f32.mrb[2].mxu0 }
 0x245   : > { %v726_v21 = vrot.slane %v718_v15, %v7012_v12  ;;  %v5397_v22 = vpop.f32.mrb[3].mxu1  ;;  %v692_v24 = vpack.c.bf16 %v628_v19, %v628_v19  ;;  %v5389_v25 = vpop.f32.mrb[3].mxu0 }
 0x247   : > { %v727_v26 = vcombine.high %v726_v21, %v726_v21  ;;  %v7016_v27 = vrot.slane %v726_v21, %v7012_v12  ;;  %v700_v28 = vrot.slane %v692_v24, %v7012_v12 }
 0x249   : > { %v7020_v29 = vrot.slane %v727_v26, %v7012_v12  ;;  %v749_v30 = vsel %vm744_vm2, %v7016_v27, 0  ;;  %v701_v31 = vcombine.high %v700_v28, %v700_v28  ;;  %v7028_v33 = vrot.slane %v700_v28, %v7012_v12 }
 0x24a   : > { %5399 = vmatpush3.bf16.xpose.msra.mxu0 %v749_v30  ;;  %v7032_v34 = vcombine.high %v7016_v27, %v7016_v27  ;;  %v984_v10 = vrot.slane %v7016_v27, %v7012_v12 }
 0x24b   : > { %v795_v32 = vsel %vm744_vm2, %v7020_v29, 0  ;;  %5410 = vmatprep.subr.bf16.mxu0 %v6531_v0  ;;  %v7036_v35 = vrot.slane %v701_v31, %v7012_v12  ;;  %v743_v36 = vcombine.high %v7020_v29, %v7020_v29  ;;  %v7055_v39 = vcombine.high %v7028_v33, %v7028_v33 }
 0x24c   : > { %5405 = vmatpush3.bf16.xpose.msra.mxu1 %v795_v32  ;;  %v841_v37 = vsel %vm744_vm2, %v7032_v34, 0  ;;  %v1048_v9 = vrot.slane %v7020_v29, %v7012_v12  ;;  %v7094_v15 = vrot.slane %v984_v10, %v7012_v12  ;;  %v1110_v16 = vrot.slane %v7032_v34, %v7012_v12 }
 0x24d   : > { %5416 = vmatprep.subr.bf16.mxu1 %v6531_v0  ;;  %v887_v38 = vsel %vm744_vm2, %v743_v36, 0  ;;  %v7059_v40 = vcombine.high %v7036_v35, %v7036_v35  ;;  %v1172_v8 = vrot.slane %v743_v36, %v7012_v12  ;;  %v1298_v28 = vrot.slane %v7036_v35, %v7012_v12 }
 0x24e   : > { %v7087_v14 = vrot.slane %v1048_v9, %v7012_v12  ;;  %v7101_v17 = vrot.slane %v1110_v16, %v7012_v12  ;;  %v1234_v30 = vrot.slane %v7028_v33, %v7012_v12 }
 0x24f   : > { %v7084_v13 = vrot.slane %v1172_v8, %v7012_v12  ;;  %v7115_v29 = vrot.slane %v1298_v28, %v7012_v12  ;;  %v1426_v32 = vrot.slane %v7059_v40, %v7012_v12 }
 0x250   : > { %v7122_v31 = vrot.slane %v1234_v30, %v7012_v12 }
 0x251   : > { %5401 = vmatmul.mubr.msk.bf16.vlgmr.msra.gmra.mrb[4].mxu0 %vm744_vm2, %v7028_v33  ;;  %v7131_v34 = vrot.slane %v1426_v32, %v7012_v12  ;;  %v1362_v33 = vrot.slane %v7055_v39, %v7012_v12 }
 0x252   : > { %5411 = vmatpush3.bf16.xpose.msra.mxu0 %v841_v37  ;;  %5412 = vmatprep.mubr.msk.bf16.mxu0 %vm6532_vm0, %v6531_v0 }
 0x253   : > { %5407 = vmatmul.mubr.msk.bf16.vlgmr.msra.gmra.mrb[4].mxu1 %vm744_vm2, %v7036_v35  ;;  %5422 = vmatprep.subr.bf16.mxu0 %v6531_v0  ;;  %v7142_v35 = vrot.slane %v1362_v33, %v7012_v12 }
 0x254   : > { %5417 = vmatpush3.bf16.xpose.msra.mxu1 %v887_v38  ;;  %5418 = vmatprep.mubr.msk.bf16.mxu1 %vm6532_vm0, %v6531_v0 }
 0x255   : > { %5428 = vmatprep.subr.bf16.mxu1 %v6531_v0 }
 0x259   : > { %5413 = vmatmul.mubr.msk.bf16.vlgmr.msra.gmra.mrb[8].mxu0 %vm744_vm2, %v7055_v39 }
 0x25a   : > { %5424 = vmatprep.mubr.msk.bf16.mxu0 %vm6532_vm0, %v6531_v0 }
 0x25b   : > { %5419 = vmatmul.mubr.msk.bf16.vlgmr.msra.gmra.mrb[8].mxu1 %vm744_vm2, %v7059_v40 }
 0x25c   : > { %5430 = vmatprep.mubr.msk.bf16.mxu1 %vm6532_vm0, %v6531_v0 }
 0x324   : > { %v785_v41 = vpop.f32.mrb[4].mxu0 }
 0x325   : > { %v5402_v42 = vpop.f32.mrb[5].mxu0  ;;  %v930_v50 = vsel %vm929_vm3, %v785_v41, -inf }
 0x326   : > { %v788_v43 = vpop.f32.mrb[6].mxu0  ;;  %v831_v44 = vpop.f32.mrb[4].mxu1 }
 0x327   : > { %v5403_v45 = vpop.f32.mrb[7].mxu0  ;;  %v5408_v46 = vpop.f32.mrb[5].mxu1  ;;  %v933_v47 = vsel %vm929_vm3, %v831_v44, -inf }
 0x328   : > { %934 = vmax.xlane.f32.xlu0 %v933_v47  ;;  %v834_v48 = vpop.f32.mrb[6].mxu1 }
 0x329   : > { %v5409_v49 = vpop.f32.mrb[7].mxu1 }
 0x32c   : > { %931 = vmax.xlane.f32.xlu0 %v930_v50  ;;  %v877_v51 = vpop.f32.mrb[8].mxu0 }
 0x32d   : > { %v5414_v52 = vpop.f32.mrb[9].mxu0  ;;  %v936_v60 = vsel %vm929_vm3, %v877_v51, -inf }
 0x32e   : > { %v880_v53 = vpop.f32.mrb[10].mxu0  ;;  %v923_v54 = vpop.f32.mrb[8].mxu1 }
 0x32f   : > { %v5415_v55 = vpop.f32.mrb[11].mxu0  ;;  %v5420_v56 = vpop.f32.mrb[9].mxu1  ;;  %v939_v57 = vsel %vm929_vm3, %v923_v54, -inf }
 0x330   : > { %940 = vmax.xlane.f32.xlu1 %v939_v57  ;;  %v926_v58 = vpop.f32.mrb[10].mxu1 }
 0x331   : > { %v5421_v59 = vpop.f32.mrb[11].mxu1 }
 0x334   : > { %937 = vmax.xlane.f32.xlu1 %v936_v60 }
 0x3b5   : > { %v935_v61 = vpop.xlane.xlu0 %934 }
 0x3b6   : > { %v943_v62 = vsub.f32 %v831_v44, %v935_v61 }
 0x3b8   : > { %v948_v63 = vmul.f32 1.442695, %v943_v62 }
 0x3b9   : > { %v932_v1 = vpop.xlane.xlu0 %931 }
 0x3ba   : > { %5984 = vpow2.f32 %v948_v63  ;;  %v942_v2 = vsub.f32 %v785_v41, %v932_v1 }
 0x3bc   : > { %v946_v3 = vmul.f32 1.442695, %v942_v2 }
 0x3bd   : > { %v941_v18 = vpop.xlane.xlu1 %940 }
 0x3be   : > { %5986 = vpow2.f32 %v946_v3  ;;  %v945_v19 = vsub.f32 %v923_v54, %v941_v18 }
 0x3c0   : > { %v952_v20 = vmul.f32 1.442695, %v945_v19 }
 0x3c1   : > { %v938_v21 = vpop.xlane.xlu1 %937 }
 0x3c2   : > { %5988 = vpow2.f32 %v952_v20  ;;  %v944_v22 = vsub.f32 %v877_v51, %v938_v21 }
 0x3c4   : > { %v5985_v4 = vpop.eup %5984  ;;  %v950_v23 = vmul.f32 1.442695, %v944_v22 }
 0x3c5   : > { %v957_v5 = vsel %vm929_vm3, %v5985_v4, 0.0 }
 0x3c6   : > { %958 = vadd.xlane.f32.xlu0 %v957_v5  ;;  %5990 = vpow2.f32 %v950_v23 }
 0x3c8   : > { %v7074_v6 = vpop.eup %5986 }
 0x3c9   : > { %v954_v7 = vsel %vm929_vm3, %v7074_v6, 0.0 }
 0x3ca   : > { %955 = vadd.xlane.f32.xlu1 %v954_v7 }
 0x3cc   : > { %v5989_v24 = vpop.eup %5988 }
 0x3cd   : > { %v963_v25 = vsel %vm929_vm3, %v5989_v24, 0.0 }
 0x3d0   : > { %v7106_v26 = vpop.eup %5990 }
 0x3d1   : > { %v960_v27 = vsel %vm929_vm3, %v7106_v26, 0.0 }
 0x3db   : > { %1180 = vrot.lane.b32.xlu1 %v7084_v13, %s6534_s2 }
 0x3dc   : > { %1056 = vrot.lane.b32.xlu0 %v7087_v14, %s6534_s2 }
 0x3df   : > { %992 = vrot.lane.b32.xlu1 %v7094_v15, %s6534_s2 }
 0x3e3   : > { %1118 = vrot.lane.b32.xlu1 %v7101_v17, %s6534_s2 }
 0x3fb   : > { %964 = vadd.xlane.f32.xlu0 %v963_v25 }
 0x407   : > { %961 = vadd.xlane.f32.xlu1 %v960_v27 }
 0x411   : > { %1308 = vrot.lane.b32.xlu0 %v7087_v14, %s6535_s16 }
 0x415   : > { %1306 = vrot.lane.b32.xlu0 %v7115_v29, %s6535_s16 }
 0x418   : > { %1244 = vrot.lane.b32.xlu1 %v7094_v15, %s6535_s16 }
 0x419   : > { %1242 = vrot.lane.b32.xlu0 %v7122_v31, %s6535_s16 }
 0x41c   : > { %1436 = vrot.lane.b32.xlu1 %v7084_v13, %s6535_s16 }
 0x41d   : > { %1434 = vrot.lane.b32.xlu0 %v7131_v34, %s6535_s16 }
 0x420   : > { %1372 = vrot.lane.b32.xlu1 %v7101_v17, %s6535_s16 }
 0x424   : > { %1370 = vrot.lane.b32.xlu1 %v7142_v35, %s6535_s16 }
 0x453   : > { %v959_v36 = vpop.xlane.xlu0 %958 }
 0x454   : > { %5992 = vrcp.f32 %v959_v36 }
 0x457   : > { %v1057_v37 = vpop.permute.xlu0 %1056  ;;  %v956_v38 = vpop.xlane.xlu1 %955 }
 0x458   : > { %v1062_v40 = vsel %vm998_vm4, %v1057_v37, 0  ;;  %5994 = vrcp.f32 %v956_v38 }
 0x459   : > { %5429 = vmatpush3.bf16.msra.mxu1 %v1062_v40 }
 0x45a   : > { %5440 = vmatprep.subr.bf16.mxu1 %v6531_v0 }
 0x45b   : > { %v1181_v39 = vpop.permute.xlu1 %1180 }
 0x45c   : > { %v1186_v47 = vsel %vm998_vm4, %v1181_v39, 0 }
 0x45e   : > { %v5993_v41 = vpop.eup %5992 }
 0x45f   : > { %v993_v42 = vpop.permute.xlu1 %992  ;;  %v971_v43 = vmul.f32 %v5993_v41, %v5985_v4 }
 0x460   : > { %v1000_v44 = vsel %vm998_vm4, %v993_v42, 0 }
 0x461   : > { %5423 = vmatpush3.bf16.msra.mxu0 %v1000_v44  ;;  %v975_v45 = vpack.c.bf16 %v971_v43, %v971_v43 }
 0x462   : > { %v5995_v46 = vpop.eup %5994  ;;  %5434 = vmatprep.subr.bf16.mxu0 %v6531_v0 }
 0x463   : > { %5431 = vmatmul.mubr.msk.bf16.vlgmr.msra.gmra.mrb[12].mxu1 %vm994_vm5, %v975_v45  ;;  %v970_v48 = vmul.f32 %v5995_v46, %v7074_v6  ;;  %v1119_v49 = vpop.permute.xlu1 %1118 }
 0x464   : > { %5441 = vmatpush3.bf16.msra.mxu1 %v1186_v47  ;;  %5442 = vmatprep.mubr.msk.bf16.mxu1 %vm6532_vm0, %v6531_v0  ;;  %v1124_v51 = vsel %vm998_vm4, %v1119_v49, 0 }
 0x465   : > { %v974_v50 = vpack.c.bf16 %v970_v48, %v970_v48  ;;  %5452 = vmatprep.subr.bf16.mxu1 %v6531_v0 }
 0x467   : > { %5425 = vmatmul.mubr.msk.bf16.vlgmr.msra.gmra.mrb[12].mxu0 %vm994_vm5, %v974_v50 }
 0x468   : > { %5435 = vmatpush3.bf16.msra.mxu0 %v1124_v51  ;;  %5436 = vmatprep.mubr.msk.bf16.mxu0 %vm6532_vm0, %v6531_v0 }
 0x469   : > { %5446 = vmatprep.subr.bf16.mxu0 %v6531_v0 }
 0x488   : > { %v965_v52 = vpop.xlane.xlu0 %964 }
 0x489   : > { %5996 = vrcp.f32 %v965_v52 }
 0x48c   : > { %v1309_v56 = vpop.permute.xlu0 %1308 }
 0x48d   : > { %v1314_v58 = vsel %vm744_vm2, %v1309_v56, 0 }
 0x490   : > { %v1307_v60 = vpop.permute.xlu0 %1306 }
 0x493   : > { %v5997_v53 = vpop.eup %5996 }
 0x494   : > { %v962_v54 = vpop.xlane.xlu1 %961  ;;  %v973_v55 = vmul.f32 %v5997_v53, %v5989_v24  ;;  %v1243_v2 = vpop.permute.xlu0 %1242 }
 0x495   : > { %5998 = vrcp.f32 %v962_v54 }
 0x496   : > { %v977_v57 = vpack.c.bf16 %v973_v55, %v973_v55 }
 0x498   : > { %5443 = vmatmul.mubr.msk.bf16.vlgmr.msra.gmra.mrb[16].mxu1 %vm994_vm5, %v977_v57  ;;  %v1245_v59 = vpop.permute.xlu1 %1244  ;;  %v1435_v5 = vpop.permute.xlu0 %1434 }
 0x499   : > { %5453 = vmatpush3.bf16.xpose.msra.mxu1 %v1314_v58  ;;  %5454 = vmatprep.mubr.msk.bf16.mxu1 %vm6532_vm0, %v6531_v0  ;;  %v1250_v4 = vsel %vm744_vm2, %v1245_v59, 0 }
 0x49a   : > { %5464 = vmatprep.subr.bf16.mxu1 %v6531_v0 }
 0x49c   : > { %v1437_v61 = vpop.permute.xlu1 %1436 }
 0x49d   : > { %v1442_v63 = vsel %vm744_vm2, %v1437_v61, 0 }
 0x49f   : > { %v5999_v62 = vpop.eup %5998 }
 0x4a0   : > { %5455 = vmatmul.mubr.msk.bf16.vlgmr.msra.gmra.mrb[20].mxu1 %vm744_vm2, %v1307_v60  ;;  %v972_v1 = vmul.f32 %v5999_v62, %v7106_v26  ;;  %v1373_v6 = vpop.permute.xlu1 %1372 }
 0x4a1   : > { %5465 = vmatpush3.bf16.xpose.msra.mxu1 %v1442_v63  ;;  %5466 = vmatprep.mubr.msk.bf16.mxu1 %vm6532_vm0, %v6531_v0  ;;  %v1378_v7 = vsel %vm744_vm2, %v1373_v6, 0 }
 0x4a2   : > { %v976_v3 = vpack.c.bf16 %v972_v1, %v972_v1  ;;  %5476 = vmatprep.subr.bf16.mxu1 %v6531_v0 }
 0x4a4   : > { %5437 = vmatmul.mubr.msk.bf16.vlgmr.msra.gmra.mrb[16].mxu0 %vm994_vm5, %v976_v3  ;;  %v1371_v8 = vpop.permute.xlu1 %1370 }
 0x4a5   : > { %5447 = vmatpush3.bf16.xpose.msra.mxu0 %v1250_v4  ;;  %5448 = vmatprep.mubr.msk.bf16.mxu0 %vm6532_vm0, %v6531_v0 }
 0x4a6   : > { %5458 = vmatprep.subr.bf16.mxu0 %v6531_v0 }
 0x4a8   : > { %5467 = vmatmul.mubr.msk.bf16.vlgmr.msra.gmra.mrb[24].mxu1 %vm744_vm2, %v1435_v5 }
 0x4a9   : > { %5478 = vmatprep.mubr.msk.bf16.mxu1 %vm6532_vm0, %v6531_v0 }
 0x4ac   : > { %5449 = vmatmul.mubr.msk.bf16.vlgmr.msra.gmra.mrb[20].mxu0 %vm744_vm2, %v1243_v2 }
 0x4ad   : > { %5459 = vmatpush3.bf16.xpose.msra.mxu0 %v1378_v7  ;;  %5460 = vmatprep.mubr.msk.bf16.mxu0 %vm6532_vm0, %v6531_v0 }
 0x4ae   : > { %5470 = vmatprep.subr.bf16.mxu0 %v6531_v0 }
 0x4b4   : > { %5461 = vmatmul.mubr.msk.bf16.vlgmr.msra.gmra.mrb[24].mxu0 %vm744_vm2, %v1371_v8 }
 0x4b5   : > { %5472 = vmatprep.mubr.msk.bf16.mxu0 %vm6532_vm0, %v6531_v0 }
 0x536   : > { %v7188_v9 = vpop.f32.mrb[12].mxu1 }
 0x537   : > { %v5432_v10 = vpop.f32.mrb[13].mxu1 }
 0x538   : > { %v1101_v16 = vpop.f32.mrb[14].mxu1 }
 0x539   : > { %v5433_v18 = vpop.f32.mrb[15].mxu1 }
 0x53a   : > { %v7190_v19 = vpop.f32.mrb[12].mxu0 }
 0x53b   : > { %v5426_v20 = vpop.f32.mrb[13].mxu0 }
 0x53c   : > { %v1039_v21 = vpop.f32.mrb[14].mxu0 }
 0x53d   : > { %v5427_v22 = vpop.f32.mrb[15].mxu0 }
 0x56b   : > { %v7192_v23 = vpop.f32.mrb[16].mxu1 }
 0x56c   : > { %v5444_v24 = vpop.f32.mrb[17].mxu1 }
 0x56d   : > { %v1225_v25 = vpop.f32.mrb[18].mxu1 }
 0x56e   : > { %v5445_v26 = vpop.f32.mrb[19].mxu1 }
 0x573   : > { %v1350_v27 = vpop.f32.mrb[20].mxu1 }
 0x574   : > { %v5456_v28 = vpop.f32.mrb[21].mxu1  ;;  %v1487_v30 = vsel %vm929_vm3, %v1350_v27, -inf }
 0x575   : > { %1488 = vmax.xlane.f32.xlu0 %v1487_v30  ;;  %v1353_v32 = vpop.f32.mrb[22].mxu1 }
 0x576   : > { %v5457_v33 = vpop.f32.mrb[23].mxu1 }
 0x577   : > { %v7195_v36 = vpop.f32.mrb[16].mxu0 }
 0x578   : > { %v5438_v37 = vpop.f32.mrb[17].mxu0 }
 0x579   : > { %v1163_v38 = vpop.f32.mrb[18].mxu0 }
 0x57a   : > { %v5439_v40 = vpop.f32.mrb[19].mxu0 }
 0x57b   : > { %v1478_v39 = vpop.f32.mrb[24].mxu1 }
 0x57c   : > { %v5468_v41 = vpop.f32.mrb[25].mxu1  ;;  %v1493_v42 = vsel %vm929_vm3, %v1478_v39, -inf }
 0x57d   : > { %1494 = vmax.xlane.f32.xlu0 %v1493_v42  ;;  %v1481_v43 = vpop.f32.mrb[26].mxu1 }
 0x57e   : > { %v5469_v44 = vpop.f32.mrb[27].mxu1 }
 0x57f   : > { %v1286_v45 = vpop.f32.mrb[20].mxu0 }
 0x580   : > { %v5450_v46 = vpop.f32.mrb[21].mxu0  ;;  %v1484_v47 = vsel %vm929_vm3, %v1286_v45, -inf }
 0x581   : > { %1485 = vmax.xlane.f32.xlu1 %v1484_v47  ;;  %v1289_v48 = vpop.f32.mrb[22].mxu0 }
 0x582   : > { %v5451_v49 = vpop.f32.mrb[23].mxu0 }
 0x587   : > { %v1414_v50 = vpop.f32.mrb[24].mxu0 }
 0x588   : > { %v5462_v51 = vpop.f32.mrb[25].mxu0  ;;  %v1490_v52 = vsel %vm929_vm3, %v1414_v50, -inf }
 0x589   : > { %1491 = vmax.xlane.f32.xlu0 %v1490_v52  ;;  %v1417_v53 = vpop.f32.mrb[26].mxu0 }
 0x58a   : > { %v5463_v54 = vpop.f32.mrb[27].mxu0 }
 0x602   : > { %v1489_v55 = vpop.xlane.xlu0 %1488 }
 0x603   : > { %v1497_v56 = vsub.f32 %v1350_v27, %v1489_v55 }
 0x605   : > { %v1502_v57 = vmul.f32 1.442695, %v1497_v56 }
 0x607   : > { %6000 = vpow2.f32 %v1502_v57 }
 0x60a   : > { %v1495_v2 = vpop.xlane.xlu0 %1494 }
 0x60b   : > { %v1499_v3 = vsub.f32 %v1478_v39, %v1495_v2 }
 0x60d   : > { %v1506_v4 = vmul.f32 1.442695, %v1499_v3 }
 0x60e   : > { %v1486_v58 = vpop.xlane.xlu1 %1485 }
 0x60f   : > { %v1496_v59 = vsub.f32 %v1286_v45, %v1486_v58 }
 0x611   : > { %v6001_v60 = vpop.eup %6000  ;;  %v1500_v61 = vmul.f32 1.442695, %v1496_v59 }
 0x612   : > { %v1511_v62 = vsel %vm929_vm3, %v6001_v60, 0.0 }
 0x613   : > { %6002 = vpow2.f32 %v1500_v61  ;;  %1512 = vadd.xlane.f32.xlu0 %v1511_v62 }
 0x614   : > { %6004 = vpow2.f32 %v1506_v4 }
 0x616   : > { %v1492_v5 = vpop.xlane.xlu0 %1491 }
 0x617   : > { %v1498_v7 = vsub.f32 %v1414_v50, %v1492_v5 }
 0x619   : > { %v1504_v10 = vmul.f32 1.442695, %v1498_v7 }
 0x61b   : > { %6006 = vpow2.f32 %v1504_v10 }
 0x61d   : > { %v6003_v63 = vpop.eup %6002 }
 0x61e   : > { %v1508_v1 = vsel %vm929_vm3, %v6003_v63, 0.0  ;;  %v6005_v6 = vpop.eup %6004 }
 0x61f   : > { %1509 = vadd.xlane.f32.xlu1 %v1508_v1  ;;  %v1517_v8 = vsel %vm929_vm3, %v6005_v6, 0.0 }
 0x625   : > { %v7211_v16 = vpop.eup %6006 }
 0x626   : > { %v1514_v18 = vsel %vm929_vm3, %v7211_v16, 0.0 }
 0x629   : > { %1580 = vrot.lane.b32.xlu0 %v7087_v14, %s6536_s4 }
 0x630   : > { %1676 = vrot.lane.b32.xlu1 %v7084_v13, %s6536_s4 }
 0x634   : > { %1532 = vrot.lane.b32.xlu1 %v7094_v15, %s6536_s4 }
 0x638   : > { %1628 = vrot.lane.b32.xlu1 %v7101_v17, %s6536_s4 }
 0x648   : > { %1518 = vadd.xlane.f32.xlu0 %v1517_v8 }
 0x65c   : > { %1515 = vadd.xlane.f32.xlu1 %v1514_v18 }
 0x65e   : > { %1776 = vrot.lane.b32.xlu0 %v7087_v14, %s6537_s11 }
 0x662   : > { %1774 = vrot.lane.b32.xlu0 %v7115_v29, %s6537_s11 }
 0x666   : > { %1724 = vrot.lane.b32.xlu0 %v7122_v31, %s6537_s11 }
 0x66a   : > { %1874 = vrot.lane.b32.xlu0 %v7131_v34, %s6537_s11 }
 0x66d   : > { %1726 = vrot.lane.b32.xlu1 %v7094_v15, %s6537_s11 }
 0x671   : > { %1876 = vrot.lane.b32.xlu1 %v7084_v13, %s6537_s11 }
 0x675   : > { %1826 = vrot.lane.b32.xlu1 %v7101_v17, %s6537_s11 }
 0x679   : > { %1824 = vrot.lane.b32.xlu1 %v7142_v35, %s6537_s11 }
 0x6a0   : > { %v1513_v20 = vpop.xlane.xlu0 %1512 }
 0x6a1   : > { %6008 = vrcp.f32 %v1513_v20 }
 0x6a4   : > { %v1581_v21 = vpop.permute.xlu0 %1580 }
 0x6a5   : > { %v1586_v22 = vsel %vm998_vm4, %v1581_v21, 0 }
 0x6a6   : > { %5477 = vmatpush3.bf16.msra.mxu1 %v1586_v22 }
 0x6a7   : > { %5488 = vmatprep.subr.bf16.mxu1 %v6531_v0 }
 0x6ab   : > { %v6009_v24 = vpop.eup %6008 }
 0x6ac   : > { %v1510_v25 = vpop.xlane.xlu1 %1509  ;;  %v1525_v26 = vmul.f32 %v6009_v24, %v6001_v60 }
 0x6ad   : > { %6010 = vrcp.f32 %v1510_v25 }
 0x6ae   : > { %v1529_v27 = vpack.c.bf16 %v1525_v26, %v1525_v26 }
 0x6b0   : > { %v1677_v28 = vpop.permute.xlu1 %1676  ;;  %5479 = vmatmul.mubr.msk.bf16.vlgmr.msra.gmra.mrb[28].mxu1 %vm994_vm5, %v1529_v27 }
 0x6b1   : > { %v1682_v30 = vsel %vm998_vm4, %v1677_v28, 0  ;;  %5490 = vmatprep.mubr.msk.bf16.mxu1 %vm6532_vm0, %v6531_v0 }
 0x6b2   : > { %5489 = vmatpush3.bf16.msra.mxu1 %v1682_v30 }
 0x6b3   : > { %5500 = vmatprep.subr.bf16.mxu1 %v6531_v0 }
 0x6b4   : > { %v1533_v32 = vpop.permute.xlu1 %1532 }
 0x6b5   : > { %v1538_v33 = vsel %vm998_vm4, %v1533_v32, 0 }
 0x6b6   : > { %5471 = vmatpush3.bf16.msra.mxu0 %v1538_v33 }
 0x6b7   : > { %v6011_v37 = vpop.eup %6010  ;;  %5482 = vmatprep.subr.bf16.mxu0 %v6531_v0 }
 0x6b8   : > { %v1524_v38 = vmul.f32 %v6011_v37, %v6003_v63  ;;  %v1629_v40 = vpop.permute.xlu1 %1628 }
 0x6b9   : > { %v1634_v41 = vsel %vm998_vm4, %v1629_v40, 0 }
 0x6ba   : > { %v1528_v39 = vpack.c.bf16 %v1524_v38, %v1524_v38 }
 0x6bc   : > { %5473 = vmatmul.mubr.msk.bf16.vlgmr.msra.gmra.mrb[28].mxu0 %vm994_vm5, %v1528_v39 }
 0x6bd   : > { %5483 = vmatpush3.bf16.msra.mxu0 %v1634_v41  ;;  %5484 = vmatprep.mubr.msk.bf16.mxu0 %vm6532_vm0, %v6531_v0 }
 0x6be   : > { %5494 = vmatprep.subr.bf16.mxu0 %v6531_v0 }
 0x6d5   : > { %v1519_v42 = vpop.xlane.xlu0 %1518 }
 0x6d6   : > { %6012 = vrcp.f32 %v1519_v42 }
 0x6d9   : > { %v1777_v45 = vpop.permute.xlu0 %1776 }
 0x6da   : > { %v1782_v47 = vsel %vm744_vm2, %v1777_v45, 0 }
 0x6dd   : > { %v1775_v49 = vpop.permute.xlu0 %1774 }
 0x6e0   : > { %v6013_v43 = vpop.eup %6012 }
 0x6e1   : > { %v1527_v44 = vmul.f32 %v6013_v43, %v6005_v6  ;;  %v1725_v53 = vpop.permute.xlu0 %1724 }
 0x6e3   : > { %v1531_v46 = vpack.c.bf16 %v1527_v44, %v1527_v44 }
 0x6e5   : > { %5491 = vmatmul.mubr.msk.bf16.vlgmr.msra.gmra.mrb[32].mxu1 %vm994_vm5, %v1531_v46  ;;  %v1875_v57 = vpop.permute.xlu0 %1874 }
 0x6e6   : > { %5501 = vmatpush3.bf16.xpose.msra.mxu1 %v1782_v47  ;;  %5502 = vmatprep.mubr.msk.bf16.mxu1 %vm6532_vm0, %v6531_v0 }
 0x6e7   : > { %5512 = vmatprep.subr.bf16.mxu1 %v6531_v0 }
 0x6e9   : > { %v1516_v48 = vpop.xlane.xlu1 %1515 }
 0x6ea   : > { %6014 = vrcp.f32 %v1516_v48 }
 0x6ed   : > { %v1727_v50 = vpop.permute.xlu1 %1726  ;;  %5503 = vmatmul.mubr.msk.bf16.vlgmr.msra.gmra.mrb[36].mxu1 %vm744_vm2, %v1775_v49 }
 0x6ee   : > { %5514 = vmatprep.mubr.msk.bf16.mxu1 %vm6532_vm0, %v6531_v0  ;;  %v1732_v58 = vsel %vm744_vm2, %v1727_v50, 0 }
 0x6f1   : > { %v1877_v51 = vpop.permute.xlu1 %1876 }
 0x6f2   : > { %v1882_v52 = vsel %vm744_vm2, %v1877_v51, 0 }
 0x6f3   : > { %5513 = vmatpush3.bf16.xpose.msra.mxu1 %v1882_v52 }
 0x6f4   : > { %v6015_v54 = vpop.eup %6014  ;;  %5524 = vmatprep.subr.bf16.mxu1 %v6531_v0 }
 0x6f5   : > { %v1526_v55 = vmul.f32 %v6015_v54, %v7211_v16  ;;  %v1827_v59 = vpop.permute.xlu1 %1826 }
 0x6f6   : > { %v1832_v60 = vsel %vm744_vm2, %v1827_v59, 0 }
 0x6f7   : > { %v1530_v56 = vpack.c.bf16 %v1526_v55, %v1526_v55 }
 0x6f9   : > { %5485 = vmatmul.mubr.msk.bf16.vlgmr.msra.gmra.mrb[32].mxu0 %vm994_vm5, %v1530_v56  ;;  %v1825_v61 = vpop.permute.xlu1 %1824 }
 0x6fa   : > { %5495 = vmatpush3.bf16.xpose.msra.mxu0 %v1732_v58  ;;  %5515 = vmatmul.mubr.msk.bf16.vlgmr.msra.gmra.mrb[40].mxu1 %vm744_vm2, %v1875_v57 }
 0x6fb   : > { %5496 = vmatprep.mubr.msk.bf16.mxu0 %vm6532_vm0, %v6531_v0  ;;  %5506 = vmatprep.subr.bf16.mxu0 %v6531_v0 }
 0x6fc   : > { %5526 = vmatprep.mubr.msk.bf16.mxu1 %vm6532_vm0, %v6531_v0 }
 0x701   : > { %5497 = vmatmul.mubr.msk.bf16.vlgmr.msra.gmra.mrb[36].mxu0 %vm744_vm2, %v1725_v53 }
 0x702   : > { %5507 = vmatpush3.bf16.xpose.msra.mxu0 %v1832_v60  ;;  %5508 = vmatprep.mubr.msk.bf16.mxu0 %vm6532_vm0, %v6531_v0 }
 0x703   : > { %5518 = vmatprep.subr.bf16.mxu0 %v6531_v0 }
 0x709   : > { %5509 = vmatmul.mubr.msk.bf16.vlgmr.msra.gmra.mrb[40].mxu0 %vm744_vm2, %v1825_v61 }
 0x70a   : > { %5520 = vmatprep.mubr.msk.bf16.mxu0 %vm6532_vm0, %v6531_v0 }
 0x783   : > { %v7272_v62 = vpop.f32.mrb[28].mxu1 }
 0x784   : > { %v5480_v63 = vpop.f32.mrb[29].mxu1 }
 0x785   : > { %v1625_v1 = vpop.f32.mrb[30].mxu1 }
 0x786   : > { %v5481_v2 = vpop.f32.mrb[31].mxu1 }
 0x78f   : > { %v7274_v3 = vpop.f32.mrb[28].mxu0 }
 0x790   : > { %v5474_v4 = vpop.f32.mrb[29].mxu0 }
 0x791   : > { %v1577_v5 = vpop.f32.mrb[30].mxu0 }
 0x792   : > { %v5475_v6 = vpop.f32.mrb[31].mxu0 }
 0x7b8   : > { %v7276_v7 = vpop.f32.mrb[32].mxu1 }
 0x7b9   : > { %v5492_v8 = vpop.f32.mrb[33].mxu1 }
 0x7ba   : > { %v1721_v10 = vpop.f32.mrb[34].mxu1 }
 0x7bb   : > { %v5493_v16 = vpop.f32.mrb[35].mxu1 }
 0x7c0   : > { %v1818_v18 = vpop.f32.mrb[36].mxu1 }
 0x7c1   : > { %v5504_v20 = vpop.f32.mrb[37].mxu1  ;;  %v1927_v21 = vsel %vm929_vm3, %v1818_v18, -inf }
 0x7c2   : > { %1928 = vmax.xlane.f32.xlu0 %v1927_v21  ;;  %v1821_v22 = vpop.f32.mrb[38].mxu1 }
 0x7c3   : > { %v5505_v24 = vpop.f32.mrb[39].mxu1 }
 0x7cc   : > { %v7279_v25 = vpop.f32.mrb[32].mxu0 }
 0x7cd   : > { %v5486_v26 = vpop.f32.mrb[33].mxu0  ;;  %v1918_v27 = vpop.f32.mrb[40].mxu1 }
 0x7ce   : > { %v1673_v28 = vpop.f32.mrb[34].mxu0  ;;  %v5516_v30 = vpop.f32.mrb[41].mxu1  ;;  %v1933_v32 = vsel %vm929_vm3, %v1918_v27, -inf }
 0x7cf   : > { %1934 = vmax.xlane.f32.xlu0 %v1933_v32  ;;  %v5487_v33 = vpop.f32.mrb[35].mxu0  ;;  %v1921_v37 = vpop.f32.mrb[42].mxu1 }
 0x7d0   : > { %v5517_v38 = vpop.f32.mrb[43].mxu1 }
 0x7d4   : > { %v1768_v40 = vpop.f32.mrb[36].mxu0 }
 0x7d5   : > { %v5498_v39 = vpop.f32.mrb[37].mxu0  ;;  %v1924_v41 = vsel %vm929_vm3, %v1768_v40, -inf }
 0x7d6   : > { %1925 = vmax.xlane.f32.xlu1 %v1924_v41  ;;  %v1771_v42 = vpop.f32.mrb[38].mxu0 }
 0x7d7   : > { %v5499_v43 = vpop.f32.mrb[39].mxu0 }
 0x7dc   : > { %v1868_v44 = vpop.f32.mrb[40].mxu0 }
 0x7dd   : > { %v5510_v45 = vpop.f32.mrb[41].mxu0  ;;  %v1930_v46 = vsel %vm929_vm3, %v1868_v44, -inf }
 0x7de   : > { %1931 = vmax.xlane.f32.xlu0 %v1930_v46  ;;  %v1871_v47 = vpop.f32.mrb[42].mxu0 }
 0x7df   : > { %v5511_v48 = vpop.f32.mrb[43].mxu0 }
 0x84f   : > { %v1929_v49 = vpop.xlane.xlu0 %1928 }
 0x850   : > { %v1937_v50 = vsub.f32 %v1818_v18, %v1929_v49 }
 0x852   : > { %v1942_v51 = vmul.f32 1.442695, %v1937_v50 }
 0x854   : > { %6016 = vpow2.f32 %v1942_v51 }
 0x85c   : > { %v1935_v59 = vpop.xlane.xlu0 %1934 }
 0x85d   : > { %v1939_v60 = vsub.f32 %v1918_v27, %v1935_v59 }
 0x85e   : > { %v6017_v52 = vpop.eup %6016 }
 0x85f   : > { %v1951_v53 = vsel %vm929_vm3, %v6017_v52, 0.0  ;;  %v1946_v61 = vmul.f32 1.442695, %v1939_v60 }
 0x860   : > { %1952 = vadd.xlane.f32.xlu0 %v1951_v53 }
 0x863   : > { %v1926_v54 = vpop.xlane.xlu1 %1925 }
 0x864   : > { %v1936_v55 = vsub.f32 %v1768_v40, %v1926_v54 }
 0x866   : > { %v1940_v56 = vmul.f32 1.442695, %v1936_v55 }
 0x868   : > { %6018 = vpow2.f32 %v1940_v56 }
 0x869   : > { %6020 = vpow2.f32 %v1946_v61 }
 0x86b   : > { %v1932_v2 = vpop.xlane.xlu0 %1931 }
 0x86c   : > { %v1938_v4 = vsub.f32 %v1868_v44, %v1932_v2 }
 0x86e   : > { %v1944_v5 = vmul.f32 1.442695, %v1938_v4 }
 0x870   : > { %6022 = vpow2.f32 %v1944_v5 }
 0x872   : > { %v6019_v57 = vpop.eup %6018 }
 0x873   : > { %v1948_v58 = vsel %vm929_vm3, %v6019_v57, 0.0  ;;  %v6021_v63 = vpop.eup %6020 }
 0x874   : > { %1949 = vadd.xlane.f32.xlu1 %v1948_v58  ;;  %v1957_v1 = vsel %vm929_vm3, %v6021_v63, 0.0 }
 0x876   : > { %2020 = vrot.lane.b32.xlu0 %v7087_v14, %s6538_s6 }
 0x87a   : > { %v7297_v6 = vpop.eup %6022 }
 0x87b   : > { %v1954_v8 = vsel %vm929_vm3, %v7297_v6, 0.0 }
 0x885   : > { %2116 = vrot.lane.b32.xlu1 %v7084_v13, %s6538_s6 }
 0x889   : > { %1972 = vrot.lane.b32.xlu1 %v7094_v15, %s6538_s6 }
 0x88d   : > { %2068 = vrot.lane.b32.xlu1 %v7101_v17, %s6538_s6 }
 0x895   : > { %1958 = vadd.xlane.f32.xlu0 %v1957_v1 }
 0x8ab   : > { %2216 = vrot.lane.b32.xlu0 %v7087_v14, %s6539_s26 }
 0x8af   : > { %2214 = vrot.lane.b32.xlu0 %v7115_v29, %s6539_s26 }
 0x8b1   : > { %1955 = vadd.xlane.f32.xlu1 %v1954_v8 }
 0x8b3   : > { %2164 = vrot.lane.b32.xlu0 %v7122_v31, %s6539_s26 }
 0x8b7   : > { %2314 = vrot.lane.b32.xlu0 %v7131_v34, %s6539_s26 }
 0x8c2   : > { %2166 = vrot.lane.b32.xlu1 %v7094_v15, %s6539_s26 }
 0x8c6   : > { %2316 = vrot.lane.b32.xlu1 %v7084_v13, %s6539_s26 }
 0x8ca   : > { %2266 = vrot.lane.b32.xlu1 %v7101_v17, %s6539_s26 }
 0x8ce   : > { %2264 = vrot.lane.b32.xlu1 %v7142_v35, %s6539_s26 }
 0x8ed   : > { %v1953_v29 = vpop.xlane.xlu0 %1952 }
 0x8ee   : > { %6024 = vrcp.f32 %v1953_v29 }
 0x8f1   : > { %v2021_v10 = vpop.permute.xlu0 %2020 }
 0x8f2   : > { %v2026_v31 = vsel %vm998_vm4, %v2021_v10, 0 }
 0x8f3   : > { %5525 = vmatpush3.bf16.msra.mxu1 %v2026_v31 }
 0x8f4   : > { %5536 = vmatprep.subr.bf16.mxu1 %v6531_v0 }
 0x8f8   : > { %v6025_v34 = vpop.eup %6024 }
 0x8f9   : > { %v1965_v16 = vmul.f32 %v6025_v34, %v6017_v52 }
 0x8fb   : > { %v1969_v18 = vpack.c.bf16 %v1965_v16, %v1965_v16 }
 0x8fd   : > { %5527 = vmatmul.mubr.msk.bf16.vlgmr.msra.gmra.mrb[44].mxu1 %vm994_vm5, %v1969_v18 }
 0x8fe   : > { %5538 = vmatprep.mubr.msk.bf16.mxu1 %vm6532_vm0, %v6531_v0 }
 0x901   : > { %v1950_v20 = vpop.xlane.xlu1 %1949 }
 0x902   : > { %6026 = vrcp.f32 %v1950_v20 }
 0x905   : > { %v2117_v21 = vpop.permute.xlu1 %2116 }
 0x906   : > { %v2122_v35 = vsel %vm998_vm4, %v2117_v21, 0 }
 0x907   : > { %5537 = vmatpush3.bf16.msra.mxu1 %v2122_v35 }
 0x908   : > { %5548 = vmatprep.subr.bf16.mxu1 %v6531_v0 }
 0x909   : > { %v1973_v22 = vpop.permute.xlu1 %1972 }
 0x90a   : > { %v1978_v24 = vsel %vm998_vm4, %v1973_v22, 0 }
 0x90b   : > { %5519 = vmatpush3.bf16.msra.mxu0 %v1978_v24 }
 0x90c   : > { %v6027_v26 = vpop.eup %6026  ;;  %5530 = vmatprep.subr.bf16.mxu0 %v6531_v0 }
 0x90d   : > { %v1964_v27 = vmul.f32 %v6027_v26, %v6019_v57  ;;  %v2069_v28 = vpop.permute.xlu1 %2068 }
 0x90e   : > { %v2074_v32 = vsel %vm998_vm4, %v2069_v28, 0 }
 0x90f   : > { %v1968_v30 = vpack.c.bf16 %v1964_v27, %v1964_v27 }
 0x911   : > { %5521 = vmatmul.mubr.msk.bf16.vlgmr.msra.gmra.mrb[44].mxu0 %vm994_vm5, %v1968_v30 }
 0x912   : > { %5531 = vmatpush3.bf16.msra.mxu0 %v2074_v32  ;;  %5532 = vmatprep.mubr.msk.bf16.mxu0 %vm6532_vm0, %v6531_v0 }
 0x913   : > { %5542 = vmatprep.subr.bf16.mxu0 %v6531_v0 }
 0x922   : > { %v1959_v33 = vpop.xlane.xlu0 %1958 }
 0x923   : > { %6028 = vrcp.f32 %v1959_v33 }
 0x926   : > { %v2217_v40 = vpop.permute.xlu0 %2216 }
 0x927   : > { %v2222_v41 = vsel %vm744_vm2, %v2217_v40, 0 }
 0x92a   : > { %v2215_v42 = vpop.permute.xlu0 %2214 }
 0x92d   : > { %v6029_v37 = vpop.eup %6028 }
 0x92e   : > { %v1967_v38 = vmul.f32 %v6029_v37, %v6021_v63  ;;  %v2165_v47 = vpop.permute.xlu0 %2164 }
 0x930   : > { %v1971_v39 = vpack.c.bf16 %v1967_v38, %v1967_v38 }
 0x932   : > { %5539 = vmatmul.mubr.msk.bf16.vlgmr.msra.gmra.mrb[48].mxu1 %vm994_vm5, %v1971_v39  ;;  %v2315_v51 = vpop.permute.xlu0 %2314 }
 0x933   : > { %5549 = vmatpush3.bf16.xpose.msra.mxu1 %v2222_v41  ;;  %5550 = vmatprep.mubr.msk.bf16.mxu1 %vm6532_vm0, %v6531_v0 }
 0x934   : > { %5560 = vmatprep.subr.bf16.mxu1 %v6531_v0 }
 0x93a   : > { %5551 = vmatmul.mubr.msk.bf16.vlgmr.msra.gmra.mrb[52].mxu1 %vm744_vm2, %v2215_v42 }
 0x93b   : > { %5562 = vmatprep.mubr.msk.bf16.mxu1 %vm6532_vm0, %v6531_v0 }
 0x93e   : > { %v1956_v43 = vpop.xlane.xlu1 %1955 }
 0x93f   : > { %6030 = vrcp.f32 %v1956_v43 }
 0x942   : > { %v2167_v44 = vpop.permute.xlu1 %2166 }
 0x943   : > { %v2172_v52 = vsel %vm744_vm2, %v2167_v44, 0 }
 0x946   : > { %v2317_v45 = vpop.permute.xlu1 %2316 }
 0x947   : > { %v2322_v46 = vsel %vm744_vm2, %v2317_v45, 0 }
 0x948   : > { %5561 = vmatpush3.bf16.xpose.msra.mxu1 %v2322_v46 }
 0x949   : > { %v6031_v48 = vpop.eup %6030  ;;  %5572 = vmatprep.subr.bf16.mxu1 %v6531_v0 }
 0x94a   : > { %v1966_v49 = vmul.f32 %v6031_v48, %v7297_v6  ;;  %v2267_v53 = vpop.permute.xlu1 %2266 }
 0x94b   : > { %v2272_v54 = vsel %vm744_vm2, %v2267_v53, 0 }
 0x94c   : > { %v1970_v50 = vpack.c.bf16 %v1966_v49, %v1966_v49 }
 0x94e   : > { %5533 = vmatmul.mubr.msk.bf16.vlgmr.msra.gmra.mrb[48].mxu0 %vm994_vm5, %v1970_v50  ;;  %v2265_v55 = vpop.permute.xlu1 %2264 }
 0x94f   : > { %5543 = vmatpush3.bf16.xpose.msra.mxu0 %v2172_v52  ;;  %5563 = vmatmul.mubr.msk.bf16.vlgmr.msra.gmra.mrb[56].mxu1 %vm744_vm2, %v2315_v51 }
 0x950   : > { %5544 = vmatprep.mubr.msk.bf16.mxu0 %vm6532_vm0, %v6531_v0  ;;  %5554 = vmatprep.subr.bf16.mxu0 %v6531_v0 }
 0x951   : > { %5574 = vmatprep.mubr.msk.bf16.mxu1 %vm6532_vm0, %v6531_v0 }
 0x956   : > { %5545 = vmatmul.mubr.msk.bf16.vlgmr.msra.gmra.mrb[52].mxu0 %vm744_vm2, %v2165_v47 }
 0x957   : > { %5555 = vmatpush3.bf16.xpose.msra.mxu0 %v2272_v54  ;;  %5556 = vmatprep.mubr.msk.bf16.mxu0 %vm6532_vm0, %v6531_v0 }
 0x958   : > { %5566 = vmatprep.subr.bf16.mxu0 %v6531_v0 }
 0x95e   : > { %5557 = vmatmul.mubr.msk.bf16.vlgmr.msra.gmra.mrb[56].mxu0 %vm744_vm2, %v2265_v55 }
 0x95f   : > { %5568 = vmatprep.mubr.msk.bf16.mxu0 %vm6532_vm0, %v6531_v0 }
 0x9d0   : > { %v7356_v56 = vpop.f32.mrb[44].mxu1 }
 0x9d1   : > { %v5528_v57 = vpop.f32.mrb[45].mxu1 }
 0x9d2   : > { %v2065_v58 = vpop.f32.mrb[46].mxu1 }
 0x9d3   : > { %v5529_v59 = vpop.f32.mrb[47].mxu1 }
 0x9e4   : > { %v7358_v60 = vpop.f32.mrb[44].mxu0 }
 0x9e5   : > { %v5522_v61 = vpop.f32.mrb[45].mxu0 }
 0x9e6   : > { %v2017_v63 = vpop.f32.mrb[46].mxu0 }
 0x9e7   : > { %v5523_v1 = vpop.f32.mrb[47].mxu0 }
 0xa05   : > { %v7360_v2 = vpop.f32.mrb[48].mxu1 }
 0xa06   : > { %v5540_v4 = vpop.f32.mrb[49].mxu1 }
 0xa07   : > { %v2161_v5 = vpop.f32.mrb[50].mxu1 }
 0xa08   : > { %v5541_v6 = vpop.f32.mrb[51].mxu1 }
 0xa0d   : > { %v2258_v8 = vpop.f32.mrb[52].mxu1 }
 0xa0e   : > { %v5552_v29 = vpop.f32.mrb[53].mxu1  ;;  %v2367_v10 = vsel %vm929_vm3, %v2258_v8, -inf }
 0xa0f   : > { %2368 = vmax.xlane.f32.xlu0 %v2367_v10  ;;  %v2261_v31 = vpop.f32.mrb[54].mxu1 }
 0xa10   : > { %v5553_v34 = vpop.f32.mrb[55].mxu1 }
 0xa21   : > { %v7363_v16 = vpop.f32.mrb[48].mxu0 }
 0xa22   : > { %v5534_v18 = vpop.f32.mrb[49].mxu0  ;;  %v2358_v20 = vpop.f32.mrb[56].mxu1 }
 0xa23   : > { %v2113_v21 = vpop.f32.mrb[50].mxu0  ;;  %v5564_v35 = vpop.f32.mrb[57].mxu1  ;;  %v2373_v22 = vsel %vm929_vm3, %v2358_v20, -inf }
 0xa24   : > { %2374 = vmax.xlane.f32.xlu0 %v2373_v22  ;;  %v5535_v24 = vpop.f32.mrb[51].mxu0  ;;  %v2361_v26 = vpop.f32.mrb[58].mxu1 }
 0xa25   : > { %v5565_v27 = vpop.f32.mrb[59].mxu1 }
 0xa26   : > { %v5976_v27 = vld [vmem:[#allocation16] sm:$0xff]  }
 0xa29   : > { %v2208_v28 = vpop.f32.mrb[52].mxu0 }
 0xa2a   : > { %v5546_v30 = vpop.f32.mrb[53].mxu0  ;;  %v2364_v32 = vsel %vm929_vm3, %v2208_v28, -inf }
 0xa2b   : > { %2365 = vmax.xlane.f32.xlu1 %v2364_v32  ;;  %v2211_v33 = vpop.f32.mrb[54].mxu0 }
 0xa2c   : > { %v5547_v37 = vpop.f32.mrb[55].mxu0 }
 0xa31   : > { %v2308_v38 = vpop.f32.mrb[56].mxu0 }
 0xa32   : > { %v5558_v40 = vpop.f32.mrb[57].mxu0  ;;  %v2370_v39 = vsel %vm929_vm3, %v2308_v38, -inf }
 0xa33   : > { %2371 = vmax.xlane.f32.xlu0 %v2370_v39  ;;  %v2311_v41 = vpop.f32.mrb[58].mxu0  ;;  %v5977_v40 = vld [vmem:[#allocation16 + $0x8] sm:$0xff]  }
 0xa34   : > { %v5559_v42 = vpop.f32.mrb[59].mxu0  ;;  %v5978_v39 = vld [vmem:[#allocation13] sm:$0xff]   ;;  %v5979_v41 = vld [vmem:[#allocation13 + $0x8] sm:$0xff]  }
 0xa35   : > { %v6112_v42 = vld [vmem:[%s6958_s28] sm:$0xf]  ;;  %s562_s28 = scalar_lea.vmem [#allocation20], %s5146_s21 }
 0xa36   : > { %s4940_s24 = sshll.u32 %s562_s28, 4  ;;  %s7872_s24 = int_to_ptr.vmem [resolvable:$true] %s4940_s24 }
 0xa9c   : > { %v2369_v43 = vpop.xlane.xlu0 %2368 }
 0xa9d   : > { %v2377_v44 = vsub.f32 %v2258_v8, %v2369_v43  ;;  %v6113_v43 = vld [vmem:[%s6965_s7] sm:$0xf] }
 0xa9f   : > { %v2382_v45 = vmul.f32 1.442695, %v2377_v44 }
 0xaa1   : > { %6032 = vpow2.f32 %v2382_v45 }
 0xaab   : > { %v6033_v46 = vpop.eup %6032 }
 0xaac   : > { %v2391_v47 = vsel %vm929_vm3, %v6033_v46, 0.0 }
 0xaad   : > { %2392 = vadd.xlane.f32.xlu0 %v2391_v47 }
 0xab1   : > { %v2375_v48 = vpop.xlane.xlu0 %2374 }
 0xab2   : > { %v2379_v49 = vsub.f32 %v2358_v20, %v2375_v48 }
 0xab4   : > { %v2386_v50 = vmul.f32 1.442695, %v2379_v49 }
 0xab6   : > { %6034 = vpow2.f32 %v2386_v50 }
 0xab8   : > { %v2366_v51 = vpop.xlane.xlu1 %2365 }
 0xab9   : > { %v2376_v52 = vsub.f32 %v2208_v28, %v2366_v51 }
 0xabb   : > { %v2380_v53 = vmul.f32 1.442695, %v2376_v52 }
 0xabd   : > { %6036 = vpow2.f32 %v2380_v53 }
 0xac0   : > { %v6035_v54 = vpop.eup %6034  ;;  %v2372_v55 = vpop.xlane.xlu0 %2371 }
 0xac1   : > { %v2378_v57 = vsub.f32 %v2308_v38, %v2372_v55  ;;  %v2397_v58 = vsel %vm929_vm3, %v6035_v54, 0.0 }
 0xac2   : > { %2398 = vadd.xlane.f32.xlu0 %v2397_v58 }
 0xac3   : > { %v2384_v59 = vmul.f32 1.442695, %v2378_v57 }
 0xac5   : > { %6038 = vpow2.f32 %v2384_v59 }
 0xac7   : > { %v6037_v61 = vpop.eup %6036 }
 0xac8   : > { %v2388_v63 = vsel %vm929_vm3, %v6037_v61, 0.0 }
 0xac9   : > { %2389 = vadd.xlane.f32.xlu1 %v2388_v63 }
 0xacf   : > { %v6039_v1 = vpop.eup %6038 }
 0xad0   : > { %v2394_v4 = vsel %vm929_vm3, %v6039_v1, 0.0 }
 0xad1   : > { %2395 = vadd.xlane.f32.xlu1 %v2394_v4 }
 0xad8   : > { %2460 = vrot.lane.b32.xlu0 %v7087_v14, %s6540_s14 }
 0xae2   : > { %2412 = vrot.lane.b32.xlu1 %v7094_v15, %s6540_s14 }
 0xae6   : > { %2556 = vrot.lane.b32.xlu1 %v7084_v13, %s6540_s14 }
 0xaea   : > { %2508 = vrot.lane.b32.xlu1 %v7101_v17, %s6540_s14 }
 0xb3a   : > { %v2393_v5 = vpop.xlane.xlu0 %2392 }
 0xb3b   : > { %6040 = vrcp.f32 %v2393_v5 }
 0xb45   : > { %v6041_v6 = vpop.eup %6040 }
 0xb46   : > { %v2405_v29 = vmul.f32 %v6041_v6, %v6033_v46  ;;  %v5186_v6 = vld [vmem:[#allocation14] ss:$0 sm:$0xff] }
 0xb48   : > { %v2409_v14 = vpack.c.bf16 %v2405_v29, %v2405_v29 }
 0xb4f   : > { %v2399_v8 = vpop.xlane.xlu0 %2398 }
 0xb53   : > { %v2461_v10 = vpop.permute.xlu0 %2460 }
 0xb54   : > { %v2466_v31 = vsel %vm998_vm4, %v2461_v10, 0 }
 0xb55   : > { %5573 = vmatpush3.bf16.msra.mxu1 %v2466_v31 }
 0xb56   : > { %v2390_v34 = vpop.xlane.xlu1 %2389  ;;  %5584 = vmatprep.subr.bf16.mxu1 %v6531_v0 }
 0xb57   : > { %6042 = vrcp.f32 %v2390_v34 }
 0xb58   : > { %6044 = vrcp.f32 %v2399_v8  ;;  %5575 = vmatmul.mubr.msk.bf16.vlgmr.msra.gmra.mrb[60].mxu1 %vm994_vm5, %v2409_v14 }
 0xb59   : > { %5586 = vmatprep.mubr.msk.bf16.mxu1 %vm6532_vm0, %v6531_v0 }
 0xb5e   : > { %v2396_v13 = vpop.xlane.xlu1 %2395 }
 0xb5f   : > { %6046 = vrcp.f32 %v2396_v13 }
 0xb61   : > { %v6043_v15 = vpop.eup %6042 }
 0xb62   : > { %v6045_v17 = vpop.eup %6044  ;;  %v2413_v18 = vpop.permute.xlu1 %2412  ;;  %v2404_v20 = vmul.f32 %v6043_v15, %v6037_v61 }
 0xb63   : > { %v2418_v21 = vsel %vm998_vm4, %v2413_v18, 0  ;;  %v2407_v22 = vmul.f32 %v6045_v17, %v6035_v54 }
 0xb64   : > { %5567 = vmatpush3.bf16.msra.mxu0 %v2418_v21  ;;  %v2408_v35 = vpack.c.bf16 %v2404_v20, %v2404_v20 }
 0xb65   : > { %5578 = vmatprep.subr.bf16.mxu0 %v6531_v0  ;;  %v2411_v30 = vpack.c.bf16 %v2407_v22, %v2407_v22 }
 0xb66   : > { %v2557_v24 = vpop.permute.xlu1 %2556 }
 0xb67   : > { %v2562_v26 = vsel %vm998_vm4, %v2557_v24, 0  ;;  %5569 = vmatmul.mubr.msk.bf16.vlgmr.msra.gmra.mrb[60].mxu0 %vm994_vm5, %v2408_v35 }
 0xb68   : > { %5585 = vmatpush3.bf16.msra.mxu1 %v2562_v26  ;;  %5580 = vmatprep.mubr.msk.bf16.mxu0 %vm6532_vm0, %v6531_v0 }
 0xb69   : > { %v6047_v28 = vpop.eup %6046  ;;  %5598 = vmatprep.subr.bf16.mxu1 %v6531_v0 }
 0xb6a   : > { %v2509_v32 = vpop.permute.xlu1 %2508  ;;  %v2406_v33 = vmul.f32 %v6047_v28, %v6039_v1 }
 0xb6b   : > { %v2514_v37 = vsel %vm998_vm4, %v2509_v32, 0  ;;  %5587 = vmatmul.mubr.msk.bf16.vlgmr.msra.gmra.mrb[64].mxu1 %vm994_vm5, %v2411_v30 }
 0xb6c   : > { %5579 = vmatpush3.bf16.msra.mxu0 %v2514_v37  ;;  %5599 = vmatpush3.bf16.msra.mxu1 %v5976_v27  ;;  %v2410_v38 = vpack.c.bf16 %v2406_v33, %v2406_v33 }
 0xb6d   : > { %5600 = vmatprep.subr.bf16.mxu1 %v6531_v0  ;;  %5590 = vmatprep.subr.bf16.mxu0 %v6531_v0 }
 0xb6e   : > { %5602 = vmatprep.mubr.msk.bf16.mxu1 %vm6532_vm0, %v6531_v0 }
 0xb6f   : > { %5581 = vmatmul.mubr.msk.bf16.vlgmr.msra.gmra.mrb[64].mxu0 %vm994_vm5, %v2410_v38 }
 0xb70   : > { %5601 = vmatpush3.bf16.msra.mxu1 %v5977_v40  ;;  %5591 = vmatpush3.bf16.msra.mxu0 %v5978_v39 }
 0xb71   : > { %5592 = vmatprep.subr.bf16.mxu0 %v6531_v0  ;;  %5594 = vmatprep.mubr.msk.bf16.mxu0 %vm6532_vm0, %v6531_v0 }
 0xb72   : > { %5612 = vmatprep.subr.bf16.mxu1 %v6531_v0 }
 0xb73   : > { %5603 = vmatmul.mubr.msk.bf16.vlgmr.msra.gmra.mrb[68].mxu1 %vm589_vm1, %v6112_v42 }
 0xb74   : > { %5593 = vmatpush3.bf16.msra.mxu0 %v5979_v41  ;;  %5614 = vmatprep.mubr.msk.bf16.mxu1 %vm6532_vm0, %v6531_v0 }
 0xb75   : > { %5606 = vmatprep.subr.bf16.mxu0 %v6531_v0 }
 0xb77   : > { %5595 = vmatmul.mubr.msk.bf16.vlgmr.msra.gmra.mrb[68].mxu0 %vm589_vm1, %v6113_v43 }
 0xb78   : > { %5608 = vmatprep.mubr.msk.bf16.mxu0 %vm6532_vm0, %v6531_v0 }
 0xc2b   : > { %v7412_v44 = vpop.f32.mrb[60].mxu1 }
 0xc2c   : > { %v5576_v45 = vpop.f32.mrb[61].mxu1 }
 0xc2d   : > { %v2505_v46 = vpop.f32.mrb[62].mxu1 }
 0xc2e   : > { %v5577_v47 = vpop.f32.mrb[63].mxu1 }
 0xc3a   : > { %v7414_v48 = vpop.f32.mrb[60].mxu0 }
 0xc3b   : > { %v5570_v49 = vpop.f32.mrb[61].mxu0 }
 0xc3c   : > { %v2457_v50 = vpop.f32.mrb[62].mxu0 }
 0xc3d   : > { %v5571_v51 = vpop.f32.mrb[63].mxu0 }
 0xc3e   : > { %v7416_v52 = vpop.f32.mrb[64].mxu1 }
 0xc3f   : > { %v5588_v53 = vpop.f32.mrb[65].mxu1 }
 0xc40   : > { %v2601_v54 = vpop.f32.mrb[66].mxu1 }
 0xc41   : > { %v5589_v55 = vpop.f32.mrb[67].mxu1 }
 0xc42   : > { %v7418_v57 = vpop.f32.mrb[64].mxu0 }
 0xc43   : > { %v5582_v58 = vpop.f32.mrb[65].mxu0 }
 0xc44   : > { %v2553_v59 = vpop.f32.mrb[66].mxu0 }
 0xc45   : > { %v5583_v61 = vpop.f32.mrb[67].mxu0 }
 0xc46   : > { %v2806_v63 = vpop.f32.mrb[68].mxu1 }
 0xc47   : > { %v2838_v1 = vpack.c.bf16 %v2806_v63, %v2806_v63  ;;  %v5604_v4 = vpop.f32.mrb[69].mxu1 }
 0xc48   : > { %v2809_v5 = vpop.f32.mrb[70].mxu1 }
 0xc49   : > { %v2846_v8 = vrot.slane %v2838_v1, %v7012_v12  ;;  %v5605_v29 = vpop.f32.mrb[71].mxu1 }
 0xc4a   : > { %v2750_v10 = vpop.f32.mrb[68].mxu0 }
 0xc4b   : > { %v2847_v31 = vcombine.high %v2846_v8, %v2846_v8  ;;  %v7422_v34 = vrot.slane %v2846_v8, %v7012_v12  ;;  %v2751_v14 = vadd.f32 %v5186_v6, %v2750_v10  ;;  %v5596_v13 = vpop.f32.mrb[69].mxu0 }
 0xc4c   : > { %v2753_v15 = vpop.f32.mrb[70].mxu0 }
 0xc4d   : > { %v2861_v17 = vrot.slane %v2847_v31, %v7012_v12  ;;  %v2812_v18 = vpack.c.bf16 %v2751_v14, %v2751_v14  ;;  %v2868_v20 = vsel %vm744_vm2, %v7422_v34, 0  ;;  %v5597_v21 = vpop.f32.mrb[71].mxu0  ;;  %v2862_v27 = vcombine.high %v7422_v34, %v7422_v34 }
 0xc4e   : > { %5607 = vmatpush3.bf16.xpose.msra.mxu0 %v2868_v20 }
 0xc4f   : > { %v2820_v35 = vrot.slane %v2812_v18, %v7012_v12  ;;  %v2914_v22 = vsel %vm744_vm2, %v2861_v17, 0  ;;  %5618 = vmatprep.subr.bf16.mxu0 %v6531_v0  ;;  %v2863_v30 = vcombine.high %v2861_v17, %v2861_v17  ;;  %v2960_v32 = vsel %vm744_vm2, %v2862_v27, 0 }
 0xc50   : > { %5613 = vmatpush3.bf16.xpose.msra.mxu1 %v2914_v22  ;;  %v3164_v5 = vrot.slane %v2861_v17, %v7012_v12  ;;  %v3226_v8 = vrot.slane %v2862_v27, %v7012_v12 }
 0xc51   : > { %v2821_v24 = vcombine.high %v2820_v35, %v2820_v35  ;;  %v7431_v26 = vrot.slane %v2820_v35, %v7012_v12  ;;  %5624 = vmatprep.subr.bf16.mxu1 %v6531_v0  ;;  %v3006_v33 = vsel %vm744_vm2, %v2863_v30, 0  ;;  %v3288_v10 = vrot.slane %v2863_v30, %v7012_v12 }
 0xc52   : > { %v7473_v6 = vrot.slane %v3164_v5, %v7012_v12  ;;  %v7479_v29 = vrot.slane %v3226_v8, %v7012_v12 }
 0xc53   : > { %v7437_v28 = vrot.slane %v2821_v24, %v7012_v12  ;;  %v7453_v37 = vcombine.high %v7431_v26, %v7431_v26  ;;  %v7485_v31 = vrot.slane %v3288_v10, %v7012_v12 }
 0xc55   : > { %5609 = vmatmul.mubr.msk.bf16.vlgmr.msra.gmra.mrb[72].mxu0 %vm744_vm2, %v7431_v26  ;;  %v7457_v38 = vcombine.high %v7437_v28, %v7437_v28 }
 0xc56   : > { %5619 = vmatpush3.bf16.xpose.msra.mxu0 %v2960_v32  ;;  %5620 = vmatprep.mubr.msk.bf16.mxu0 %vm6532_vm0, %v6531_v0  ;;  %v3102_v32 = vrot.slane %v7422_v34, %v7012_v12 }
 0xc57   : > { %5615 = vmatmul.mubr.msk.bf16.vlgmr.msra.gmra.mrb[72].mxu1 %vm744_vm2, %v7437_v28  ;;  %5630 = vmatprep.subr.bf16.mxu0 %v6531_v0 }
 0xc58   : > { %5625 = vmatpush3.bf16.xpose.msra.mxu1 %v3006_v33  ;;  %5626 = vmatprep.mubr.msk.bf16.mxu1 %vm6532_vm0, %v6531_v0  ;;  %v7498_v33 = vrot.slane %v3102_v32, %v7012_v12 }
 0xc59   : > { %5636 = vmatprep.subr.bf16.mxu1 %v6531_v0 }
 0xc5d   : > { %5621 = vmatmul.mubr.msk.bf16.vlgmr.msra.gmra.mrb[76].mxu0 %vm744_vm2, %v7453_v37 }
 0xc5e   : > { %5632 = vmatprep.mubr.msk.bf16.mxu0 %vm6532_vm0, %v6531_v0 }
 0xc5f   : > { %5627 = vmatmul.mubr.msk.bf16.vlgmr.msra.gmra.mrb[76].mxu1 %vm744_vm2, %v7457_v38 }
 0xc60   : > { %5638 = vmatprep.mubr.msk.bf16.mxu1 %vm6532_vm0, %v6531_v0 }
 0xd28   : > { %v2904_v40 = vpop.f32.mrb[72].mxu0 }
 0xd29   : > { %v3048_v39 = vsel %vm929_vm3, %v2904_v40, -inf  ;;  %v5610_v41 = vpop.f32.mrb[73].mxu0 }
 0xd2a   : > { %v2950_v42 = vpop.f32.mrb[72].mxu1  ;;  %3049 = vmax.xlane.f32.xlu0 %v3048_v39  ;;  %v2907_v43 = vpop.f32.mrb[74].mxu0 }
 0xd2b   : > { %v3051_v45 = vsel %vm929_vm3, %v2950_v42, -inf  ;;  %v5611_v46 = vpop.f32.mrb[75].mxu0  ;;  %v5616_v47 = vpop.f32.mrb[73].mxu1 }
 0xd2c   : > { %3052 = vmax.xlane.f32.xlu1 %v3051_v45  ;;  %v2953_v49 = vpop.f32.mrb[74].mxu1 }
 0xd2d   : > { %v5617_v50 = vpop.f32.mrb[75].mxu1 }
 0xd2e   : > { %v3414_v50 = vrot.slane %v7437_v28, %v7012_v12 }
 0xd30   : > { %v2996_v51 = vpop.f32.mrb[76].mxu0 }
 0xd31   : > { %v5622_v53 = vpop.f32.mrb[77].mxu0  ;;  %v3054_v54 = vsel %vm929_vm3, %v2996_v51, -inf }
 0xd32   : > { %v3042_v55 = vpop.f32.mrb[76].mxu1  ;;  %3055 = vmax.xlane.f32.xlu0 %v3054_v54  ;;  %v2999_v58 = vpop.f32.mrb[78].mxu0  ;;  %v7507_v53 = vrot.slane %v3414_v50, %v7012_v12  ;;  %v3542_v54 = vrot.slane %v7457_v38, %v7012_v12 }
 0xd33   : > { %v5623_v59 = vpop.f32.mrb[79].mxu0  ;;  %v5628_v61 = vpop.f32.mrb[77].mxu1  ;;  %v3057_v4 = vsel %vm929_vm3, %v3042_v55, -inf }
 0xd34   : > { %v3045_v63 = vpop.f32.mrb[78].mxu1 }
 0xd35   : > { %v5629_v1 = vpop.f32.mrb[79].mxu1 }
 0xd36   : > { %3058 = vmax.xlane.f32.xlu0 %v3057_v4 }
 0xd3d   : > { %3172 = vrot.lane.b32.xlu1 %v7473_v6, %s6534_s2 }
 0xd41   : > { %3234 = vrot.lane.b32.xlu1 %v7479_v29, %s6534_s2 }
 0xd45   : > { %3296 = vrot.lane.b32.xlu1 %v7485_v31, %s6534_s2 }
 0xdb7   : > { %v3050_v14 = vpop.xlane.xlu0 %3049 }
 0xdb8   : > { %v3060_v13 = vsub.f32 %v2904_v40, %v3050_v14 }
 0xdb9   : > { %v3053_v15 = vpop.xlane.xlu1 %3052 }
 0xdba   : > { %v3064_v17 = vmul.f32 1.442695, %v3060_v13  ;;  %v3061_v18 = vsub.f32 %v2950_v42, %v3053_v15 }
 0xdbc   : > { %6048 = vpow2.f32 %v3064_v17  ;;  %v3066_v20 = vmul.f32 1.442695, %v3061_v18 }
 0xdbd   : > { %v3173_v21 = vpop.permute.xlu1 %3172 }
 0xdbe   : > { %6050 = vpow2.f32 %v3066_v20  ;;  %v3178_v35 = vsel %vm998_vm4, %v3173_v21, 0 }
 0xdbf   : > { %5637 = vmatpush3.bf16.msra.mxu1 %v3178_v35  ;;  %v3056_v40 = vpop.xlane.xlu0 %3055 }
 0xdc0   : > { %5648 = vmatprep.subr.bf16.mxu1 %v6531_v0  ;;  %v3062_v41 = vsub.f32 %v2996_v51, %v3056_v40  ;;  %v3350_v51 = vrot.slane %v7431_v26, %v7012_v12  ;;  %v3478_v26 = vrot.slane %v7453_v37, %v7012_v12 }
 0xdc1   : > { %v3235_v58 = vpop.permute.xlu1 %3234 }
 0xdc2   : > { %v3068_v43 = vmul.f32 1.442695, %v3062_v41  ;;  %v7520_v28 = vrot.slane %v3350_v51, %v7012_v12  ;;  %v7534_v38 = vrot.slane %v3478_v26, %v7012_v12  ;;  %v3240_v14 = vsel %vm998_vm4, %v3235_v58, 0 }
 0xdc3   : > { %v3059_v39 = vpop.xlane.xlu0 %3058 }
 0xdc4   : > { %v3063_v42 = vsub.f32 %v3042_v55, %v3059_v39  ;;  %6052 = vpow2.f32 %v3068_v43  ;;  %v7523_v55 = vrot.slane %v3542_v54, %v7012_v12 }
 0xdc5   : > { %v3297_v59 = vpop.permute.xlu1 %3296 }
 0xdc6   : > { %v6049_v22 = vpop.eup %6048  ;;  %v3070_v45 = vmul.f32 1.442695, %v3063_v42  ;;  %v3302_v15 = vsel %vm998_vm4, %v3297_v59, 0 }
 0xdc7   : > { %v3072_v24 = vsel %vm929_vm3, %v6049_v22, 0.0 }
 0xdc8   : > { %v6051_v27 = vpop.eup %6050  ;;  %3073 = vadd.xlane.f32.xlu0 %v3072_v24  ;;  %6054 = vpow2.f32 %v3070_v45 }
 0xdc9   : > { %v3075_v30 = vsel %vm929_vm3, %v6051_v27, 0.0 }
 0xdca   : > { %3076 = vadd.xlane.f32.xlu1 %v3075_v30 }
 0xdce   : > { %v6053_v46 = vpop.eup %6052 }
 0xdcf   : > { %v3078_v34 = vsel %vm929_vm3, %v6053_v46, 0.0 }
 0xdd2   : > { %v6055_v47 = vpop.eup %6054 }
 0xdd3   : > { %v3081_v49 = vsel %vm929_vm3, %v6055_v47, 0.0 }
 0xddb   : > { %3424 = vrot.lane.b32.xlu1 %v7473_v6, %s6535_s16 }
 0xdde   : > { %3110 = vrot.lane.b32.xlu0 %v7498_v33, %s6534_s2  ;;  %s7971_s2 = sld [smem:[#allocation37_spill]] }
 0xdfd   : > { %3079 = vadd.xlane.f32.xlu0 %v3078_v34 }
 0xdff   : > { %3082 = vadd.xlane.f32.xlu1 %v3081_v49 }
 0xe10   : > { %3422 = vrot.lane.b32.xlu1 %v7507_v53, %s6535_s16 }
 0xe13   : > { %3360 = vrot.lane.b32.xlu0 %v7498_v33, %s6535_s16 }
 0xe14   : > { %3552 = vrot.lane.b32.xlu1 %v7485_v31, %s6535_s16 }
 0xe17   : > { %3358 = vrot.lane.b32.xlu0 %v7520_v28, %s6535_s16 }
 0xe18   : > { %3550 = vrot.lane.b32.xlu1 %v7523_v55, %s6535_s16 }
 0xe1b   : > { %3488 = vrot.lane.b32.xlu0 %v7479_v29, %s6535_s16 }
 0xe1f   : > { %3486 = vrot.lane.b32.xlu0 %v7534_v38, %s6535_s16  ;;  %s7870_s16 = scalar_lea.hbm %s7971_s2, %s5233_s30 }
 0xe55   : > { %v3074_v61 = vpop.xlane.xlu0 %3073 }
 0xe56   : > { %6056 = vrcp.f32 %v3074_v61 }
 0xe57   : > { %v3077_v63 = vpop.xlane.xlu1 %3076 }
 0xe58   : > { %6058 = vrcp.f32 %v3077_v63 }
 0xe59   : > { %v3111_v1 = vpop.permute.xlu0 %3110 }
 0xe5a   : > { %v3116_v4 = vsel %vm998_vm4, %v3111_v1, 0 }
 0xe5b   : > { %5631 = vmatpush3.bf16.msra.mxu0 %v3116_v4  ;;  %v3425_v17 = vpop.permute.xlu1 %3424 }
 0xe5c   : > { %5642 = vmatprep.subr.bf16.mxu0 %v6531_v0  ;;  %v3430_v42 = vsel %vm744_vm2, %v3425_v17, 0 }
 0xe60   : > { %v6057_v37 = vpop.eup %6056 }
 0xe61   : > { %v3088_v5 = vmul.f32 %v6057_v37, %v6049_v22 }
 0xe62   : > { %v6059_v8 = vpop.eup %6058 }
 0xe63   : > { %v3089_v12 = vmul.f32 %v6059_v8, %v6051_v27  ;;  %v3092_v10 = vpack.c.bf16 %v3088_v5, %v3088_v5 }
 0xe65   : > { %5633 = vmatmul.mubr.msk.bf16.vlgmr.msra.gmra.mrb[80].mxu0 %vm994_vm5, %v3092_v10  ;;  %v3093_v13 = vpack.c.bf16 %v3089_v12, %v3089_v12 }
 0xe66   : > { %5643 = vmatpush3.bf16.msra.mxu0 %v3240_v14  ;;  %5644 = vmatprep.mubr.msk.bf16.mxu0 %vm6532_vm0, %v6531_v0 }
 0xe67   : > { %5639 = vmatmul.mubr.msk.bf16.vlgmr.msra.gmra.mrb[80].mxu1 %vm994_vm5, %v3093_v13  ;;  %5654 = vmatprep.subr.bf16.mxu0 %v6531_v0 }
 0xe68   : > { %5649 = vmatpush3.bf16.msra.mxu1 %v3302_v15  ;;  %5650 = vmatprep.mubr.msk.bf16.mxu1 %vm6532_vm0, %v6531_v0 }
 0xe69   : > { %5660 = vmatprep.subr.bf16.mxu1 %v6531_v0 }
 0xe8a   : > { %v3080_v18 = vpop.xlane.xlu0 %3079 }
 0xe8b   : > { %6060 = vrcp.f32 %v3080_v18 }
 0xe8c   : > { %v3083_v20 = vpop.xlane.xlu1 %3082 }
 0xe8d   : > { %6062 = vrcp.f32 %v3083_v20 }
 0xe8e   : > { %v3361_v21 = vpop.permute.xlu0 %3360 }
 0xe8f   : > { %v3366_v40 = vsel %vm744_vm2, %v3361_v21, 0 }
 0xe90   : > { %v3423_v41 = vpop.permute.xlu1 %3422 }
 0xe92   : > { %v3359_v32 = vpop.permute.xlu0 %3358 }
 0xe94   : > { %v3553_v45 = vpop.permute.xlu1 %3552 }
 0xe95   : > { %v6061_v35 = vpop.eup %6060 }
 0xe96   : > { %v3090_v22 = vmul.f32 %v6061_v35, %v6053_v46  ;;  %v3489_v43 = vpop.permute.xlu0 %3488 }
 0xe97   : > { %v6063_v24 = vpop.eup %6062  ;;  %v3494_v46 = vsel %vm744_vm2, %v3489_v43, 0 }
 0xe98   : > { %v3091_v27 = vmul.f32 %v6063_v24, %v6055_v47  ;;  %v3094_v30 = vpack.c.bf16 %v3090_v22, %v3090_v22  ;;  %v3558_v47 = vsel %vm744_vm2, %v3553_v45, 0  ;;  %v3551_v49 = vpop.permute.xlu1 %3550 }
 0xe9a   : > { %5645 = vmatmul.mubr.msk.bf16.vlgmr.msra.gmra.mrb[84].mxu0 %vm994_vm5, %v3094_v30  ;;  %v3095_v39 = vpack.c.bf16 %v3091_v27, %v3091_v27  ;;  %v3487_v34 = vpop.permute.xlu0 %3486 }
 0xe9b   : > { %5655 = vmatpush3.bf16.xpose.msra.mxu0 %v3366_v40  ;;  %5656 = vmatprep.mubr.msk.bf16.mxu0 %vm6532_vm0, %v6531_v0 }
 0xe9c   : > { %5651 = vmatmul.mubr.msk.bf16.vlgmr.msra.gmra.mrb[84].mxu1 %vm994_vm5, %v3095_v39  ;;  %5666 = vmatprep.subr.bf16.mxu0 %v6531_v0 }
 0xe9d   : > { %5661 = vmatpush3.bf16.xpose.msra.mxu1 %v3430_v42  ;;  %5662 = vmatprep.mubr.msk.bf16.mxu1 %vm6532_vm0, %v6531_v0 }
 0xe9e   : > { %5672 = vmatprep.subr.bf16.mxu1 %v6531_v0 }
 0xea2   : > { %5657 = vmatmul.mubr.msk.bf16.vlgmr.msra.gmra.mrb[88].mxu0 %vm744_vm2, %v3359_v32 }
 0xea3   : > { %5667 = vmatpush3.bf16.xpose.msra.mxu0 %v3494_v46  ;;  %5668 = vmatprep.mubr.msk.bf16.mxu0 %vm6532_vm0, %v6531_v0 }
 0xea4   : > { %5663 = vmatmul.mubr.msk.bf16.vlgmr.msra.gmra.mrb[88].mxu1 %vm744_vm2, %v3423_v41  ;;  %5678 = vmatprep.subr.bf16.mxu0 %v6531_v0 }
 0xea5   : > { %5673 = vmatpush3.bf16.xpose.msra.mxu1 %v3558_v47  ;;  %5674 = vmatprep.mubr.msk.bf16.mxu1 %vm6532_vm0, %v6531_v0 }
 0xea6   : > { %5684 = vmatprep.subr.bf16.mxu1 %v6531_v0 }
 0xeaa   : > { %5669 = vmatmul.mubr.msk.bf16.vlgmr.msra.gmra.mrb[92].mxu0 %vm744_vm2, %v3487_v34 }
 0xeab   : > { %5680 = vmatprep.mubr.msk.bf16.mxu0 %vm6532_vm0, %v6531_v0 }
 0xeac   : > { %5675 = vmatmul.mubr.msk.bf16.vlgmr.msra.gmra.mrb[92].mxu1 %vm744_vm2, %v3551_v49 }
 0xead   : > { %5686 = vmatprep.mubr.msk.bf16.mxu1 %vm6532_vm0, %v6531_v0 }
 0xf38   : > { %v7576_v50 = vpop.f32.mrb[80].mxu0 }
 0xf39   : > { %v5634_v51 = vpop.f32.mrb[81].mxu0 }
 0xf3a   : > { %v3155_v54 = vpop.f32.mrb[82].mxu0  ;;  %v7578_v26 = vpop.f32.mrb[80].mxu1 }
 0xf3b   : > { %v5635_v58 = vpop.f32.mrb[83].mxu0  ;;  %v5640_v59 = vpop.f32.mrb[81].mxu1 }
 0xf3c   : > { %v3217_v61 = vpop.f32.mrb[82].mxu1 }
 0xf3d   : > { %v5641_v63 = vpop.f32.mrb[83].mxu1 }
 0xf6d   : > { %v7580_v1 = vpop.f32.mrb[84].mxu0 }
 0xf6e   : > { %v5646_v4 = vpop.f32.mrb[85].mxu0 }
 0xf6f   : > { %v3279_v37 = vpop.f32.mrb[86].mxu0  ;;  %v7582_v5 = vpop.f32.mrb[84].mxu1 }
 0xf70   : > { %v5647_v8 = vpop.f32.mrb[87].mxu0  ;;  %v5652_v12 = vpop.f32.mrb[85].mxu1 }
 0xf71   : > { %v3341_v10 = vpop.f32.mrb[86].mxu1 }
 0xf72   : > { %v5653_v14 = vpop.f32.mrb[87].mxu1 }
 0xf75   : > { %v3402_v13 = vpop.f32.mrb[88].mxu0 }
 0xf76   : > { %v5658_v15 = vpop.f32.mrb[89].mxu0  ;;  %v3600_v17 = vsel %vm929_vm3, %v3402_v13, -inf }
 0xf77   : > { %v3466_v18 = vpop.f32.mrb[88].mxu1  ;;  %3601 = vmax.xlane.f32.xlu0 %v3600_v17  ;;  %v3405_v20 = vpop.f32.mrb[90].mxu0 }
 0xf78   : > { %v5659_v21 = vpop.f32.mrb[91].mxu0  ;;  %v5664_v35 = vpop.f32.mrb[89].mxu1  ;;  %v3603_v22 = vsel %vm929_vm3, %v3466_v18, -inf }
 0xf79   : > { %3604 = vmax.xlane.f32.xlu1 %v3603_v22  ;;  %v3469_v24 = vpop.f32.mrb[90].mxu1 }
 0xf7a   : > { %v5665_v27 = vpop.f32.mrb[91].mxu1 }
 0xf7d   : > { %v3530_v30 = vpop.f32.mrb[92].mxu0 }
 0xf7e   : > { %v5670_v32 = vpop.f32.mrb[93].mxu0  ;;  %v3606_v40 = vsel %vm929_vm3, %v3530_v30, -inf }
 0xf7f   : > { %v3594_v39 = vpop.f32.mrb[92].mxu1  ;;  %3607 = vmax.xlane.f32.xlu0 %v3606_v40  ;;  %v3533_v41 = vpop.f32.mrb[94].mxu0 }
 0xf80   : > { %v5671_v42 = vpop.f32.mrb[95].mxu0  ;;  %v5676_v43 = vpop.f32.mrb[93].mxu1  ;;  %v3609_v47 = vsel %vm929_vm3, %v3594_v39, -inf }
 0xf81   : > { %v3597_v45 = vpop.f32.mrb[94].mxu1 }
 0xf82   : > { %v5677_v46 = vpop.f32.mrb[95].mxu1 }
 0xf83   : > { %3610 = vmax.xlane.f32.xlu0 %v3609_v47 }
 0xf8a   : > { %3696 = vrot.lane.b32.xlu1 %v7473_v6, %s6536_s4 }
 0xf8e   : > { %3744 = vrot.lane.b32.xlu1 %v7479_v29, %s6536_s4 }
 0xf92   : > { %3792 = vrot.lane.b32.xlu1 %v7485_v31, %s6536_s4 }
0x1004   : > { %v3602_v34 = vpop.xlane.xlu0 %3601 }
0x1005   : > { %v3612_v49 = vsub.f32 %v3402_v13, %v3602_v34 }
0x1006   : > { %v3605_v51 = vpop.xlane.xlu1 %3604 }
0x1007   : > { %v3616_v54 = vmul.f32 1.442695, %v3612_v49  ;;  %v3613_v58 = vsub.f32 %v3466_v18, %v3605_v51 }
0x1009   : > { %6064 = vpow2.f32 %v3616_v54  ;;  %v3618_v59 = vmul.f32 1.442695, %v3613_v58 }
0x100a   : > { %v3697_v61 = vpop.permute.xlu1 %3696 }
0x100b   : > { %6066 = vpow2.f32 %v3618_v59  ;;  %v3702_v63 = vsel %vm998_vm4, %v3697_v61, 0 }
0x100c   : > { %5685 = vmatpush3.bf16.msra.mxu1 %v3702_v63  ;;  %v3608_v10 = vpop.xlane.xlu0 %3607 }
0x100d   : > { %5696 = vmatprep.subr.bf16.mxu1 %v6531_v0  ;;  %v3614_v13 = vsub.f32 %v3530_v30, %v3608_v10 }
0x100e   : > { %v3745_v24 = vpop.permute.xlu1 %3744 }
0x100f   : > { %v3620_v17 = vmul.f32 1.442695, %v3614_v13  ;;  %v3750_v47 = vsel %vm998_vm4, %v3745_v24, 0 }
0x1010   : > { %v3611_v14 = vpop.xlane.xlu0 %3610 }
0x1011   : > { %v3615_v15 = vsub.f32 %v3594_v39, %v3611_v14  ;;  %6068 = vpow2.f32 %v3620_v17 }
0x1012   : > { %v3793_v27 = vpop.permute.xlu1 %3792 }
0x1013   : > { %v6065_v4 = vpop.eup %6064  ;;  %v3622_v18 = vmul.f32 1.442695, %v3615_v15  ;;  %v3798_v49 = vsel %vm998_vm4, %v3793_v27, 0 }
0x1014   : > { %v3624_v37 = vsel %vm929_vm3, %v6065_v4, 0.0 }
0x1015   : > { %v6067_v8 = vpop.eup %6066  ;;  %3625 = vadd.xlane.f32.xlu0 %v3624_v37  ;;  %6070 = vpow2.f32 %v3622_v18 }
0x1016   : > { %v3627_v12 = vsel %vm929_vm3, %v6067_v8, 0.0 }
0x1017   : > { %3628 = vadd.xlane.f32.xlu1 %v3627_v12 }
0x101b   : > { %v6069_v20 = vpop.eup %6068 }
0x101c   : > { %v3630_v35 = vsel %vm929_vm3, %v6069_v20, 0.0 }
0x101f   : > { %v6071_v21 = vpop.eup %6070 }
0x1020   : > { %v3633_v22 = vsel %vm929_vm3, %v6071_v21, 0.0 }
0x1028   : > { %3892 = vrot.lane.b32.xlu1 %v7473_v6, %s6537_s11 }
0x102b   : > { %3648 = vrot.lane.b32.xlu0 %v7498_v33, %s6536_s4  ;;  %s6426_s4 = scalar_lea.vmem %s7872_s24, 128 }
0x102c   : > { %p6427_p5 = scmp.ne.s32.totalorder %s7872_s24, %s6426_s4 }
0x102e   : > { %p6428_p0 = pnand %p6427_p5, %p7972_p9 }
0x1030   : > { %p6429_p7 = pneg %p6428_p0 }
0x104a   : > { %3631 = vadd.xlane.f32.xlu0 %v3630_v35 }
0x104c   : > { %3634 = vadd.xlane.f32.xlu1 %v3633_v22 }
0x105d   : > { %3890 = vrot.lane.b32.xlu1 %v7507_v53, %s6537_s11 }
0x1060   : > { %3842 = vrot.lane.b32.xlu0 %v7498_v33, %s6537_s11 }
0x1061   : > { %3992 = vrot.lane.b32.xlu1 %v7485_v31, %s6537_s11 }
0x1064   : > { %3840 = vrot.lane.b32.xlu0 %v7520_v28, %s6537_s11 }
0x1065   : > { %3990 = vrot.lane.b32.xlu1 %v7523_v55, %s6537_s11 }
0x1068   : > { %3942 = vrot.lane.b32.xlu0 %v7479_v29, %s6537_s11 }
0x106c   : > { %3940 = vrot.lane.b32.xlu0 %v7534_v38, %s6537_s11  ;;  %s6545_s11 = smov [#allocation20]  }
0x10a2   : > { %v3626_v30 = vpop.xlane.xlu0 %3625 }
0x10a3   : > { %6072 = vrcp.f32 %v3626_v30 }
0x10a4   : > { %v3629_v32 = vpop.xlane.xlu1 %3628 }
0x10a5   : > { %6074 = vrcp.f32 %v3629_v32 }
0x10a6   : > { %v3649_v40 = vpop.permute.xlu0 %3648 }
0x10a7   : > { %v3654_v39 = vsel %vm998_vm4, %v3649_v40, 0 }
0x10a8   : > { %5679 = vmatpush3.bf16.msra.mxu0 %v3654_v39  ;;  %v3893_v51 = vpop.permute.xlu1 %3892 }
0x10a9   : > { %5690 = vmatprep.subr.bf16.mxu0 %v6531_v0  ;;  %v3898_v15 = vsel %vm744_vm2, %v3893_v51, 0 }
0x10ad   : > { %v6073_v41 = vpop.eup %6072 }
0x10ae   : > { %v3640_v42 = vmul.f32 %v6073_v41, %v6065_v4 }
0x10af   : > { %v6075_v43 = vpop.eup %6074 }
0x10b0   : > { %v3641_v45 = vmul.f32 %v6075_v43, %v6067_v8  ;;  %v3644_v46 = vpack.c.bf16 %v3640_v42, %v3640_v42 }
0x10b2   : > { %5681 = vmatmul.mubr.msk.bf16.vlgmr.msra.gmra.mrb[96].mxu0 %vm994_vm5, %v3644_v46  ;;  %v3645_v34 = vpack.c.bf16 %v3641_v45, %v3641_v45 }
0x10b3   : > { %5691 = vmatpush3.bf16.msra.mxu0 %v3750_v47  ;;  %5692 = vmatprep.mubr.msk.bf16.mxu0 %vm6532_vm0, %v6531_v0 }
0x10b4   : > { %5687 = vmatmul.mubr.msk.bf16.vlgmr.msra.gmra.mrb[96].mxu1 %vm994_vm5, %v3645_v34  ;;  %5702 = vmatprep.subr.bf16.mxu0 %v6531_v0 }
0x10b5   : > { %5697 = vmatpush3.bf16.msra.mxu1 %v3798_v49  ;;  %5698 = vmatprep.mubr.msk.bf16.mxu1 %vm6532_vm0, %v6531_v0 }
0x10b6   : > { %5708 = vmatprep.subr.bf16.mxu1 %v6531_v0 }
0x10d7   : > { %v3632_v54 = vpop.xlane.xlu0 %3631 }
0x10d8   : > { %6076 = vrcp.f32 %v3632_v54 }
0x10d9   : > { %v3635_v58 = vpop.xlane.xlu1 %3634 }
0x10da   : > { %6078 = vrcp.f32 %v3635_v58 }
0x10db   : > { %v3843_v59 = vpop.permute.xlu0 %3842 }
0x10dc   : > { %v3848_v10 = vsel %vm744_vm2, %v3843_v59, 0 }
0x10dd   : > { %v3891_v13 = vpop.permute.xlu1 %3890 }
0x10df   : > { %v3841_v12 = vpop.permute.xlu0 %3840 }
0x10e1   : > { %v3993_v18 = vpop.permute.xlu1 %3992 }
0x10e2   : > { %v6077_v61 = vpop.eup %6076 }
0x10e3   : > { %v3642_v63 = vmul.f32 %v6077_v61, %v6069_v20  ;;  %v3943_v17 = vpop.permute.xlu0 %3942 }
0x10e4   : > { %v6079_v4 = vpop.eup %6078  ;;  %v3948_v20 = vsel %vm744_vm2, %v3943_v17, 0 }
0x10e5   : > { %v3643_v37 = vmul.f32 %v6079_v4, %v6071_v21  ;;  %v3646_v8 = vpack.c.bf16 %v3642_v63, %v3642_v63  ;;  %v3998_v21 = vsel %vm744_vm2, %v3993_v18, 0  ;;  %v3991_v22 = vpop.permute.xlu1 %3990 }
0x10e7   : > { %5693 = vmatmul.mubr.msk.bf16.vlgmr.msra.gmra.mrb[100].mxu0 %vm994_vm5, %v3646_v8  ;;  %v3647_v14 = vpack.c.bf16 %v3643_v37, %v3643_v37  ;;  %v3941_v35 = vpop.permute.xlu0 %3940 }
0x10e8   : > { %5703 = vmatpush3.bf16.xpose.msra.mxu0 %v3848_v10  ;;  %5704 = vmatprep.mubr.msk.bf16.mxu0 %vm6532_vm0, %v6531_v0 }
0x10e9   : > { %5699 = vmatmul.mubr.msk.bf16.vlgmr.msra.gmra.mrb[100].mxu1 %vm994_vm5, %v3647_v14  ;;  %5714 = vmatprep.subr.bf16.mxu0 %v6531_v0 }
0x10ea   : > { %5709 = vmatpush3.bf16.xpose.msra.mxu1 %v3898_v15  ;;  %5710 = vmatprep.mubr.msk.bf16.mxu1 %vm6532_vm0, %v6531_v0 }
0x10eb   : > { %5720 = vmatprep.subr.bf16.mxu1 %v6531_v0 }
0x10ef   : > { %5705 = vmatmul.mubr.msk.bf16.vlgmr.msra.gmra.mrb[104].mxu0 %vm744_vm2, %v3841_v12 }
0x10f0   : > { %5715 = vmatpush3.bf16.xpose.msra.mxu0 %v3948_v20  ;;  %5716 = vmatprep.mubr.msk.bf16.mxu0 %vm6532_vm0, %v6531_v0 }
0x10f1   : > { %5711 = vmatmul.mubr.msk.bf16.vlgmr.msra.gmra.mrb[104].mxu1 %vm744_vm2, %v3891_v13  ;;  %5726 = vmatprep.subr.bf16.mxu0 %v6531_v0 }
0x10f2   : > { %5721 = vmatpush3.bf16.xpose.msra.mxu1 %v3998_v21  ;;  %5722 = vmatprep.mubr.msk.bf16.mxu1 %vm6532_vm0, %v6531_v0 }
0x10f3   : > { %5732 = vmatprep.subr.bf16.mxu1 %v6531_v0 }
0x10f7   : > { %5717 = vmatmul.mubr.msk.bf16.vlgmr.msra.gmra.mrb[108].mxu0 %vm744_vm2, %v3941_v35 }
0x10f8   : > { %5728 = vmatprep.mubr.msk.bf16.mxu0 %vm6532_vm0, %v6531_v0 }
0x10f9   : > { %5723 = vmatmul.mubr.msk.bf16.vlgmr.msra.gmra.mrb[108].mxu1 %vm744_vm2, %v3991_v22 }
0x10fa   : > { %5734 = vmatprep.mubr.msk.bf16.mxu1 %vm6532_vm0, %v6531_v0 }
0x1185   : > { %v7656_v24 = vpop.f32.mrb[96].mxu0 }
0x1186   : > { %v5682_v27 = vpop.f32.mrb[97].mxu0 }
0x1187   : > { %v3693_v30 = vpop.f32.mrb[98].mxu0  ;;  %v7658_v32 = vpop.f32.mrb[96].mxu1 }
0x1188   : > { %v5683_v40 = vpop.f32.mrb[99].mxu0  ;;  %v5688_v39 = vpop.f32.mrb[97].mxu1 }
0x1189   : > { %v3741_v41 = vpop.f32.mrb[98].mxu1 }
0x118a   : > { %v5689_v42 = vpop.f32.mrb[99].mxu1 }
0x11ba   : > { %v7660_v43 = vpop.f32.mrb[100].mxu0 }
0x11bb   : > { %v5694_v45 = vpop.f32.mrb[101].mxu0 }
0x11bc   : > { %v3789_v46 = vpop.f32.mrb[102].mxu0  ;;  %v7662_v47 = vpop.f32.mrb[100].mxu1 }
0x11bd   : > { %v5695_v34 = vpop.f32.mrb[103].mxu0  ;;  %v5700_v49 = vpop.f32.mrb[101].mxu1 }
0x11be   : > { %v3837_v51 = vpop.f32.mrb[102].mxu1 }
0x11bf   : > { %v5701_v54 = vpop.f32.mrb[103].mxu1 }
0x11c2   : > { %v3884_v58 = vpop.f32.mrb[104].mxu0 }
0x11c3   : > { %v5706_v59 = vpop.f32.mrb[105].mxu0  ;;  %v4040_v61 = vsel %vm929_vm3, %v3884_v58, -inf }
0x11c4   : > { %v3934_v63 = vpop.f32.mrb[104].mxu1  ;;  %4041 = vmax.xlane.f32.xlu0 %v4040_v61  ;;  %v3887_v4 = vpop.f32.mrb[106].mxu0 }
0x11c5   : > { %v5707_v37 = vpop.f32.mrb[107].mxu0  ;;  %v5712_v8 = vpop.f32.mrb[105].mxu1  ;;  %v4043_v12 = vsel %vm929_vm3, %v3934_v63, -inf }
0x11c6   : > { %4044 = vmax.xlane.f32.xlu1 %v4043_v12  ;;  %v3937_v10 = vpop.f32.mrb[106].mxu1 }
0x11c7   : > { %v5713_v14 = vpop.f32.mrb[107].mxu1 }
0x11ca   : > { %v3984_v13 = vpop.f32.mrb[108].mxu0 }
0x11cb   : > { %v5718_v15 = vpop.f32.mrb[109].mxu0  ;;  %v4046_v17 = vsel %vm929_vm3, %v3984_v13, -inf }
0x11cc   : > { %v4034_v18 = vpop.f32.mrb[108].mxu1  ;;  %4047 = vmax.xlane.f32.xlu0 %v4046_v17  ;;  %v3987_v20 = vpop.f32.mrb[110].mxu0 }
0x11cd   : > { %v5719_v21 = vpop.f32.mrb[111].mxu0  ;;  %v5724_v35 = vpop.f32.mrb[109].mxu1  ;;  %v4049_v30 = vsel %vm929_vm3, %v4034_v18, -inf }
0x11ce   : > { %v4037_v22 = vpop.f32.mrb[110].mxu1 }
0x11cf   : > { %v5725_v27 = vpop.f32.mrb[111].mxu1 }
0x11d0   : > { %4050 = vmax.xlane.f32.xlu0 %v4049_v30 }
0x11d7   : > { %4136 = vrot.lane.b32.xlu1 %v7473_v6, %s6538_s6 }
0x11db   : > { %4184 = vrot.lane.b32.xlu1 %v7479_v29, %s6538_s6 }
0x11df   : > { %4232 = vrot.lane.b32.xlu1 %v7485_v31, %s6538_s6 }
0x1251   : > { %v4042_v40 = vpop.xlane.xlu0 %4041 }
0x1252   : > { %v4052_v39 = vsub.f32 %v3884_v58, %v4042_v40 }
0x1253   : > { %v4045_v41 = vpop.xlane.xlu1 %4044 }
0x1254   : > { %v4056_v42 = vmul.f32 1.442695, %v4052_v39  ;;  %v4053_v45 = vsub.f32 %v3934_v63, %v4045_v41 }
0x1256   : > { %6080 = vpow2.f32 %v4056_v42  ;;  %v4058_v46 = vmul.f32 1.442695, %v4053_v45 }
0x1257   : > { %v4137_v34 = vpop.permute.xlu1 %4136 }
0x1258   : > { %6082 = vpow2.f32 %v4058_v46  ;;  %v4142_v49 = vsel %vm998_vm4, %v4137_v34, 0 }
0x1259   : > { %5733 = vmatpush3.bf16.msra.mxu1 %v4142_v49  ;;  %v4048_v58 = vpop.xlane.xlu0 %4047 }
0x125a   : > { %5744 = vmatprep.subr.bf16.mxu1 %v6531_v0  ;;  %v4054_v4 = vsub.f32 %v3984_v13, %v4048_v58 }
0x125b   : > { %v4185_v13 = vpop.permute.xlu1 %4184 }
0x125c   : > { %v4060_v8 = vmul.f32 1.442695, %v4054_v4  ;;  %v4190_v40 = vsel %vm998_vm4, %v4185_v13, 0 }
0x125d   : > { %v4051_v63 = vpop.xlane.xlu0 %4050 }
0x125e   : > { %v4055_v37 = vsub.f32 %v4034_v18, %v4051_v63  ;;  %6084 = vpow2.f32 %v4060_v8 }
0x1260   : > { %v6081_v51 = vpop.eup %6080  ;;  %v4062_v12 = vmul.f32 1.442695, %v4055_v37 }
0x1261   : > { %v4064_v54 = vsel %vm929_vm3, %v6081_v51, 0.0 }
0x1262   : > { %v6083_v59 = vpop.eup %6082  ;;  %4065 = vadd.xlane.f32.xlu0 %v4064_v54  ;;  %6086 = vpow2.f32 %v4062_v12 }
0x1263   : > { %v4067_v61 = vsel %vm929_vm3, %v6083_v59, 0.0 }
0x1264   : > { %4068 = vadd.xlane.f32.xlu1 %v4067_v61 }
0x1268   : > { %v6085_v10 = vpop.eup %6084 }
0x1269   : > { %v4070_v15 = vsel %vm929_vm3, %v6085_v10, 0.0 }
0x126c   : > { %v6087_v14 = vpop.eup %6086 }
0x126d   : > { %v4073_v17 = vsel %vm929_vm3, %v6087_v14, 0.0 }
0x1275   : > { %4332 = vrot.lane.b32.xlu1 %v7473_v6, %s6539_s26 }
0x1278   : > { %4088 = vrot.lane.b32.xlu0 %v7498_v33, %s6538_s6  ;;  %s6430_s6 = sshll.u32 %s6545_s11, 4  ;;  %s6431_s6 = int_to_ptr.vmem [resolvable:$false] %s6430_s6 }
0x1279   : > { %p6433_p11 = scmp.lt.s32.totalorder %s7872_s24, %s6431_s6 }
0x1297   : > { %4071 = vadd.xlane.f32.xlu0 %v4070_v15 }
0x1299   : > { %4074 = vadd.xlane.f32.xlu1 %v4073_v17 }
0x12aa   : > { %4330 = vrot.lane.b32.xlu1 %v7507_v53, %s6539_s26  ;;  %v4233_v53 = vpop.permute.xlu1 %4232 }
0x12ab   : > { %v4238_v39 = vsel %vm998_vm4, %v4233_v53, 0 }
0x12ad   : > { %4282 = vrot.lane.b32.xlu0 %v7498_v33, %s6539_s26 }
0x12ae   : > { %4432 = vrot.lane.b32.xlu1 %v7485_v31, %s6539_s26 }
0x12b1   : > { %4280 = vrot.lane.b32.xlu0 %v7520_v28, %s6539_s26 }
0x12b2   : > { %4430 = vrot.lane.b32.xlu1 %v7523_v55, %s6539_s26 }
0x12b5   : > { %4382 = vrot.lane.b32.xlu0 %v7479_v29, %s6539_s26 }
0x12b9   : > { %4380 = vrot.lane.b32.xlu0 %v7534_v38, %s6539_s26  ;;  %s6432_s26 = scalar_lea.vmem %s6431_s6, 256 }
0x12ba   : > { %p6434_p8 = scmp.lt.s32.totalorder %s6432_s26, %s6426_s4 }
0x12bc   : > { %p6435_p4 = por %p6434_p8, %p6433_p11 }
0x12be   : > { %p6436_p12 = pnand %p6435_p4, %p6429_p7 }
0x12ef   : > { %v4066_v18 = vpop.xlane.xlu0 %4065 }
0x12f0   : > { %6088 = vrcp.f32 %v4066_v18 }
0x12f1   : > { %v4069_v20 = vpop.xlane.xlu1 %4068 }
0x12f2   : > { %6090 = vrcp.f32 %v4069_v20 }
0x12f3   : > { %v4089_v21 = vpop.permute.xlu0 %4088 }
0x12f4   : > { %v4094_v35 = vsel %vm998_vm4, %v4089_v21, 0 }
0x12f5   : > { %5727 = vmatpush3.bf16.msra.mxu0 %v4094_v35  ;;  %v4333_v41 = vpop.permute.xlu1 %4332 }
0x12f6   : > { %5738 = vmatprep.subr.bf16.mxu0 %v6531_v0  ;;  %v4338_v37 = vsel %vm744_vm2, %v4333_v41, 0 }
0x12fa   : > { %v6089_v28 = vpop.eup %6088 }
0x12fb   : > { %v4080_v55 = vmul.f32 %v6089_v28, %v6081_v51 }
0x12fc   : > { %v6091_v22 = vpop.eup %6090 }
0x12fd   : > { %v4081_v27 = vmul.f32 %v6091_v22, %v6083_v59  ;;  %v4084_v30 = vpack.c.bf16 %v4080_v55, %v4080_v55 }
0x12ff   : > { %5729 = vmatmul.mubr.msk.bf16.vlgmr.msra.gmra.mrb[112].mxu0 %vm994_vm5, %v4084_v30  ;;  %v4085_v38 = vpack.c.bf16 %v4081_v27, %v4081_v27 }
0x1300   : > { %5739 = vmatpush3.bf16.msra.mxu0 %v4190_v40  ;;  %5740 = vmatprep.mubr.msk.bf16.mxu0 %vm6532_vm0, %v6531_v0 }
0x1301   : > { %5735 = vmatmul.mubr.msk.bf16.vlgmr.msra.gmra.mrb[112].mxu1 %vm994_vm5, %v4085_v38  ;;  %5750 = vmatprep.subr.bf16.mxu0 %v6531_v0 }
0x1302   : > { %5745 = vmatpush3.bf16.msra.mxu1 %v4238_v39  ;;  %5746 = vmatprep.mubr.msk.bf16.mxu1 %vm6532_vm0, %v6531_v0 }
0x1303   : > { %5756 = vmatprep.subr.bf16.mxu1 %v6531_v0 }
0x1324   : > { %v4072_v42 = vpop.xlane.xlu0 %4071 }
0x1325   : > { %6092 = vrcp.f32 %v4072_v42 }
0x1326   : > { %v4075_v45 = vpop.xlane.xlu1 %4074 }
0x1327   : > { %6094 = vrcp.f32 %v4075_v45 }
0x1328   : > { %v4283_v46 = vpop.permute.xlu0 %4282 }
0x1329   : > { %v4288_v58 = vsel %vm744_vm2, %v4283_v46, 0 }
0x132a   : > { %v4331_v4 = vpop.permute.xlu1 %4330 }
0x132c   : > { %v4281_v61 = vpop.permute.xlu0 %4280 }
0x132e   : > { %v4433_v12 = vpop.permute.xlu1 %4432 }
0x132f   : > { %v6093_v34 = vpop.eup %6092 }
0x1330   : > { %v4082_v49 = vmul.f32 %v6093_v34, %v6085_v10  ;;  %v4383_v8 = vpop.permute.xlu0 %4382 }
0x1331   : > { %v6095_v51 = vpop.eup %6094  ;;  %v4388_v10 = vsel %vm744_vm2, %v4383_v8, 0 }
0x1332   : > { %v4083_v54 = vmul.f32 %v6095_v51, %v6087_v14  ;;  %v4086_v59 = vpack.c.bf16 %v4082_v49, %v4082_v49  ;;  %v4438_v14 = vsel %vm744_vm2, %v4433_v12, 0  ;;  %v4431_v17 = vpop.permute.xlu1 %4430 }
0x1334   : > { %5741 = vmatmul.mubr.msk.bf16.vlgmr.msra.gmra.mrb[116].mxu0 %vm994_vm5, %v4086_v59  ;;  %v4087_v63 = vpack.c.bf16 %v4083_v54, %v4083_v54  ;;  %v4381_v15 = vpop.permute.xlu0 %4380 }
0x1335   : > { %5751 = vmatpush3.bf16.xpose.msra.mxu0 %v4288_v58  ;;  %5752 = vmatprep.mubr.msk.bf16.mxu0 %vm6532_vm0, %v6531_v0 }
0x1336   : > { %5747 = vmatmul.mubr.msk.bf16.vlgmr.msra.gmra.mrb[116].mxu1 %vm994_vm5, %v4087_v63  ;;  %5762 = vmatprep.subr.bf16.mxu0 %v6531_v0 }
0x1337   : > { %5757 = vmatpush3.bf16.xpose.msra.mxu1 %v4338_v37  ;;  %5758 = vmatprep.mubr.msk.bf16.mxu1 %vm6532_vm0, %v6531_v0 }
0x1338   : > { %5768 = vmatprep.subr.bf16.mxu1 %v6531_v0 }
0x133c   : > { %5753 = vmatmul.mubr.msk.bf16.vlgmr.msra.gmra.mrb[120].mxu0 %vm744_vm2, %v4281_v61 }
0x133d   : > { %5763 = vmatpush3.bf16.xpose.msra.mxu0 %v4388_v10  ;;  %5764 = vmatprep.mubr.msk.bf16.mxu0 %vm6532_vm0, %v6531_v0 }
0x133e   : > { %5759 = vmatmul.mubr.msk.bf16.vlgmr.msra.gmra.mrb[120].mxu1 %vm744_vm2, %v4331_v4  ;;  %5774 = vmatprep.subr.bf16.mxu0 %v6531_v0 }
0x133f   : > { %5769 = vmatpush3.bf16.xpose.msra.mxu1 %v4438_v14  ;;  %5770 = vmatprep.mubr.msk.bf16.mxu1 %vm6532_vm0, %v6531_v0 }
0x1340   : > { %5780 = vmatprep.subr.bf16.mxu1 %v6531_v0 }
0x1344   : > { %5765 = vmatmul.mubr.msk.bf16.vlgmr.msra.gmra.mrb[124].mxu0 %vm744_vm2, %v4381_v15 }
0x1345   : > { %5776 = vmatprep.mubr.msk.bf16.mxu0 %vm6532_vm0, %v6531_v0 }
0x1346   : > { %5771 = vmatmul.mubr.msk.bf16.vlgmr.msra.gmra.mrb[124].mxu1 %vm744_vm2, %v4431_v17 }
0x1347   : > { %5782 = vmatprep.mubr.msk.bf16.mxu1 %vm6532_vm0, %v6531_v0 }
0x13d2   : > { %v7736_v13 = vpop.f32.mrb[112].mxu0 }
0x13d3   : > { %v5730_v53 = vpop.f32.mrb[113].mxu0 }
0x13d4   : > { %v4133_v18 = vpop.f32.mrb[114].mxu0  ;;  %v7738_v20 = vpop.f32.mrb[112].mxu1 }
0x13d5   : > { %v5731_v21 = vpop.f32.mrb[115].mxu0  ;;  %v5736_v35 = vpop.f32.mrb[113].mxu1 }
0x13d6   : > { %v4181_v28 = vpop.f32.mrb[114].mxu1 }
0x13d7   : > { %v5737_v55 = vpop.f32.mrb[115].mxu1 }
0x1407   : > { %v7740_v22 = vpop.f32.mrb[116].mxu0 }
0x1408   : > { %v5742_v27 = vpop.f32.mrb[117].mxu0 }
0x1409   : > { %v4229_v30 = vpop.f32.mrb[118].mxu0  ;;  %v7742_v40 = vpop.f32.mrb[116].mxu1 }
0x140a   : > { %v5743_v38 = vpop.f32.mrb[119].mxu0  ;;  %v5748_v39 = vpop.f32.mrb[117].mxu1 }
0x140b   : > { %v4277_v41 = vpop.f32.mrb[118].mxu1 }
0x140c   : > { %v5749_v42 = vpop.f32.mrb[119].mxu1 }
0x140f   : > { %v4324_v45 = vpop.f32.mrb[120].mxu0 }
0x1410   : > { %v5754_v46 = vpop.f32.mrb[121].mxu0  ;;  %v4480_v34 = vsel %vm929_vm3, %v4324_v45, -inf }
0x1411   : > { %v4374_v49 = vpop.f32.mrb[120].mxu1  ;;  %4481 = vmax.xlane.f32.xlu0 %v4480_v34  ;;  %v4327_v51 = vpop.f32.mrb[122].mxu0 }
0x1412   : > { %v5755_v54 = vpop.f32.mrb[123].mxu0  ;;  %v5760_v59 = vpop.f32.mrb[121].mxu1  ;;  %v4483_v61 = vsel %vm929_vm3, %v4374_v49, -inf }
0x1413   : > { %4484 = vmax.xlane.f32.xlu1 %v4483_v61  ;;  %v4377_v58 = vpop.f32.mrb[122].mxu1 }
0x1414   : > { %v5761_v63 = vpop.f32.mrb[123].mxu1 }
0x1417   : > { %v4424_v4 = vpop.f32.mrb[124].mxu0 }
0x1418   : > { %v5766_v37 = vpop.f32.mrb[125].mxu0  ;;  %v4486_v8 = vsel %vm929_vm3, %v4424_v4, -inf }
0x1419   : > { %v4474_v12 = vpop.f32.mrb[124].mxu1  ;;  %4487 = vmax.xlane.f32.xlu0 %v4486_v8  ;;  %v4427_v10 = vpop.f32.mrb[126].mxu0 }
0x141a   : > { %v5767_v14 = vpop.f32.mrb[127].mxu0  ;;  %v5772_v15 = vpop.f32.mrb[125].mxu1  ;;  %v4489_v18 = vsel %vm929_vm3, %v4474_v12, -inf }
0x141b   : > { %v4477_v17 = vpop.f32.mrb[126].mxu1 }
0x141c   : > { %v5773_v53 = vpop.f32.mrb[127].mxu1 }
0x141d   : > { %4490 = vmax.xlane.f32.xlu0 %v4489_v18 }
0x149e   : > { %v4482_v21 = vpop.xlane.xlu0 %4481 }
0x149f   : > { %v4492_v35 = vsub.f32 %v4324_v45, %v4482_v21 }
0x14a0   : > { %v4485_v28 = vpop.xlane.xlu1 %4484 }
0x14a1   : > { %v4496_v55 = vmul.f32 1.442695, %v4492_v35  ;;  %v4493_v27 = vsub.f32 %v4374_v49, %v4485_v28  ;;  %v5980_v35 = vld [vmem:[#allocation11] sm:$0xff]  }
0x14a3   : > { %6096 = vpow2.f32 %v4496_v55  ;;  %v4498_v30 = vmul.f32 1.442695, %v4493_v27 }
0x14a5   : > { %6098 = vpow2.f32 %v4498_v30  ;;  %v5981_v30 = vld [vmem:[#allocation11 + $0x8] sm:$0xff]  }
0x14a6   : > { %v4488_v38 = vpop.xlane.xlu0 %4487 }
0x14a7   : > { %v4494_v39 = vsub.f32 %v4424_v4, %v4488_v38 }
0x14a9   : > { %v4500_v41 = vmul.f32 1.442695, %v4494_v39 }
0x14aa   : > { %v4491_v49 = vpop.xlane.xlu0 %4490 }
0x14ab   : > { %6100 = vpow2.f32 %v4500_v41  ;;  %v4495_v59 = vsub.f32 %v4474_v12, %v4491_v49 }
0x14ad   : > { %v6097_v42 = vpop.eup %6096  ;;  %v4502_v61 = vmul.f32 1.442695, %v4495_v59 }
0x14ae   : > { %v4504_v46 = vsel %vm929_vm3, %v6097_v42, 0.0 }
0x14af   : > { %v6099_v34 = vpop.eup %6098  ;;  %4505 = vadd.xlane.f32.xlu0 %v4504_v46  ;;  %6102 = vpow2.f32 %v4502_v61 }
0x14b0   : > { %v4507_v51 = vsel %vm929_vm3, %v6099_v34, 0.0 }
0x14b1   : > { %4508 = vadd.xlane.f32.xlu1 %v4507_v51 }
0x14b5   : > { %v7750_v54 = vpop.eup %6100 }
0x14b6   : > { %v4510_v45 = vsel %vm929_vm3, %v7750_v54, 0.0 }
0x14b7   : > { %4511 = vadd.xlane.f32.xlu0 %v4510_v45 }
0x14c2   : > { %4576 = vrot.lane.b32.xlu1 %v7473_v6, %s6540_s14  ;;  %v7766_v6 = vpop.eup %6102 }
0x14c6   : > { %4624 = vrot.lane.b32.xlu1 %v7479_v29, %s6540_s14 }
0x14cd   : > { %4528 = vrot.lane.b32.xlu0 %v7498_v33, %s6540_s14 }
0x14d1   : > { %2608 = vrot.lane.b32.xlu0 %v7274_v3, %s6541_s12  ;;  %v4513_v3 = vsel %vm929_vm3, %v7766_v6, 0.0 }
0x14d5   : > { %2612 = vrot.lane.b32.xlu0 %v7279_v25, %s6541_s12 }
0x14d9   : > { %4724 = vrot.lane.b32.xlu0 %v7656_v24, %s6541_s12 }
0x14dd   : > { %4728 = vrot.lane.b32.xlu0 %v7660_v43, %s6541_s12 }
0x14e1   : > { %2624 = vrot.lane.b32.xlu0 %v7358_v60, %s6542_s13 }
0x14e5   : > { %2628 = vrot.lane.b32.xlu0 %v7363_v16, %s6542_s13 }
0x14e9   : > { %4740 = vrot.lane.b32.xlu0 %v7736_v13, %s6542_s13 }
0x14ea   : > { %4514 = vadd.xlane.f32.xlu1 %v4513_v3 }
0x14ed   : > { %4744 = vrot.lane.b32.xlu0 %v7740_v22, %s6542_s13 }
0x14f1   : > { %2640 = vrot.lane.b32.xlu0 %v7414_v48, %s6543_s3 }
0x14f5   : > { %2644 = vrot.lane.b32.xlu0 %v7418_v57, %s6543_s3 }
0x14fb   : > { %4672 = vrot.lane.b32.xlu1 %v7485_v31, %s6540_s14 }
0x14ff   : > { %2610 = vrot.lane.b32.xlu1 %v7272_v62, %s6541_s12 }
0x1503   : > { %2614 = vrot.lane.b32.xlu1 %v7276_v7, %s6541_s12 }
0x1507   : > { %4726 = vrot.lane.b32.xlu1 %v7658_v32, %s6541_s12 }
0x150b   : > { %4730 = vrot.lane.b32.xlu1 %v7662_v47, %s6541_s12 }
0x150f   : > { %2626 = vrot.lane.b32.xlu1 %v7356_v56, %s6542_s13 }
0x1513   : > { %2630 = vrot.lane.b32.xlu1 %v7360_v2, %s6542_s13 }
0x1517   : > { %4742 = vrot.lane.b32.xlu1 %v7738_v20, %s6542_s13 }
0x151b   : > { %4746 = vrot.lane.b32.xlu1 %v7742_v40, %s6542_s13 }
0x151f   : > { %2642 = vrot.lane.b32.xlu1 %v7412_v44, %s6543_s3 }
0x1523   : > { %2646 = vrot.lane.b32.xlu1 %v7416_v52, %s6543_s3 }
0x153c   : > { %v4506_v62 = vpop.xlane.xlu0 %4505 }
0x153d   : > { %6104 = vrcp.f32 %v4506_v62 }
0x153e   : > { %v4509_v7 = vpop.xlane.xlu1 %4508 }
0x153f   : > { %6106 = vrcp.f32 %v4509_v7 }
0x1542   : > { %v4577_v25 = vpop.permute.xlu1 %4576 }
0x1543   : > { %v4582_v60 = vsel %vm998_vm4, %v4577_v25, 0 }
0x1544   : > { %5781 = vmatpush3.bf16.msra.mxu1 %v4582_v60  ;;  %v4512_v56 = vpop.xlane.xlu0 %4511 }
0x1545   : > { %6108 = vrcp.f32 %v4512_v56  ;;  %5792 = vmatprep.subr.bf16.mxu1 %v6531_v0 }
0x1546   : > { %v4625_v52 = vpop.permute.xlu1 %4624 }
0x1547   : > { %v6105_v2 = vpop.eup %6104  ;;  %v4630_v32 = vsel %vm998_vm4, %v4625_v52, 0 }
0x1548   : > { %v4520_v16 = vmul.f32 %v6105_v2, %v6097_v42  ;;  %v4529_v48 = vpop.permute.xlu0 %4528 }
0x1549   : > { %v6107_v57 = vpop.eup %6106  ;;  %v4534_v44 = vsel %vm998_vm4, %v4529_v48, 0 }
0x154a   : > { %v4521_v29 = vmul.f32 %v6107_v57, %v6099_v34  ;;  %5775 = vmatpush3.bf16.msra.mxu0 %v4534_v44  ;;  %v4524_v31 = vpack.c.bf16 %v4520_v16, %v4520_v16 }
0x154b   : > { %5786 = vmatprep.subr.bf16.mxu0 %v6531_v0 }
0x154c   : > { %v2609_v33 = vpop.permute.xlu0 %2608  ;;  %v4525_v24 = vpack.c.bf16 %v4521_v29, %v4521_v29 }
0x154d   : > { %5777 = vmatmul.mubr.msk.bf16.vlgmr.msra.gmra.mrb[128].mxu0 %vm994_vm5, %v4524_v31  ;;  %v2652_v59 = vsel %vm744_vm2, %v7190_v19, %v2609_v33 }
0x154e   : > { %5783 = vmatmul.mubr.msk.bf16.vlgmr.msra.gmra.mrb[128].mxu1 %vm994_vm5, %v4525_v24  ;;  %5787 = vmatpush3.bf16.msra.mxu0 %v4630_v32 }
0x154f   : > { %v6109_v43 = vpop.eup %6108  ;;  %5788 = vmatprep.mubr.msk.bf16.mxu0 %vm6532_vm0, %v6531_v0  ;;  %5794 = vmatprep.mubr.msk.bf16.mxu1 %vm6532_vm0, %v6531_v0 }
0x1550   : > { %v4522_v47 = vmul.f32 %v6109_v43, %v7750_v54  ;;  %v2613_v13 = vpop.permute.xlu0 %2612  ;;  %5798 = vmatprep.subr.bf16.mxu0 %v6531_v0  ;;  %v6544_v54 = vmov 1983009808  }
0x1551   : > { %v2673_v45 = vunpack.c.l.s4 %v6544_v54  ;;  %v2654_v2 = vsel %vm744_vm2, %v7195_v36, %v2613_v13 }
0x1552   : > { %v4526_v20 = vpack.c.bf16 %v4522_v47, %v4522_v47 }
0x1553   : > { %v2674_v3 = vunpack.c.0.s8 %v2673_v45 }
0x1554   : > { %v4725_v22 = vpop.permute.xlu0 %4724 }
0x1555   : > { %v4768_v40 = vsel %vm744_vm2, %v7576_v50, %v4725_v22  ;;  %5789 = vmatmul.mubr.msk.bf16.vlgmr.msra.gmra.mrb[132].mxu0 %vm994_vm5, %v4526_v20  ;;  %v2677_v48 = vsub.s32 %v2674_v3, %v7009_v11 }
0x1556   : > { %5802 = vmatprep.mubr.msk.bf16.mxu0 %vm6532_vm0, %v6531_v0 }
0x1558   : > { %v4729_v58 = vpop.permute.xlu0 %4728 }
0x1559   : > { %v4770_v63 = vsel %vm744_vm2, %v7580_v1, %v4729_v58 }
0x155c   : > { %v2625_v4 = vpop.permute.xlu0 %2624 }
0x155d   : > { %v2657_v61 = vsel %vm2656_vm6, %v2652_v59, %v2625_v4 }
0x1560   : > { %v2629_v37 = vpop.permute.xlu0 %2628 }
0x1564   : > { %v4741_v8 = vpop.permute.xlu0 %4740 }
0x1565   : > { %v7811_v12 = vsel %vm2656_vm6, %v4768_v40, %v4741_v8  ;;  %v5983_v8 = vld [vmem:[#allocation17 + $0x8] sm:$0xff]  }
0x1568   : > { %v4745_v10 = vpop.permute.xlu0 %4744 }
0x1569   : > { %v7814_v14 = vsel %vm2656_vm6, %v4770_v63, %v4745_v10 }
0x156c   : > { %v2641_v51 = vpop.permute.xlu0 %2640 }
0x156d   : > { %v2662_v7 = vsel %vm2661_vm7, %v2657_v61, %v2641_v51 }
0x1570   : > { %v2645_v60 = vpop.permute.xlu0 %2644 }
0x1577   : > { %v4515_v50 = vpop.xlane.xlu1 %4514 }
0x1578   : > { %6110 = vrcp.f32 %v4515_v50 }
0x157b   : > { %v4673_v15 = vpop.permute.xlu1 %4672 }
0x157c   : > { %v4678_v17 = vsel %vm998_vm4, %v4673_v15, 0 }
0x157d   : > { %5793 = vmatpush3.bf16.msra.mxu1 %v4678_v17 }
0x157e   : > { %5806 = vmatprep.subr.bf16.mxu1 %v6531_v0 }
0x157f   : > { %v2611_v1 = vpop.permute.xlu1 %2610 }
0x1582   : > { %v6111_v53 = vpop.eup %6110 }
0x1583   : > { %v4523_v18 = vmul.f32 %v6111_v53, %v7766_v6  ;;  %v2615_v21 = vpop.permute.xlu1 %2614 }
0x1584   : > { %v2655_v19 = vsel %vm744_vm2, %v7192_v23, %v2615_v21 }
0x1585   : > { %v4527_v28 = vpack.c.bf16 %v4523_v18, %v4523_v18 }
0x1587   : > { %5795 = vmatmul.mubr.msk.bf16.vlgmr.msra.gmra.mrb[132].mxu1 %vm994_vm5, %v4527_v28  ;;  %v4727_v55 = vpop.permute.xlu1 %4726 }
0x1588   : > { %v4769_v27 = vsel %vm744_vm2, %v7578_v26, %v4727_v55  ;;  %5807 = vmatpush3.bf16.msra.mxu1 %v5980_v35  ;;  %5810 = vmatprep.mubr.msk.bf16.mxu1 %vm6532_vm0, %v6531_v0 }
0x1589   : > { %5808 = vmatprep.subr.bf16.mxu1 %v6531_v0 }
0x158b   : > { %v4731_v38 = vpop.permute.xlu1 %4730 }
0x158c   : > { %v4771_v39 = vsel %vm744_vm2, %v7582_v5, %v4731_v38  ;;  %5809 = vmatpush3.bf16.msra.mxu1 %v5981_v30  ;;  %v2653_v5 = vsel %vm744_vm2, %v7188_v9, %v2611_v1  ;;  %v2659_v9 = vsel %vm2656_vm6, %v2654_v2, %v2629_v37  ;;  %v5982_v37 = vld [vmem:[#allocation17] sm:$0xff]  }
0x158d   : > { %v2664_v44 = vsel %vm2661_vm7, %v2659_v9, %v2645_v60  ;;  %5799 = vmatpush3.bf16.msra.mxu0 %v5982_v37 }
0x158e   : > { %5800 = vmatprep.subr.bf16.mxu0 %v6531_v0 }
0x158f   : > { %v2627_v41 = vpop.permute.xlu1 %2626 }
0x1590   : > { %v2658_v6 = vsel %vm2656_vm6, %v2653_v5, %v2627_v41 }
0x1591   : > { %5801 = vmatpush3.bf16.msra.mxu0 %v5983_v8 }
0x1593   : > { %v2631_v42 = vpop.permute.xlu1 %2630 }
0x1594   : > { %v2660_v16 = vsel %vm2656_vm6, %v2655_v19, %v2631_v42 }
0x1597   : > { %v4743_v46 = vpop.permute.xlu1 %4742 }
0x1598   : > { %v7828_v34 = vsel %vm2656_vm6, %v4769_v27, %v4743_v46 }
0x159b   : > { %v4747_v26 = vpop.permute.xlu1 %4746 }
0x159c   : > { %v7831_v49 = vsel %vm2656_vm6, %v4771_v39, %v4747_v26 }
0x159f   : > { %v2643_v62 = vpop.permute.xlu1 %2642 }
0x15a0   : > { %v2663_v25 = vsel %vm2661_vm7, %v2658_v6, %v2643_v62 }
0x15a1   : > { %v2670_v56 = vcombine.low %v2662_v7, %v2663_v25 }
0x15a3   : > { %v2647_v57 = vpop.permute.xlu1 %2646  ;;  %v2678_v31 = vrot.slane %v2670_v56, %v2677_v48 }
0x15a4   : > { %v2665_v29 = vsel %vm2661_vm7, %v2660_v16, %v2647_v57 }
0x15a5   : > { %v2671_v52 = vcombine.low %v2664_v44, %v2665_v29 }
0x15a7   : > { %v2685_v33 = vrot.slane %v2671_v52, %v2677_v48 }
0x15a9   : > { %v2686_v24 = vcombine.low %v2678_v31, %v2685_v33 }
0x15ab   : > { %v2688_v32 = vpack.c.bf16 %v2686_v24, %v2686_v24 }
0x15ad   : > { %5811 = vmatmul.mubr.msk.bf16.vlgmr.msra.gmra.mrb[136].mxu1 %vm589_vm1, %v2688_v32 }
0x1620   : > { %v4570_v36 = vpop.f32.mrb[128].mxu0 }
0x1621   : > { %v4618_v23 = vpop.f32.mrb[128].mxu1  ;;  %4756 = vrot.lane.b32.xlu0 %v4570_v36, %s6543_s3  ;;  %v5778_v43 = vpop.f32.mrb[129].mxu0 }
0x1622   : > { %v5784_v47 = vpop.f32.mrb[129].mxu1  ;;  %4758 = vrot.lane.b32.xlu1 %v4618_v23, %s6543_s3  ;;  %v4573_v11 = vpop.f32.mrb[130].mxu0 }
0x1623   : > { %v5779_v13 = vpop.f32.mrb[131].mxu0  ;;  %v4621_v20 = vpop.f32.mrb[130].mxu1 }
0x1624   : > { %v5785_v22 = vpop.f32.mrb[131].mxu1 }
0x1628   : > { %v4666_v40 = vpop.f32.mrb[132].mxu0 }
0x1629   : > { %4760 = vrot.lane.b32.xlu0 %v4666_v40, %s6543_s3  ;;  %v5790_v58 = vpop.f32.mrb[133].mxu0 }
0x162a   : > { %v4669_v63 = vpop.f32.mrb[134].mxu0 }
0x162b   : > { %v5791_v4 = vpop.f32.mrb[135].mxu0 }
0x165a   : > { %v4714_v10 = vpop.f32.mrb[132].mxu1 }
0x165b   : > { %4762 = vrot.lane.b32.xlu1 %v4714_v10, %s6543_s3  ;;  %v5796_v50 = vpop.f32.mrb[133].mxu1 }
0x165c   : > { %v4717_v15 = vpop.f32.mrb[134].mxu1 }
0x165d   : > { %v5797_v17 = vpop.f32.mrb[135].mxu1 }
0x1680   : > { %v4911_v1 = vpop.f32.mrb[136].mxu1 }
0x1681   : > { %v5812_v53 = vpop.f32.mrb[137].mxu1 }
0x1682   : > { %v4914_v18 = vpop.f32.mrb[138].mxu1 }
0x1683   : > { %v5813_v21 = vpop.f32.mrb[139].mxu1 }
0x1693   : > { %v4757_v35 = vpop.permute.xlu0 %4756 }
0x1694   : > { %v4776_v28 = vsel %vm2661_vm7, %v7811_v12, %v4757_v35  ;;  %v4759_v55 = vpop.permute.xlu1 %4758 }
0x1695   : > { %v4777_v0 = vsel %vm2661_vm7, %v7828_v34, %v4759_v55  ;;  %v5231_v34 = vld [vmem:[#allocation19] ss:$0 sm:$0xff] }
0x1696   : > { %v4784_v27 = vcombine.low %v4776_v28, %v4777_v0 }
0x1698   : > { %v4792_v46 = vrot.slane %v4784_v27, %v2677_v48 }
0x169b   : > { %v4761_v30 = vpop.permute.xlu0 %4760 }
0x169c   : > { %v4778_v39 = vsel %vm2661_vm7, %v7814_v14, %v4761_v30 }
0x16cd   : > { %v4763_v38 = vpop.permute.xlu1 %4762 }
0x16ce   : > { %v4779_v41 = vsel %vm2661_vm7, %v7831_v49, %v4763_v38 }
0x16cf   : > { %v4785_v42 = vcombine.low %v4778_v39, %v4779_v41 }
0x16d1   : > { %v4799_v51 = vrot.slane %v4785_v42, %v2677_v48 }
0x16d3   : > { %v4800_v26 = vcombine.low %v4792_v46, %v4799_v51 }
0x16d5   : > { %v4802_v54 = vpack.c.bf16 %v4800_v26, %v4800_v26 }
0x16d7   : > { %5803 = vmatmul.mubr.msk.bf16.vlgmr.msra.gmra.mrb[136].mxu0 %vm589_vm1, %v4802_v54 }
0x17aa   : > { %v4856_v12 = vpop.f32.mrb[136].mxu0 }
0x17ab   : > { %v4912_v45 = vadd.f32 %v4911_v1, %v4856_v12  ;;  %v5804_v14 = vpop.f32.mrb[137].mxu0 }
0x17ac   : > { %v4859_v59 = vpop.f32.mrb[138].mxu0 }
0x17ad   : > { %v4924_v5 = vadd.f32 %v5231_v34, %v4912_v45  ;;  %v5805_v49 = vpop.f32.mrb[139].mxu0 }
0x17af   : > { %4925 = vst.msk [vmem:[%s562_s28] sm:$0xff] %vm589_vm1, %v4924_v5 }
0x17b0   : > { %6439 = shalt.err (!%p6436_p12)
}
0x17b1   : > { %s6440_s5 = scalar_lea.hbm %s7870_s16, 128  ;;  %s6444_s13 = scalar_lea.hbm %s7971_s2, 256 }
0x17b2   : > { %p6441_p13 = scmp.ne.s32.totalorder %s7870_s16, %s6440_s5  ;;  %p6445_p2 = scmp.lt.u32.totalorder %s7870_s16, %s7971_s2 }
0x17b3   : > { %p6446_p6 = scmp.lt.u32.totalorder %s6444_s13, %s6440_s5  ;;  %p6448_p5 = scmp.lt.u32.totalorder %s6440_s5, %s7870_s16 }
0x17b4   : > { %p6442_p1 = pnand %p6441_p13, %p7972_p9 }
0x17b5   : > { %p6447_p10 = por %p6446_p6, %p6445_p2 }
0x17b6   : > { %p6443_p3 = pneg %p6442_p1 }
0x17b7   : > { %p6449_p0 = por %p6448_p5, %p6447_p10 }
0x17b9   : > { %p6450_p7 = pnand %p6449_p0, %p6443_p3 }
0x17bb   : > { %6453 = shalt.err (!%p6450_p7)
}
0x17bc   : > { %5854 = dma.vmem_to_hbm [thread:$0]  (%p7972_p9), %s7872_s24, 128, %s7870_s16, %s4927_s23  }
0x17bd PF: > { %s4952_s30 = sand.u32 1, %s6504_s17   ;;  %p7973_p11 = scmp.ne.s32.totalorder %s7955_s22, 0 }
0x17be   : > { %p7974_p8 = scmp.ge.s32.totalorder %s6516_s20, 2  ;;  %s4953_s28 = scalar_lea.sflag [#allocation4], %s4952_s30 }
0x17c0   : > { %p5892_p4 = pnand %p7974_p8, %p7973_p11 }
0x17c2   : > { %6499 = dma.done.wait (!%p5892_p4), %s4953_s28, 128  }
0x17c3   : > { %6501 = vsyncadd (!%p5892_p4), %s4953_s28, 4294967168  ;;  %p31_p12 = scmp.ge.s32.totalorder %s6855_s27, 4   ;;  %s7975_s17 = smov %s6508_s18 }
0x17c4   : > { %s7976_s18 = smov %s6512_s19  ;;  %s7977_s19 = smov %s6867_s1 }
0x17c5   : > { %s7978_s20 = smov %s6855_s27  ;;  %33 = sbr.rel (!%p31_p12) target bundleno = 20 (0x14), region = 158 }
0x17cc   :  { %4958 = vsyncpa [#allocation3], 1 }
0x17cd   :  { %4960 = vsyncpa [#allocation3 + $0x1], 1 }
0x17ce   :  { %4961 = vsyncpa [#allocation6], 1 }
0x17cf   :  { %4963 = vsyncpa [#allocation6 + $0x1], 1 }
0x17d0   :  { %4964 = vsyncpa [#allocation9], 1 }
0x17d1   :  { %4965 = vsyncpa [#allocation12], 1 }
0x17d2   :  { %4966 = vsyncpa [#allocation15], 1 }
0x17d3   :  { %4967 = vsyncpa [#allocation18], 1 }
0x17d4   :  { %4968 = vsyncpa [#allocation4], 1 }
0x17d5   :  { %4970 = vsyncpa [#allocation4 + $0x1], 1 }

</bundles_post_ra>
